<compile_context>
chip_gen: v7x
topology: tpu7x:2x2x1
jax: 0.10.0
libtpu: 0.0.40
codegen_flags: <defaults>
</compile_context>

<pallas_src>
from functools import partial

import jax
import jax.numpy as jnp
from jax import lax
from jax.experimental import pallas as pl
from jax.experimental.pallas import tpu as pltpu


def _vmem_capacity_bytes(default=64 * 1024 * 1024):
    """Best-effort query of per-core VMEM capacity (falls back to 64 MiB)."""
    try:
        return int(pltpu.get_tpu_info().vmem_capacity_bytes)
    except Exception:  # pragma: no cover - hardware query is best-effort
        return default


def kan_attention_kernel(x_ref,
                         w_in_ref, b_in_ref,
                         w_qkv_ref, b_qkv_ref,
                         wo_ref, bo_ref,
                         ln_g_ref, ln_b_ref,
                         w_proj_ref, b_proj_ref,
                         a_ref, b_ref, w_ref, kbias_ref,
                         w_out_ref, b_out_ref,
                         o_ref, *,
                         num_layers, num_heads, num_basis, ln_eps):
    tb, S, din = x_ref.shape
    E = w_in_ref.shape[1]
    hd = E // num_heads
    scale = 1.0 / (hd ** 0.5)

    # ---- input projection: (tb*S, Din) @ (Din, E) + (1, E) ----
    x2 = x_ref[...].reshape(tb * S, din)
    h2 = jnp.dot(x2, w_in_ref[...], preferred_element_type=jnp.float32)
    h2 = h2 + b_in_ref[...]

    # ---- fused QKV projection: single lane/K-dense MXU matmul ----
    qkv2 = jnp.dot(h2, w_qkv_ref[...], preferred_element_type=jnp.float32)
    qkv2 = qkv2 + b_qkv_ref[...]                 # (tb*S, 3E): [Q | K | V]

    # ---- multi-head self-attention (static per-head loop, static slices) ----
    ctx_parts = []
    for hidx in range(num_heads):
        c0 = hidx * hd
        q = qkv2[:, c0:c0 + hd].reshape(tb, S, hd)
        k = qkv2[:, E + c0:E + c0 + hd].reshape(tb, S, hd)
        v = qkv2[:, 2 * E + c0:2 * E + c0 + hd].reshape(tb, S, hd)
        s = jnp.einsum('bqd,bkd->bqk', q, k,
                       preferred_element_type=jnp.float32) * scale
        s = s - jnp.max(s, axis=-1, keepdims=True)
        p = jnp.exp(s)
        # Reciprocal on the EUP instead of a VALU divide (approx=False keeps
        # the 1e-4 self-test tolerance; flip to approx=True if it can loosen).
        p = p * pl.reciprocal(jnp.sum(p, axis=-1, keepdims=True), approx=False)
        ctx_parts.append(jnp.einsum('bqk,bkd->bqd', p, v,
                                    preferred_element_type=jnp.float32))
    # Concatenate heads along the feature axis (matches PyTorch head concat).
    ctx_all = jnp.concatenate(ctx_parts, axis=-1).reshape(tb * S, E)

    # ---- fused output projection: ONE (tb*S, E) @ (E, E) matmul ----
    attn2 = jnp.dot(ctx_all, wo_ref[...], preferred_element_type=jnp.float32)
    attn2 = attn2 + bo_ref[...]

    # ---- residual + LayerNorm over the embedding axis (rsqrt on EUP) ----
    r = h2 + attn2
    mu = jnp.mean(r, axis=-1, keepdims=True)
    var = jnp.mean((r - mu) * (r - mu), axis=-1, keepdims=True)
    y = (r - mu) * lax.rsqrt(var + ln_eps) * ln_g_ref[...] + ln_b_ref[...]

    # ---- mean-pool over the sequence axis -> (tb, E) ----
    pooled = jnp.mean(y.reshape(tb, S, E), axis=1)

    # ---- projection to hidden: (tb, E) @ (E, H) + (1, H) ----
    h = jnp.dot(pooled, w_proj_ref[...], preferred_element_type=jnp.float32)
    h = h + b_proj_ref[...]
    H = h.shape[1]

    # ---- KAN layers: accumulate over the basis index (no 3-D temporaries) --
    for l in range(num_layers):          # static unroll (num_layers is small)
        a_l = a_ref[l]                   # (NB, H)
        b_l = b_ref[l]                   # (NB, H)
        w_l = w_ref[l]                   # (NB, H)
        acc = jnp.broadcast_to(kbias_ref[l], (tb, H))
        for kk in range(num_basis):      # static unroll (num_basis is small)
            acc = acc + w_l[kk] * jnp.sin(a_l[kk] * h + b_l[kk])
        h = acc

    # ---- output head (lane-dense: Dout zero-padded to a 128 multiple) ----
    out = jnp.dot(h, w_out_ref[...], preferred_element_type=jnp.float32)
    o_ref[...] = (out + b_out_ref[...]).astype(o_ref.dtype)


def kan_attention_forward(x, params, *, num_layers, num_heads, num_basis,
                          batch_tile=256, ln_eps=1e-5):
    """x: (B, seq_length, input_dim) float32 -> (B, output_dim) float32."""
    B, S, Din = x.shape
    E = params["w_in"].shape[0]
    H = params["w_proj"].shape[0]
    Dout = params["w_out"].shape[0]
    Dp = 128 * ((Dout + 127) // 128)     # lane-dense padded output width

    # ---- row-major, lane-dense parameter layouts (feature axis last) ----
    w_in_t = params["w_in"].T                        # (Din, E)
    b_in = params["b_in"][None, :]                   # (1, E)
    w_qkv = params["in_proj_w"].T                    # (E, 3E): [Q | K | V] cols
    b_qkv = params["in_proj_b"][None, :]             # (1, 3E)
    wo_t = params["out_proj_w"].T                    # (E, E)
    bo = params["out_proj_b"][None, :]               # (1, E)
    ln_g = params["ln_g"][None, :]                   # (1, E)
    ln_b = params["ln_b"][None, :]                   # (1, E)
    w_proj_t = params["w_proj"].T                    # (E, H)
    b_proj = params["b_proj"][None, :]               # (1, H)
    a_t = jnp.transpose(params["a"], (0, 2, 1))      # (L, NB, H)
    b_t = jnp.transpose(params["b"], (0, 2, 1))      # (L, NB, H)
    w_t = jnp.transpose(params["w"], (0, 2, 1))      # (L, NB, H)
    kbias = params["bias"]                           # (L, H)
    w_out_p = jnp.pad(params["w_out"].T, ((0, 0), (0, Dp - Dout)))  # (H, Dp)
    b_out_p = jnp.pad(params["b_out"], ((0, Dp - Dout),))[None, :]  # (1, Dp)

    weights = (w_in_t, b_in, w_qkv, b_qkv, wo_t, bo, ln_g, ln_b,
               w_proj_t, b_proj, a_t, b_t, w_t, kbias, w_out_p, b_out_p)

    # ---- generation-aware VMEM budget and batch tile derivation ----
    vmem_cap = _vmem_capacity_bytes()
    vmem_limit = max(32 * 1024 * 1024,
                     min(int(vmem_cap * 0.6), 100 * 1024 * 1024))
    weight_bytes = sum(int(w.size) * 4 for w in weights)
    # Per-batch-row live bytes: x double-buffer, out double-buffer, attention
    # / LN intermediates (h2, qkv2, ctx, attn, r, y), scores+probs, KAN temps.
    row_bytes = 4 * (2 * S * Din + 2 * Dp + 10 * S * E + 2 * S * S + 4 * H)
    budget = int(vmem_limit * 0.7) - weight_bytes
    tb = min(B, batch_tile)
    if budget > 0:
        tb = min(tb, max(1, budget // row_bytes))
    if tb >= B:
        tb = B                          # full batch in one block
    else:
        tb = max(8, (tb // 8) * 8)      # sublane-aligned tile for writeback
    grid = (pl.cdiv(B, tb),)

    def const_spec(arr):
        # Constant index_map -> weights stay VMEM-resident across grid steps.
        # (On v7x these could also be single-buffered via pl.Buffered(1); the
        #  weights here are tiny so it is not worth the extra constraint.)
        nd = arr.ndim
        return pl.BlockSpec(arr.shape, lambda i, _nd=nd: (0,) * _nd)

    kernel = partial(kan_attention_kernel, num_layers=num_layers,
                     num_heads=num_heads, num_basis=num_basis, ln_eps=ln_eps)

    out_padded = pl.pallas_call(
        kernel,
        out_shape=jax.ShapeDtypeStruct((B, Dp), jnp.float32),
        grid=grid,
        in_specs=[pl.BlockSpec((tb, S, Din), lambda i: (i, 0, 0))]
                 + [const_spec(w) for w in weights],
        out_specs=pl.BlockSpec((tb, Dp), lambda i: (i, 0)),
        compiler_params=pltpu.CompilerParams(
            dimension_semantics=("parallel",),
            vmem_limit_bytes=vmem_limit),
    )(x, *weights)
    return out_padded[:, :Dout]


def kan_attention_reference(x, params, *, num_layers, num_heads, ln_eps=1e-5):
    """Pure-JAX mirror of the PyTorch forward (eval mode) for verification."""
    B, S, Din = x.shape
    E = params["w_in"].shape[0]
    hd = E // num_heads
    scale = 1.0 / (hd ** 0.5)

    h = x @ params["w_in"].T + params["b_in"]                    # (B, S, E)
    qkv = h @ params["in_proj_w"].T + params["in_proj_b"]        # (B, S, 3E)
    q, k, v = jnp.split(qkv, 3, axis=-1)

    def split_heads(t):
        return t.reshape(B, S, num_heads, hd).transpose(0, 2, 1, 3)

    q, k, v = split_heads(q), split_heads(k), split_heads(v)
    s = jnp.einsum('bhqd,bhkd->bhqk', q, k) * scale
    p = jax.nn.softmax(s, axis=-1)
    ctx = jnp.einsum('bhqk,bhkd->bhqd', p, v)
    ctx = ctx.transpose(0, 2, 1, 3).reshape(B, S, E)
    attn = ctx @ params["out_proj_w"].T + params["out_proj_b"]

    r = h + attn
    mu = r.mean(-1, keepdims=True)
    var = ((r - mu) ** 2).mean(-1, keepdims=True)
    y = (r - mu) / jnp.sqrt(var + ln_eps) * params["ln_g"] + params["ln_b"]

    pooled = y.mean(axis=1)                                      # (B, E)
    hh = pooled @ params["w_proj"].T + params["b_proj"]
    for l in range(num_layers):
        a = params["a"][l]
        b = params["b"][l]
        w = params["w"][l]
        basis = jnp.sin(a[None] * hh[:, :, None] + b[None])
        hh = jnp.sum(w[None] * basis, axis=2) + params["bias"][l]
    return hh @ params["w_out"].T + params["b_out"]


def init_params(key, input_dim, embed_dim, hidden_dim, output_dim,
                num_layers, num_basis):
    E = embed_dim
    ks = jax.random.split(key, 14)
    return {
        # input_projection = nn.Linear(input_dim, embed_dim)
        "w_in": 0.3 * jax.random.normal(ks[0], (E, input_dim), jnp.float32),
        "b_in": 0.1 * jax.random.normal(ks[1], (E,), jnp.float32),
        # nn.MultiheadAttention(embed_dim, num_heads)
        "in_proj_w": 0.3 * jax.random.normal(ks[2], (3 * E, E), jnp.float32),
        "in_proj_b": 0.1 * jax.random.normal(ks[3], (3 * E,), jnp.float32),
        "out_proj_w": 0.3 * jax.random.normal(ks[4], (E, E), jnp.float32),
        "out_proj_b": 0.1 * jax.random.normal(ks[5], (E,), jnp.float32),
        # nn.LayerNorm(embed_dim)
        "ln_g": 1.0 + 0.1 * jax.random.normal(ks[6], (E,), jnp.float32),
        "ln_b": 0.1 * jax.random.normal(ks[7], (E,), jnp.float32),
        # projection = nn.Linear(embed_dim, hidden_dim)
        "w_proj": 0.3 * jax.random.normal(ks[8], (hidden_dim, E), jnp.float32),
        "b_proj": jnp.zeros((hidden_dim,), jnp.float32),
        # num_layers x KANLayer(hidden_dim, num_basis)
        "w": jax.random.normal(ks[9], (num_layers, hidden_dim, num_basis),
                               jnp.float32),
        "bias": jnp.zeros((num_layers, hidden_dim), jnp.float32),
        "a": jax.random.normal(ks[10], (num_layers, hidden_dim, num_basis),
                               jnp.float32),
        "b": jax.random.normal(ks[11], (num_layers, hidden_dim, num_basis),
                               jnp.float32),
        # fc_out = nn.Linear(hidden_dim, output_dim)
        "w_out": 0.3 * jax.random.normal(ks[12], (output_dim, hidden_dim),
                                         jnp.float32),
        "b_out": jnp.zeros((output_dim,), jnp.float32),
    }


if __name__ == "__main__":
    # Small shapes consistent with the module's forward.
    batch, seq_length, input_dim = 2, 8, 8
    hidden_dim, output_dim = 32, 8
    num_layers, num_heads, num_basis = 2, 4, 8
    embed_dim = num_heads * ((input_dim + num_heads - 1) // num_heads)

    key = jax.random.PRNGKey(0)
    k_x, k_p = jax.random.split(key)
    x = jax.random.normal(k_x, (batch, seq_length, input_dim), jnp.float32)
    params = init_params(k_p, input_dim, embed_dim, hidden_dim, output_dim,
                         num_layers, num_basis)

    out = kan_attention_forward(x, params, num_layers=num_layers,
                                num_heads=num_heads, num_basis=num_basis)
    out = jax.block_until_ready(out)

    ref = kan_attention_reference(x, params, num_layers=num_layers,
                                  num_heads=num_heads)
    assert out.shape == (batch, output_dim)
    max_diff = jnp.max(jnp.abs(out - ref))
    assert jnp.allclose(out, ref, rtol=1e-4, atol=1e-4), (
        f"max abs diff {max_diff}")

    print("KERNEL_OK")
</pallas_src>

<mosaic_0001>
module attributes {stable_mosaic.version = 11 : i64} {
  func.func @kan_attention_kernel(%arg0: i32, %arg1: memref<2x8x8xf32, #tpu.memory_space<vmem>>, %arg2: memref<8x8xf32, #tpu.memory_space<vmem>>, %arg3: memref<1x8xf32, #tpu.memory_space<vmem>>, %arg4: memref<8x24xf32, #tpu.memory_space<vmem>>, %arg5: memref<1x24xf32, #tpu.memory_space<vmem>>, %arg6: memref<8x8xf32, #tpu.memory_space<vmem>>, %arg7: memref<1x8xf32, #tpu.memory_space<vmem>>, %arg8: memref<1x8xf32, #tpu.memory_space<vmem>>, %arg9: memref<1x8xf32, #tpu.memory_space<vmem>>, %arg10: memref<8x32xf32, #tpu.memory_space<vmem>>, %arg11: memref<1x32xf32, #tpu.memory_space<vmem>>, %arg12: memref<2x8x32xf32, #tpu.memory_space<vmem>>, %arg13: memref<2x8x32xf32, #tpu.memory_space<vmem>>, %arg14: memref<2x8x32xf32, #tpu.memory_space<vmem>>, %arg15: memref<2x32xf32, #tpu.memory_space<vmem>>, %arg16: memref<32x128xf32, #tpu.memory_space<vmem>>, %arg17: memref<1x128xf32, #tpu.memory_space<vmem>>, %arg18: memref<2x128xf32, #tpu.memory_space<vmem>>) attributes {dimension_semantics = [#tpu.dimension_semantics<parallel>], iteration_bounds = array<i64: 1>, scalar_prefetch = 0 : i64, scratch_operands = 0 : i64, tpu.core_type = #tpu.core_type<tc>, window_params = [{transform_indices = @transform_0, window_bounds = array<i64: 2, 8, 8>}, {pipeline_mode = #tpu.pipeline_mode<synchronous>, transform_indices = @transform_1, window_bounds = array<i64: 8, 8>}, {pipeline_mode = #tpu.pipeline_mode<synchronous>, transform_indices = @transform_2, window_bounds = array<i64: 1, 8>}, {pipeline_mode = #tpu.pipeline_mode<synchronous>, transform_indices = @transform_3, window_bounds = array<i64: 8, 24>}, {pipeline_mode = #tpu.pipeline_mode<synchronous>, transform_indices = @transform_4, window_bounds = array<i64: 1, 24>}, {pipeline_mode = #tpu.pipeline_mode<synchronous>, transform_indices = @transform_5, window_bounds = array<i64: 8, 8>}, {pipeline_mode = #tpu.pipeline_mode<synchronous>, transform_indices = @transform_6, window_bounds = array<i64: 1, 8>}, {pipeline_mode = #tpu.pipeline_mode<synchronous>, transform_indices = @transform_7, window_bounds = array<i64: 1, 8>}, {pipeline_mode = #tpu.pipeline_mode<synchronous>, transform_indices = @transform_8, window_bounds = array<i64: 1, 8>}, {pipeline_mode = #tpu.pipeline_mode<synchronous>, transform_indices = @transform_9, window_bounds = array<i64: 8, 32>}, {pipeline_mode = #tpu.pipeline_mode<synchronous>, transform_indices = @transform_10, window_bounds = array<i64: 1, 32>}, {pipeline_mode = #tpu.pipeline_mode<synchronous>, transform_indices = @transform_11, window_bounds = array<i64: 2, 8, 32>}, {pipeline_mode = #tpu.pipeline_mode<synchronous>, transform_indices = @transform_12, window_bounds = array<i64: 2, 8, 32>}, {pipeline_mode = #tpu.pipeline_mode<synchronous>, transform_indices = @transform_13, window_bounds = array<i64: 2, 8, 32>}, {pipeline_mode = #tpu.pipeline_mode<synchronous>, transform_indices = @transform_14, window_bounds = array<i64: 2, 32>}, {pipeline_mode = #tpu.pipeline_mode<synchronous>, transform_indices = @transform_15, window_bounds = array<i64: 32, 128>}, {pipeline_mode = #tpu.pipeline_mode<synchronous>, transform_indices = @transform_16, window_bounds = array<i64: 1, 128>}, {transform_indices = @transform_17, window_bounds = array<i64: 2, 128>}]} {
    %c0 = arith.constant 0 : index
    %c0_0 = arith.constant 0 : index
    %c0_1 = arith.constant 0 : index
    %0 = vector.load %arg1[%c0, %c0_0, %c0_1] : memref<2x8x8xf32, #tpu.memory_space<vmem>>, vector<2x8x8xf32>
    %1 = vector.shape_cast %0 : vector<2x8x8xf32> to vector<16x8xf32>
    %c0_2 = arith.constant 0 : index
    %c0_3 = arith.constant 0 : index
    %2 = vector.load %arg2[%c0_2, %c0_3] : memref<8x8xf32, #tpu.memory_space<vmem>>, vector<8x8xf32>
    %cst = arith.constant dense<0.000000e+00> : vector<16x8xf32>
    %3 = tpu.matmul %1, %2, %cst {dimension_numbers = #tpu.dot_dimension_numbers<[1], [0], [0], [1], [0, 0, 1, 1], [], []>} : vector<16x8xf32>, vector<8x8xf32>, vector<16x8xf32> -> vector<16x8xf32>
    %c0_4 = arith.constant 0 : index
    %c0_5 = arith.constant 0 : index
    %4 = vector.load %arg3[%c0_4, %c0_5] : memref<1x8xf32, #tpu.memory_space<vmem>>, vector<1x8xf32>
    %5 = vector.broadcast %4 : vector<1x8xf32> to vector<16x8xf32>
    %6 = arith.addf %3, %5 : vector<16x8xf32>
    %c0_6 = arith.constant 0 : index
    %c0_7 = arith.constant 0 : index
    %7 = vector.load %arg4[%c0_6, %c0_7] : memref<8x24xf32, #tpu.memory_space<vmem>>, vector<8x24xf32>
    %cst_8 = arith.constant dense<0.000000e+00> : vector<16x24xf32>
    %8 = tpu.matmul %6, %7, %cst_8 {dimension_numbers = #tpu.dot_dimension_numbers<[1], [0], [0], [1], [0, 0, 1, 1], [], []>} : vector<16x8xf32>, vector<8x24xf32>, vector<16x24xf32> -> vector<16x24xf32>
    %c0_9 = arith.constant 0 : index
    %c0_10 = arith.constant 0 : index
    %9 = vector.load %arg5[%c0_9, %c0_10] : memref<1x24xf32, #tpu.memory_space<vmem>>, vector<1x24xf32>
    %10 = vector.broadcast %9 : vector<1x24xf32> to vector<16x24xf32>
    %11 = arith.addf %8, %10 : vector<16x24xf32>
    %12 = vector.extract_strided_slice %11 {offsets = [0, 0], sizes = [16, 2], strides = [1, 1]} : vector<16x24xf32> to vector<16x2xf32>
    %13 = vector.shape_cast %12 : vector<16x2xf32> to vector<2x8x2xf32>
    %14 = vector.extract_strided_slice %11 {offsets = [0, 8], sizes = [16, 2], strides = [1, 1]} : vector<16x24xf32> to vector<16x2xf32>
    %15 = vector.shape_cast %14 : vector<16x2xf32> to vector<2x8x2xf32>
    %16 = vector.extract_strided_slice %11 {offsets = [0, 16], sizes = [16, 2], strides = [1, 1]} : vector<16x24xf32> to vector<16x2xf32>
    %17 = vector.shape_cast %16 : vector<16x2xf32> to vector<2x8x2xf32>
    "tpu.trace_start"() <{level = 10 : i32, message = "bqd,bkd->bqk"}> : () -> ()
    %cst_11 = arith.constant dense<0.000000e+00> : vector<2x8x8xf32>
    %18 = tpu.matmul %13, %15, %cst_11 {dimension_numbers = #tpu.dot_dimension_numbers<[2], [2], [1], [1], [0, 0, 0, 1, 1, 1], [0], [0]>} : vector<2x8x2xf32>, vector<2x8x2xf32>, vector<2x8x8xf32> -> vector<2x8x8xf32>
    "tpu.trace_stop"() : () -> ()
    %cst_12 = arith.constant 0.707106769 : f32
    %19 = vector.broadcast %cst_12 : f32 to vector<2x8x8xf32>
    %20 = arith.mulf %18, %19 : vector<2x8x8xf32>
    %cst_13 = arith.constant dense<0xFF800000> : vector<2x8xf32>
    %21 = vector.multi_reduction <maximumf>, %20, %cst_13 [2] : vector<2x8x8xf32> to vector<2x8xf32>
    %22 = vector.shape_cast %21 : vector<2x8xf32> to vector<2x8x1xf32>
    %23 = vector.broadcast %22 : vector<2x8x1xf32> to vector<2x8x8xf32>
    %24 = arith.subf %20, %23 : vector<2x8x8xf32>
    %25 = math.exp %24 : vector<2x8x8xf32>
    %cst_14 = arith.constant dense<0.000000e+00> : vector<2x8xf32>
    %26 = vector.multi_reduction <add>, %25, %cst_14 [2] : vector<2x8x8xf32> to vector<2x8xf32>
    %27 = vector.shape_cast %26 : vector<2x8xf32> to vector<2x8x1xf32>
    %28 = tpu.reciprocal %27 : vector<2x8x1xf32> -> vector<2x8x1xf32>
    %29 = vector.broadcast %28 : vector<2x8x1xf32> to vector<2x8x8xf32>
    %30 = arith.mulf %25, %29 : vector<2x8x8xf32>
    "tpu.trace_start"() <{level = 10 : i32, message = "bqk,bkd->bqd"}> : () -> ()
    %cst_15 = arith.constant dense<0.000000e+00> : vector<2x8x2xf32>
    %31 = tpu.matmul %30, %17, %cst_15 {dimension_numbers = #tpu.dot_dimension_numbers<[2], [1], [1], [2], [0, 0, 0, 1, 1, 2], [0], [0]>} : vector<2x8x8xf32>, vector<2x8x2xf32>, vector<2x8x2xf32> -> vector<2x8x2xf32>
    "tpu.trace_stop"() : () -> ()
    %32 = vector.extract_strided_slice %11 {offsets = [0, 2], sizes = [16, 2], strides = [1, 1]} : vector<16x24xf32> to vector<16x2xf32>
    %33 = vector.shape_cast %32 : vector<16x2xf32> to vector<2x8x2xf32>
    %34 = vector.extract_strided_slice %11 {offsets = [0, 10], sizes = [16, 2], strides = [1, 1]} : vector<16x24xf32> to vector<16x2xf32>
    %35 = vector.shape_cast %34 : vector<16x2xf32> to vector<2x8x2xf32>
    %36 = vector.extract_strided_slice %11 {offsets = [0, 18], sizes = [16, 2], strides = [1, 1]} : vector<16x24xf32> to vector<16x2xf32>
    %37 = vector.shape_cast %36 : vector<16x2xf32> to vector<2x8x2xf32>
    "tpu.trace_start"() <{level = 10 : i32, message = "bqd,bkd->bqk"}> : () -> ()
    %cst_16 = arith.constant dense<0.000000e+00> : vector<2x8x8xf32>
    %38 = tpu.matmul %33, %35, %cst_16 {dimension_numbers = #tpu.dot_dimension_numbers<[2], [2], [1], [1], [0, 0, 0, 1, 1, 1], [0], [0]>} : vector<2x8x2xf32>, vector<2x8x2xf32>, vector<2x8x8xf32> -> vector<2x8x8xf32>
    "tpu.trace_stop"() : () -> ()
    %cst_17 = arith.constant 0.707106769 : f32
    %39 = vector.broadcast %cst_17 : f32 to vector<2x8x8xf32>
    %40 = arith.mulf %38, %39 : vector<2x8x8xf32>
    %cst_18 = arith.constant dense<0xFF800000> : vector<2x8xf32>
    %41 = vector.multi_reduction <maximumf>, %40, %cst_18 [2] : vector<2x8x8xf32> to vector<2x8xf32>
    %42 = vector.shape_cast %41 : vector<2x8xf32> to vector<2x8x1xf32>
    %43 = vector.broadcast %42 : vector<2x8x1xf32> to vector<2x8x8xf32>
    %44 = arith.subf %40, %43 : vector<2x8x8xf32>
    %45 = math.exp %44 : vector<2x8x8xf32>
    %cst_19 = arith.constant dense<0.000000e+00> : vector<2x8xf32>
    %46 = vector.multi_reduction <add>, %45, %cst_19 [2] : vector<2x8x8xf32> to vector<2x8xf32>
    %47 = vector.shape_cast %46 : vector<2x8xf32> to vector<2x8x1xf32>
    %48 = tpu.reciprocal %47 : vector<2x8x1xf32> -> vector<2x8x1xf32>
    %49 = vector.broadcast %48 : vector<2x8x1xf32> to vector<2x8x8xf32>
    %50 = arith.mulf %45, %49 : vector<2x8x8xf32>
    "tpu.trace_start"() <{level = 10 : i32, message = "bqk,bkd->bqd"}> : () -> ()
    %cst_20 = arith.constant dense<0.000000e+00> : vector<2x8x2xf32>
    %51 = tpu.matmul %50, %37, %cst_20 {dimension_numbers = #tpu.dot_dimension_numbers<[2], [1], [1], [2], [0, 0, 0, 1, 1, 2], [0], [0]>} : vector<2x8x8xf32>, vector<2x8x2xf32>, vector<2x8x2xf32> -> vector<2x8x2xf32>
    "tpu.trace_stop"() : () -> ()
    %52 = vector.extract_strided_slice %11 {offsets = [0, 4], sizes = [16, 2], strides = [1, 1]} : vector<16x24xf32> to vector<16x2xf32>
    %53 = vector.shape_cast %52 : vector<16x2xf32> to vector<2x8x2xf32>
    %54 = vector.extract_strided_slice %11 {offsets = [0, 12], sizes = [16, 2], strides = [1, 1]} : vector<16x24xf32> to vector<16x2xf32>
    %55 = vector.shape_cast %54 : vector<16x2xf32> to vector<2x8x2xf32>
    %56 = vector.extract_strided_slice %11 {offsets = [0, 20], sizes = [16, 2], strides = [1, 1]} : vector<16x24xf32> to vector<16x2xf32>
    %57 = vector.shape_cast %56 : vector<16x2xf32> to vector<2x8x2xf32>
    "tpu.trace_start"() <{level = 10 : i32, message = "bqd,bkd->bqk"}> : () -> ()
    %cst_21 = arith.constant dense<0.000000e+00> : vector<2x8x8xf32>
    %58 = tpu.matmul %53, %55, %cst_21 {dimension_numbers = #tpu.dot_dimension_numbers<[2], [2], [1], [1], [0, 0, 0, 1, 1, 1], [0], [0]>} : vector<2x8x2xf32>, vector<2x8x2xf32>, vector<2x8x8xf32> -> vector<2x8x8xf32>
    "tpu.trace_stop"() : () -> ()
    %cst_22 = arith.constant 0.707106769 : f32
    %59 = vector.broadcast %cst_22 : f32 to vector<2x8x8xf32>
    %60 = arith.mulf %58, %59 : vector<2x8x8xf32>
    %cst_23 = arith.constant dense<0xFF800000> : vector<2x8xf32>
    %61 = vector.multi_reduction <maximumf>, %60, %cst_23 [2] : vector<2x8x8xf32> to vector<2x8xf32>
    %62 = vector.shape_cast %61 : vector<2x8xf32> to vector<2x8x1xf32>
    %63 = vector.broadcast %62 : vector<2x8x1xf32> to vector<2x8x8xf32>
    %64 = arith.subf %60, %63 : vector<2x8x8xf32>
    %65 = math.exp %64 : vector<2x8x8xf32>
    %cst_24 = arith.constant dense<0.000000e+00> : vector<2x8xf32>
    %66 = vector.multi_reduction <add>, %65, %cst_24 [2] : vector<2x8x8xf32> to vector<2x8xf32>
    %67 = vector.shape_cast %66 : vector<2x8xf32> to vector<2x8x1xf32>
    %68 = tpu.reciprocal %67 : vector<2x8x1xf32> -> vector<2x8x1xf32>
    %69 = vector.broadcast %68 : vector<2x8x1xf32> to vector<2x8x8xf32>
    %70 = arith.mulf %65, %69 : vector<2x8x8xf32>
    "tpu.trace_start"() <{level = 10 : i32, message = "bqk,bkd->bqd"}> : () -> ()
    %cst_25 = arith.constant dense<0.000000e+00> : vector<2x8x2xf32>
    %71 = tpu.matmul %70, %57, %cst_25 {dimension_numbers = #tpu.dot_dimension_numbers<[2], [1], [1], [2], [0, 0, 0, 1, 1, 2], [0], [0]>} : vector<2x8x8xf32>, vector<2x8x2xf32>, vector<2x8x2xf32> -> vector<2x8x2xf32>
    "tpu.trace_stop"() : () -> ()
    %72 = vector.extract_strided_slice %11 {offsets = [0, 6], sizes = [16, 2], strides = [1, 1]} : vector<16x24xf32> to vector<16x2xf32>
    %73 = vector.shape_cast %72 : vector<16x2xf32> to vector<2x8x2xf32>
    %74 = vector.extract_strided_slice %11 {offsets = [0, 14], sizes = [16, 2], strides = [1, 1]} : vector<16x24xf32> to vector<16x2xf32>
    %75 = vector.shape_cast %74 : vector<16x2xf32> to vector<2x8x2xf32>
    %76 = vector.extract_strided_slice %11 {offsets = [0, 22], sizes = [16, 2], strides = [1, 1]} : vector<16x24xf32> to vector<16x2xf32>
    %77 = vector.shape_cast %76 : vector<16x2xf32> to vector<2x8x2xf32>
    "tpu.trace_start"() <{level = 10 : i32, message = "bqd,bkd->bqk"}> : () -> ()
    %cst_26 = arith.constant dense<0.000000e+00> : vector<2x8x8xf32>
    %78 = tpu.matmul %73, %75, %cst_26 {dimension_numbers = #tpu.dot_dimension_numbers<[2], [2], [1], [1], [0, 0, 0, 1, 1, 1], [0], [0]>} : vector<2x8x2xf32>, vector<2x8x2xf32>, vector<2x8x8xf32> -> vector<2x8x8xf32>
    "tpu.trace_stop"() : () -> ()
    %cst_27 = arith.constant 0.707106769 : f32
    %79 = vector.broadcast %cst_27 : f32 to vector<2x8x8xf32>
    %80 = arith.mulf %78, %79 : vector<2x8x8xf32>
    %cst_28 = arith.constant dense<0xFF800000> : vector<2x8xf32>
    %81 = vector.multi_reduction <maximumf>, %80, %cst_28 [2] : vector<2x8x8xf32> to vector<2x8xf32>
    %82 = vector.shape_cast %81 : vector<2x8xf32> to vector<2x8x1xf32>
    %83 = vector.broadcast %82 : vector<2x8x1xf32> to vector<2x8x8xf32>
    %84 = arith.subf %80, %83 : vector<2x8x8xf32>
    %85 = math.exp %84 : vector<2x8x8xf32>
    %cst_29 = arith.constant dense<0.000000e+00> : vector<2x8xf32>
    %86 = vector.multi_reduction <add>, %85, %cst_29 [2] : vector<2x8x8xf32> to vector<2x8xf32>
    %87 = vector.shape_cast %86 : vector<2x8xf32> to vector<2x8x1xf32>
    %88 = tpu.reciprocal %87 : vector<2x8x1xf32> -> vector<2x8x1xf32>
    %89 = vector.broadcast %88 : vector<2x8x1xf32> to vector<2x8x8xf32>
    %90 = arith.mulf %85, %89 : vector<2x8x8xf32>
    "tpu.trace_start"() <{level = 10 : i32, message = "bqk,bkd->bqd"}> : () -> ()
    %cst_30 = arith.constant dense<0.000000e+00> : vector<2x8x2xf32>
    %91 = tpu.matmul %90, %77, %cst_30 {dimension_numbers = #tpu.dot_dimension_numbers<[2], [1], [1], [2], [0, 0, 0, 1, 1, 2], [0], [0]>} : vector<2x8x8xf32>, vector<2x8x2xf32>, vector<2x8x2xf32> -> vector<2x8x2xf32>
    "tpu.trace_stop"() : () -> ()
    %92 = tpu.concatenate %31, %51, %71, %91 in 2 : vector<2x8x2xf32>, vector<2x8x2xf32>, vector<2x8x2xf32>, vector<2x8x2xf32> -> vector<2x8x8xf32>
    %93 = vector.shape_cast %92 : vector<2x8x8xf32> to vector<16x8xf32>
    %c0_31 = arith.constant 0 : index
    %c0_32 = arith.constant 0 : index
    %94 = vector.load %arg6[%c0_31, %c0_32] : memref<8x8xf32, #tpu.memory_space<vmem>>, vector<8x8xf32>
    %cst_33 = arith.constant dense<0.000000e+00> : vector<16x8xf32>
    %95 = tpu.matmul %93, %94, %cst_33 {dimension_numbers = #tpu.dot_dimension_numbers<[1], [0], [0], [1], [0, 0, 1, 1], [], []>} : vector<16x8xf32>, vector<8x8xf32>, vector<16x8xf32> -> vector<16x8xf32>
    %c0_34 = arith.constant 0 : index
    %c0_35 = arith.constant 0 : index
    %96 = vector.load %arg7[%c0_34, %c0_35] : memref<1x8xf32, #tpu.memory_space<vmem>>, vector<1x8xf32>
    %97 = vector.broadcast %96 : vector<1x8xf32> to vector<16x8xf32>
    %98 = arith.addf %95, %97 : vector<16x8xf32>
    %99 = arith.addf %6, %98 : vector<16x8xf32>
    %cst_36 = arith.constant dense<0.000000e+00> : vector<16xf32>
    %100 = vector.multi_reduction <add>, %99, %cst_36 [1] : vector<16x8xf32> to vector<16xf32>
    %101 = vector.shape_cast %100 : vector<16xf32> to vector<16x1xf32>
    %cst_37 = arith.constant 8.000000e+00 : f32
    %102 = vector.broadcast %cst_37 : f32 to vector<16x1xf32>
    %103 = arith.divf %101, %102 : vector<16x1xf32>
    %104 = vector.broadcast %103 : vector<16x1xf32> to vector<16x8xf32>
    %105 = arith.subf %99, %104 : vector<16x8xf32>
    %106 = vector.broadcast %103 : vector<16x1xf32> to vector<16x8xf32>
    %107 = arith.subf %99, %106 : vector<16x8xf32>
    %108 = arith.mulf %105, %107 : vector<16x8xf32>
    %cst_38 = arith.constant dense<0.000000e+00> : vector<16xf32>
    %109 = vector.multi_reduction <add>, %108, %cst_38 [1] : vector<16x8xf32> to vector<16xf32>
    %110 = vector.shape_cast %109 : vector<16xf32> to vector<16x1xf32>
    %cst_39 = arith.constant 8.000000e+00 : f32
    %111 = vector.broadcast %cst_39 : f32 to vector<16x1xf32>
    %112 = arith.divf %110, %111 : vector<16x1xf32>
    %113 = vector.broadcast %103 : vector<16x1xf32> to vector<16x8xf32>
    %114 = arith.subf %99, %113 : vector<16x8xf32>
    %cst_40 = arith.constant 9.99999974E-6 : f32
    %115 = vector.broadcast %cst_40 : f32 to vector<16x1xf32>
    %116 = arith.addf %112, %115 : vector<16x1xf32>
    %117 = math.rsqrt %116 : vector<16x1xf32>
    %118 = vector.broadcast %117 : vector<16x1xf32> to vector<16x8xf32>
    %119 = arith.mulf %114, %118 : vector<16x8xf32>
    %c0_41 = arith.constant 0 : index
    %c0_42 = arith.constant 0 : index
    %120 = vector.load %arg8[%c0_41, %c0_42] : memref<1x8xf32, #tpu.memory_space<vmem>>, vector<1x8xf32>
    %121 = vector.broadcast %120 : vector<1x8xf32> to vector<16x8xf32>
    %122 = arith.mulf %119, %121 : vector<16x8xf32>
    %c0_43 = arith.constant 0 : index
    %c0_44 = arith.constant 0 : index
    %123 = vector.load %arg9[%c0_43, %c0_44] : memref<1x8xf32, #tpu.memory_space<vmem>>, vector<1x8xf32>
    %124 = vector.broadcast %123 : vector<1x8xf32> to vector<16x8xf32>
    %125 = arith.addf %122, %124 : vector<16x8xf32>
    %126 = vector.shape_cast %125 : vector<16x8xf32> to vector<2x8x8xf32>
    %cst_45 = arith.constant dense<0.000000e+00> : vector<2x8xf32>
    %127 = vector.multi_reduction <add>, %126, %cst_45 [1] : vector<2x8x8xf32> to vector<2x8xf32>
    %cst_46 = arith.constant 8.000000e+00 : f32
    %128 = vector.broadcast %cst_46 : f32 to vector<2x8xf32>
    %129 = arith.divf %127, %128 : vector<2x8xf32>
    %c0_47 = arith.constant 0 : index
    %c0_48 = arith.constant 0 : index
    %130 = vector.load %arg10[%c0_47, %c0_48] : memref<8x32xf32, #tpu.memory_space<vmem>>, vector<8x32xf32>
    %cst_49 = arith.constant dense<0.000000e+00> : vector<2x32xf32>
    %131 = tpu.matmul %129, %130, %cst_49 {dimension_numbers = #tpu.dot_dimension_numbers<[1], [0], [0], [1], [0, 0, 1, 1], [], []>} : vector<2x8xf32>, vector<8x32xf32>, vector<2x32xf32> -> vector<2x32xf32>
    %c0_50 = arith.constant 0 : index
    %c0_51 = arith.constant 0 : index
    %132 = vector.load %arg11[%c0_50, %c0_51] : memref<1x32xf32, #tpu.memory_space<vmem>>, vector<1x32xf32>
    %133 = vector.broadcast %132 : vector<1x32xf32> to vector<2x32xf32>
    %134 = arith.addf %131, %133 : vector<2x32xf32>
    %c0_52 = arith.constant 0 : index
    %c0_53 = arith.constant 0 : index
    %c0_54 = arith.constant 0 : index
    %135 = vector.load %arg12[%c0_52, %c0_53, %c0_54] : memref<2x8x32xf32, #tpu.memory_space<vmem>>, vector<1x8x32xf32>
    %136 = vector.shape_cast %135 : vector<1x8x32xf32> to vector<8x32xf32>
    %c0_55 = arith.constant 0 : index
    %c0_56 = arith.constant 0 : index
    %c0_57 = arith.constant 0 : index
    %137 = vector.load %arg13[%c0_55, %c0_56, %c0_57] : memref<2x8x32xf32, #tpu.memory_space<vmem>>, vector<1x8x32xf32>
    %138 = vector.shape_cast %137 : vector<1x8x32xf32> to vector<8x32xf32>
    %c0_58 = arith.constant 0 : index
    %c0_59 = arith.constant 0 : index
    %c0_60 = arith.constant 0 : index
    %139 = vector.load %arg14[%c0_58, %c0_59, %c0_60] : memref<2x8x32xf32, #tpu.memory_space<vmem>>, vector<1x8x32xf32>
    %140 = vector.shape_cast %139 : vector<1x8x32xf32> to vector<8x32xf32>
    %c0_61 = arith.constant 0 : index
    %c0_62 = arith.constant 0 : index
    %141 = vector.load %arg15[%c0_61, %c0_62] : memref<2x32xf32, #tpu.memory_space<vmem>>, vector<1x32xf32>
    %142 = vector.shape_cast %141 : vector<1x32xf32> to vector<32xf32>
    %143 = vector.shape_cast %142 : vector<32xf32> to vector<1x32xf32>
    %144 = vector.broadcast %143 : vector<1x32xf32> to vector<2x32xf32>
    %145 = vector.extract_strided_slice %140 {offsets = [0, 0], sizes = [1, 32], strides = [1, 1]} : vector<8x32xf32> to vector<1x32xf32>
    %146 = vector.shape_cast %145 : vector<1x32xf32> to vector<32xf32>
    %147 = vector.extract_strided_slice %136 {offsets = [0, 0], sizes = [1, 32], strides = [1, 1]} : vector<8x32xf32> to vector<1x32xf32>
    %148 = vector.shape_cast %147 : vector<1x32xf32> to vector<32xf32>
    %149 = vector.shape_cast %148 : vector<32xf32> to vector<1x32xf32>
    %150 = vector.broadcast %149 : vector<1x32xf32> to vector<2x32xf32>
    %151 = arith.mulf %150, %134 : vector<2x32xf32>
    %152 = vector.extract_strided_slice %138 {offsets = [0, 0], sizes = [1, 32], strides = [1, 1]} : vector<8x32xf32> to vector<1x32xf32>
    %153 = vector.shape_cast %152 : vector<1x32xf32> to vector<32xf32>
    %154 = vector.shape_cast %153 : vector<32xf32> to vector<1x32xf32>
    %155 = vector.broadcast %154 : vector<1x32xf32> to vector<2x32xf32>
    %156 = arith.addf %151, %155 : vector<2x32xf32>
    %157 = math.sin %156 : vector<2x32xf32>
    %158 = vector.shape_cast %146 : vector<32xf32> to vector<1x32xf32>
    %159 = vector.broadcast %158 : vector<1x32xf32> to vector<2x32xf32>
    %160 = arith.mulf %159, %157 : vector<2x32xf32>
    %161 = arith.addf %144, %160 : vector<2x32xf32>
    %162 = vector.extract_strided_slice %140 {offsets = [1, 0], sizes = [1, 32], strides = [1, 1]} : vector<8x32xf32> to vector<1x32xf32>
    %163 = vector.shape_cast %162 : vector<1x32xf32> to vector<32xf32>
    %164 = vector.extract_strided_slice %136 {offsets = [1, 0], sizes = [1, 32], strides = [1, 1]} : vector<8x32xf32> to vector<1x32xf32>
    %165 = vector.shape_cast %164 : vector<1x32xf32> to vector<32xf32>
    %166 = vector.shape_cast %165 : vector<32xf32> to vector<1x32xf32>
    %167 = vector.broadcast %166 : vector<1x32xf32> to vector<2x32xf32>
    %168 = arith.mulf %167, %134 : vector<2x32xf32>
    %169 = vector.extract_strided_slice %138 {offsets = [1, 0], sizes = [1, 32], strides = [1, 1]} : vector<8x32xf32> to vector<1x32xf32>
    %170 = vector.shape_cast %169 : vector<1x32xf32> to vector<32xf32>
    %171 = vector.shape_cast %170 : vector<32xf32> to vector<1x32xf32>
    %172 = vector.broadcast %171 : vector<1x32xf32> to vector<2x32xf32>
    %173 = arith.addf %168, %172 : vector<2x32xf32>
    %174 = math.sin %173 : vector<2x32xf32>
    %175 = vector.shape_cast %163 : vector<32xf32> to vector<1x32xf32>
    %176 = vector.broadcast %175 : vector<1x32xf32> to vector<2x32xf32>
    %177 = arith.mulf %176, %174 : vector<2x32xf32>
    %178 = arith.addf %161, %177 : vector<2x32xf32>
    %179 = vector.extract_strided_slice %140 {offsets = [2, 0], sizes = [1, 32], strides = [1, 1]} : vector<8x32xf32> to vector<1x32xf32>
    %180 = vector.shape_cast %179 : vector<1x32xf32> to vector<32xf32>
    %181 = vector.extract_strided_slice %136 {offsets = [2, 0], sizes = [1, 32], strides = [1, 1]} : vector<8x32xf32> to vector<1x32xf32>
    %182 = vector.shape_cast %181 : vector<1x32xf32> to vector<32xf32>
    %183 = vector.shape_cast %182 : vector<32xf32> to vector<1x32xf32>
    %184 = vector.broadcast %183 : vector<1x32xf32> to vector<2x32xf32>
    %185 = arith.mulf %184, %134 : vector<2x32xf32>
    %186 = vector.extract_strided_slice %138 {offsets = [2, 0], sizes = [1, 32], strides = [1, 1]} : vector<8x32xf32> to vector<1x32xf32>
    %187 = vector.shape_cast %186 : vector<1x32xf32> to vector<32xf32>
    %188 = vector.shape_cast %187 : vector<32xf32> to vector<1x32xf32>
    %189 = vector.broadcast %188 : vector<1x32xf32> to vector<2x32xf32>
    %190 = arith.addf %185, %189 : vector<2x32xf32>
    %191 = math.sin %190 : vector<2x32xf32>
    %192 = vector.shape_cast %180 : vector<32xf32> to vector<1x32xf32>
    %193 = vector.broadcast %192 : vector<1x32xf32> to vector<2x32xf32>
    %194 = arith.mulf %193, %191 : vector<2x32xf32>
    %195 = arith.addf %178, %194 : vector<2x32xf32>
    %196 = vector.extract_strided_slice %140 {offsets = [3, 0], sizes = [1, 32], strides = [1, 1]} : vector<8x32xf32> to vector<1x32xf32>
    %197 = vector.shape_cast %196 : vector<1x32xf32> to vector<32xf32>
    %198 = vector.extract_strided_slice %136 {offsets = [3, 0], sizes = [1, 32], strides = [1, 1]} : vector<8x32xf32> to vector<1x32xf32>
    %199 = vector.shape_cast %198 : vector<1x32xf32> to vector<32xf32>
    %200 = vector.shape_cast %199 : vector<32xf32> to vector<1x32xf32>
    %201 = vector.broadcast %200 : vector<1x32xf32> to vector<2x32xf32>
    %202 = arith.mulf %201, %134 : vector<2x32xf32>
    %203 = vector.extract_strided_slice %138 {offsets = [3, 0], sizes = [1, 32], strides = [1, 1]} : vector<8x32xf32> to vector<1x32xf32>
    %204 = vector.shape_cast %203 : vector<1x32xf32> to vector<32xf32>
    %205 = vector.shape_cast %204 : vector<32xf32> to vector<1x32xf32>
    %206 = vector.broadcast %205 : vector<1x32xf32> to vector<2x32xf32>
    %207 = arith.addf %202, %206 : vector<2x32xf32>
    %208 = math.sin %207 : vector<2x32xf32>
    %209 = vector.shape_cast %197 : vector<32xf32> to vector<1x32xf32>
    %210 = vector.broadcast %209 : vector<1x32xf32> to vector<2x32xf32>
    %211 = arith.mulf %210, %208 : vector<2x32xf32>
    %212 = arith.addf %195, %211 : vector<2x32xf32>
    %213 = vector.extract_strided_slice %140 {offsets = [4, 0], sizes = [1, 32], strides = [1, 1]} : vector<8x32xf32> to vector<1x32xf32>
    %214 = vector.shape_cast %213 : vector<1x32xf32> to vector<32xf32>
    %215 = vector.extract_strided_slice %136 {offsets = [4, 0], sizes = [1, 32], strides = [1, 1]} : vector<8x32xf32> to vector<1x32xf32>
    %216 = vector.shape_cast %215 : vector<1x32xf32> to vector<32xf32>
    %217 = vector.shape_cast %216 : vector<32xf32> to vector<1x32xf32>
    %218 = vector.broadcast %217 : vector<1x32xf32> to vector<2x32xf32>
    %219 = arith.mulf %218, %134 : vector<2x32xf32>
    %220 = vector.extract_strided_slice %138 {offsets = [4, 0], sizes = [1, 32], strides = [1, 1]} : vector<8x32xf32> to vector<1x32xf32>
    %221 = vector.shape_cast %220 : vector<1x32xf32> to vector<32xf32>
    %222 = vector.shape_cast %221 : vector<32xf32> to vector<1x32xf32>
    %223 = vector.broadcast %222 : vector<1x32xf32> to vector<2x32xf32>
    %224 = arith.addf %219, %223 : vector<2x32xf32>
    %225 = math.sin %224 : vector<2x32xf32>
    %226 = vector.shape_cast %214 : vector<32xf32> to vector<1x32xf32>
    %227 = vector.broadcast %226 : vector<1x32xf32> to vector<2x32xf32>
    %228 = arith.mulf %227, %225 : vector<2x32xf32>
    %229 = arith.addf %212, %228 : vector<2x32xf32>
    %230 = vector.extract_strided_slice %140 {offsets = [5, 0], sizes = [1, 32], strides = [1, 1]} : vector<8x32xf32> to vector<1x32xf32>
    %231 = vector.shape_cast %230 : vector<1x32xf32> to vector<32xf32>
    %232 = vector.extract_strided_slice %136 {offsets = [5, 0], sizes = [1, 32], strides = [1, 1]} : vector<8x32xf32> to vector<1x32xf32>
    %233 = vector.shape_cast %232 : vector<1x32xf32> to vector<32xf32>
    %234 = vector.shape_cast %233 : vector<32xf32> to vector<1x32xf32>
    %235 = vector.broadcast %234 : vector<1x32xf32> to vector<2x32xf32>
    %236 = arith.mulf %235, %134 : vector<2x32xf32>
    %237 = vector.extract_strided_slice %138 {offsets = [5, 0], sizes = [1, 32], strides = [1, 1]} : vector<8x32xf32> to vector<1x32xf32>
    %238 = vector.shape_cast %237 : vector<1x32xf32> to vector<32xf32>
    %239 = vector.shape_cast %238 : vector<32xf32> to vector<1x32xf32>
    %240 = vector.broadcast %239 : vector<1x32xf32> to vector<2x32xf32>
    %241 = arith.addf %236, %240 : vector<2x32xf32>
    %242 = math.sin %241 : vector<2x32xf32>
    %243 = vector.shape_cast %231 : vector<32xf32> to vector<1x32xf32>
    %244 = vector.broadcast %243 : vector<1x32xf32> to vector<2x32xf32>
    %245 = arith.mulf %244, %242 : vector<2x32xf32>
    %246 = arith.addf %229, %245 : vector<2x32xf32>
    %247 = vector.extract_strided_slice %140 {offsets = [6, 0], sizes = [1, 32], strides = [1, 1]} : vector<8x32xf32> to vector<1x32xf32>
    %248 = vector.shape_cast %247 : vector<1x32xf32> to vector<32xf32>
    %249 = vector.extract_strided_slice %136 {offsets = [6, 0], sizes = [1, 32], strides = [1, 1]} : vector<8x32xf32> to vector<1x32xf32>
    %250 = vector.shape_cast %249 : vector<1x32xf32> to vector<32xf32>
    %251 = vector.shape_cast %250 : vector<32xf32> to vector<1x32xf32>
    %252 = vector.broadcast %251 : vector<1x32xf32> to vector<2x32xf32>
    %253 = arith.mulf %252, %134 : vector<2x32xf32>
    %254 = vector.extract_strided_slice %138 {offsets = [6, 0], sizes = [1, 32], strides = [1, 1]} : vector<8x32xf32> to vector<1x32xf32>
    %255 = vector.shape_cast %254 : vector<1x32xf32> to vector<32xf32>
    %256 = vector.shape_cast %255 : vector<32xf32> to vector<1x32xf32>
    %257 = vector.broadcast %256 : vector<1x32xf32> to vector<2x32xf32>
    %258 = arith.addf %253, %257 : vector<2x32xf32>
    %259 = math.sin %258 : vector<2x32xf32>
    %260 = vector.shape_cast %248 : vector<32xf32> to vector<1x32xf32>
    %261 = vector.broadcast %260 : vector<1x32xf32> to vector<2x32xf32>
    %262 = arith.mulf %261, %259 : vector<2x32xf32>
    %263 = arith.addf %246, %262 : vector<2x32xf32>
    %264 = vector.extract_strided_slice %140 {offsets = [7, 0], sizes = [1, 32], strides = [1, 1]} : vector<8x32xf32> to vector<1x32xf32>
    %265 = vector.shape_cast %264 : vector<1x32xf32> to vector<32xf32>
    %266 = vector.extract_strided_slice %136 {offsets = [7, 0], sizes = [1, 32], strides = [1, 1]} : vector<8x32xf32> to vector<1x32xf32>
    %267 = vector.shape_cast %266 : vector<1x32xf32> to vector<32xf32>
    %268 = vector.shape_cast %267 : vector<32xf32> to vector<1x32xf32>
    %269 = vector.broadcast %268 : vector<1x32xf32> to vector<2x32xf32>
    %270 = arith.mulf %269, %134 : vector<2x32xf32>
    %271 = vector.extract_strided_slice %138 {offsets = [7, 0], sizes = [1, 32], strides = [1, 1]} : vector<8x32xf32> to vector<1x32xf32>
    %272 = vector.shape_cast %271 : vector<1x32xf32> to vector<32xf32>
    %273 = vector.shape_cast %272 : vector<32xf32> to vector<1x32xf32>
    %274 = vector.broadcast %273 : vector<1x32xf32> to vector<2x32xf32>
    %275 = arith.addf %270, %274 : vector<2x32xf32>
    %276 = math.sin %275 : vector<2x32xf32>
    %277 = vector.shape_cast %265 : vector<32xf32> to vector<1x32xf32>
    %278 = vector.broadcast %277 : vector<1x32xf32> to vector<2x32xf32>
    %279 = arith.mulf %278, %276 : vector<2x32xf32>
    %280 = arith.addf %263, %279 : vector<2x32xf32>
    %c1 = arith.constant 1 : index
    %c0_63 = arith.constant 0 : index
    %c0_64 = arith.constant 0 : index
    %281 = vector.load %arg12[%c1, %c0_63, %c0_64] : memref<2x8x32xf32, #tpu.memory_space<vmem>>, vector<1x8x32xf32>
    %282 = vector.shape_cast %281 : vector<1x8x32xf32> to vector<8x32xf32>
    %c1_65 = arith.constant 1 : index
    %c0_66 = arith.constant 0 : index
    %c0_67 = arith.constant 0 : index
    %283 = vector.load %arg13[%c1_65, %c0_66, %c0_67] : memref<2x8x32xf32, #tpu.memory_space<vmem>>, vector<1x8x32xf32>
    %284 = vector.shape_cast %283 : vector<1x8x32xf32> to vector<8x32xf32>
    %c1_68 = arith.constant 1 : index
    %c0_69 = arith.constant 0 : index
    %c0_70 = arith.constant 0 : index
    %285 = vector.load %arg14[%c1_68, %c0_69, %c0_70] : memref<2x8x32xf32, #tpu.memory_space<vmem>>, vector<1x8x32xf32>
    %286 = vector.shape_cast %285 : vector<1x8x32xf32> to vector<8x32xf32>
    %c1_71 = arith.constant 1 : index
    %c0_72 = arith.constant 0 : index
    %287 = vector.load %arg15[%c1_71, %c0_72] : memref<2x32xf32, #tpu.memory_space<vmem>>, vector<1x32xf32>
    %288 = vector.shape_cast %287 : vector<1x32xf32> to vector<32xf32>
    %289 = vector.shape_cast %288 : vector<32xf32> to vector<1x32xf32>
    %290 = vector.broadcast %289 : vector<1x32xf32> to vector<2x32xf32>
    %291 = vector.extract_strided_slice %286 {offsets = [0, 0], sizes = [1, 32], strides = [1, 1]} : vector<8x32xf32> to vector<1x32xf32>
    %292 = vector.shape_cast %291 : vector<1x32xf32> to vector<32xf32>
    %293 = vector.extract_strided_slice %282 {offsets = [0, 0], sizes = [1, 32], strides = [1, 1]} : vector<8x32xf32> to vector<1x32xf32>
    %294 = vector.shape_cast %293 : vector<1x32xf32> to vector<32xf32>
    %295 = vector.shape_cast %294 : vector<32xf32> to vector<1x32xf32>
    %296 = vector.broadcast %295 : vector<1x32xf32> to vector<2x32xf32>
    %297 = arith.mulf %296, %280 : vector<2x32xf32>
    %298 = vector.extract_strided_slice %284 {offsets = [0, 0], sizes = [1, 32], strides = [1, 1]} : vector<8x32xf32> to vector<1x32xf32>
    %299 = vector.shape_cast %298 : vector<1x32xf32> to vector<32xf32>
    %300 = vector.shape_cast %299 : vector<32xf32> to vector<1x32xf32>
    %301 = vector.broadcast %300 : vector<1x32xf32> to vector<2x32xf32>
    %302 = arith.addf %297, %301 : vector<2x32xf32>
    %303 = math.sin %302 : vector<2x32xf32>
    %304 = vector.shape_cast %292 : vector<32xf32> to vector<1x32xf32>
    %305 = vector.broadcast %304 : vector<1x32xf32> to vector<2x32xf32>
    %306 = arith.mulf %305, %303 : vector<2x32xf32>
    %307 = arith.addf %290, %306 : vector<2x32xf32>
    %308 = vector.extract_strided_slice %286 {offsets = [1, 0], sizes = [1, 32], strides = [1, 1]} : vector<8x32xf32> to vector<1x32xf32>
    %309 = vector.shape_cast %308 : vector<1x32xf32> to vector<32xf32>
    %310 = vector.extract_strided_slice %282 {offsets = [1, 0], sizes = [1, 32], strides = [1, 1]} : vector<8x32xf32> to vector<1x32xf32>
    %311 = vector.shape_cast %310 : vector<1x32xf32> to vector<32xf32>
    %312 = vector.shape_cast %311 : vector<32xf32> to vector<1x32xf32>
    %313 = vector.broadcast %312 : vector<1x32xf32> to vector<2x32xf32>
    %314 = arith.mulf %313, %280 : vector<2x32xf32>
    %315 = vector.extract_strided_slice %284 {offsets = [1, 0], sizes = [1, 32], strides = [1, 1]} : vector<8x32xf32> to vector<1x32xf32>
    %316 = vector.shape_cast %315 : vector<1x32xf32> to vector<32xf32>
    %317 = vector.shape_cast %316 : vector<32xf32> to vector<1x32xf32>
    %318 = vector.broadcast %317 : vector<1x32xf32> to vector<2x32xf32>
    %319 = arith.addf %314, %318 : vector<2x32xf32>
    %320 = math.sin %319 : vector<2x32xf32>
    %321 = vector.shape_cast %309 : vector<32xf32> to vector<1x32xf32>
    %322 = vector.broadcast %321 : vector<1x32xf32> to vector<2x32xf32>
    %323 = arith.mulf %322, %320 : vector<2x32xf32>
    %324 = arith.addf %307, %323 : vector<2x32xf32>
    %325 = vector.extract_strided_slice %286 {offsets = [2, 0], sizes = [1, 32], strides = [1, 1]} : vector<8x32xf32> to vector<1x32xf32>
    %326 = vector.shape_cast %325 : vector<1x32xf32> to vector<32xf32>
    %327 = vector.extract_strided_slice %282 {offsets = [2, 0], sizes = [1, 32], strides = [1, 1]} : vector<8x32xf32> to vector<1x32xf32>
    %328 = vector.shape_cast %327 : vector<1x32xf32> to vector<32xf32>
    %329 = vector.shape_cast %328 : vector<32xf32> to vector<1x32xf32>
    %330 = vector.broadcast %329 : vector<1x32xf32> to vector<2x32xf32>
    %331 = arith.mulf %330, %280 : vector<2x32xf32>
    %332 = vector.extract_strided_slice %284 {offsets = [2, 0], sizes = [1, 32], strides = [1, 1]} : vector<8x32xf32> to vector<1x32xf32>
    %333 = vector.shape_cast %332 : vector<1x32xf32> to vector<32xf32>
    %334 = vector.shape_cast %333 : vector<32xf32> to vector<1x32xf32>
    %335 = vector.broadcast %334 : vector<1x32xf32> to vector<2x32xf32>
    %336 = arith.addf %331, %335 : vector<2x32xf32>
    %337 = math.sin %336 : vector<2x32xf32>
    %338 = vector.shape_cast %326 : vector<32xf32> to vector<1x32xf32>
    %339 = vector.broadcast %338 : vector<1x32xf32> to vector<2x32xf32>
    %340 = arith.mulf %339, %337 : vector<2x32xf32>
    %341 = arith.addf %324, %340 : vector<2x32xf32>
    %342 = vector.extract_strided_slice %286 {offsets = [3, 0], sizes = [1, 32], strides = [1, 1]} : vector<8x32xf32> to vector<1x32xf32>
    %343 = vector.shape_cast %342 : vector<1x32xf32> to vector<32xf32>
    %344 = vector.extract_strided_slice %282 {offsets = [3, 0], sizes = [1, 32], strides = [1, 1]} : vector<8x32xf32> to vector<1x32xf32>
    %345 = vector.shape_cast %344 : vector<1x32xf32> to vector<32xf32>
    %346 = vector.shape_cast %345 : vector<32xf32> to vector<1x32xf32>
    %347 = vector.broadcast %346 : vector<1x32xf32> to vector<2x32xf32>
    %348 = arith.mulf %347, %280 : vector<2x32xf32>
    %349 = vector.extract_strided_slice %284 {offsets = [3, 0], sizes = [1, 32], strides = [1, 1]} : vector<8x32xf32> to vector<1x32xf32>
    %350 = vector.shape_cast %349 : vector<1x32xf32> to vector<32xf32>
    %351 = vector.shape_cast %350 : vector<32xf32> to vector<1x32xf32>
    %352 = vector.broadcast %351 : vector<1x32xf32> to vector<2x32xf32>
    %353 = arith.addf %348, %352 : vector<2x32xf32>
    %354 = math.sin %353 : vector<2x32xf32>
    %355 = vector.shape_cast %343 : vector<32xf32> to vector<1x32xf32>
    %356 = vector.broadcast %355 : vector<1x32xf32> to vector<2x32xf32>
    %357 = arith.mulf %356, %354 : vector<2x32xf32>
    %358 = arith.addf %341, %357 : vector<2x32xf32>
    %359 = vector.extract_strided_slice %286 {offsets = [4, 0], sizes = [1, 32], strides = [1, 1]} : vector<8x32xf32> to vector<1x32xf32>
    %360 = vector.shape_cast %359 : vector<1x32xf32> to vector<32xf32>
    %361 = vector.extract_strided_slice %282 {offsets = [4, 0], sizes = [1, 32], strides = [1, 1]} : vector<8x32xf32> to vector<1x32xf32>
    %362 = vector.shape_cast %361 : vector<1x32xf32> to vector<32xf32>
    %363 = vector.shape_cast %362 : vector<32xf32> to vector<1x32xf32>
    %364 = vector.broadcast %363 : vector<1x32xf32> to vector<2x32xf32>
    %365 = arith.mulf %364, %280 : vector<2x32xf32>
    %366 = vector.extract_strided_slice %284 {offsets = [4, 0], sizes = [1, 32], strides = [1, 1]} : vector<8x32xf32> to vector<1x32xf32>
    %367 = vector.shape_cast %366 : vector<1x32xf32> to vector<32xf32>
    %368 = vector.shape_cast %367 : vector<32xf32> to vector<1x32xf32>
    %369 = vector.broadcast %368 : vector<1x32xf32> to vector<2x32xf32>
    %370 = arith.addf %365, %369 : vector<2x32xf32>
    %371 = math.sin %370 : vector<2x32xf32>
    %372 = vector.shape_cast %360 : vector<32xf32> to vector<1x32xf32>
    %373 = vector.broadcast %372 : vector<1x32xf32> to vector<2x32xf32>
    %374 = arith.mulf %373, %371 : vector<2x32xf32>
    %375 = arith.addf %358, %374 : vector<2x32xf32>
    %376 = vector.extract_strided_slice %286 {offsets = [5, 0], sizes = [1, 32], strides = [1, 1]} : vector<8x32xf32> to vector<1x32xf32>
    %377 = vector.shape_cast %376 : vector<1x32xf32> to vector<32xf32>
    %378 = vector.extract_strided_slice %282 {offsets = [5, 0], sizes = [1, 32], strides = [1, 1]} : vector<8x32xf32> to vector<1x32xf32>
    %379 = vector.shape_cast %378 : vector<1x32xf32> to vector<32xf32>
    %380 = vector.shape_cast %379 : vector<32xf32> to vector<1x32xf32>
    %381 = vector.broadcast %380 : vector<1x32xf32> to vector<2x32xf32>
    %382 = arith.mulf %381, %280 : vector<2x32xf32>
    %383 = vector.extract_strided_slice %284 {offsets = [5, 0], sizes = [1, 32], strides = [1, 1]} : vector<8x32xf32> to vector<1x32xf32>
    %384 = vector.shape_cast %383 : vector<1x32xf32> to vector<32xf32>
    %385 = vector.shape_cast %384 : vector<32xf32> to vector<1x32xf32>
    %386 = vector.broadcast %385 : vector<1x32xf32> to vector<2x32xf32>
    %387 = arith.addf %382, %386 : vector<2x32xf32>
    %388 = math.sin %387 : vector<2x32xf32>
    %389 = vector.shape_cast %377 : vector<32xf32> to vector<1x32xf32>
    %390 = vector.broadcast %389 : vector<1x32xf32> to vector<2x32xf32>
    %391 = arith.mulf %390, %388 : vector<2x32xf32>
    %392 = arith.addf %375, %391 : vector<2x32xf32>
    %393 = vector.extract_strided_slice %286 {offsets = [6, 0], sizes = [1, 32], strides = [1, 1]} : vector<8x32xf32> to vector<1x32xf32>
    %394 = vector.shape_cast %393 : vector<1x32xf32> to vector<32xf32>
    %395 = vector.extract_strided_slice %282 {offsets = [6, 0], sizes = [1, 32], strides = [1, 1]} : vector<8x32xf32> to vector<1x32xf32>
    %396 = vector.shape_cast %395 : vector<1x32xf32> to vector<32xf32>
    %397 = vector.shape_cast %396 : vector<32xf32> to vector<1x32xf32>
    %398 = vector.broadcast %397 : vector<1x32xf32> to vector<2x32xf32>
    %399 = arith.mulf %398, %280 : vector<2x32xf32>
    %400 = vector.extract_strided_slice %284 {offsets = [6, 0], sizes = [1, 32], strides = [1, 1]} : vector<8x32xf32> to vector<1x32xf32>
    %401 = vector.shape_cast %400 : vector<1x32xf32> to vector<32xf32>
    %402 = vector.shape_cast %401 : vector<32xf32> to vector<1x32xf32>
    %403 = vector.broadcast %402 : vector<1x32xf32> to vector<2x32xf32>
    %404 = arith.addf %399, %403 : vector<2x32xf32>
    %405 = math.sin %404 : vector<2x32xf32>
    %406 = vector.shape_cast %394 : vector<32xf32> to vector<1x32xf32>
    %407 = vector.broadcast %406 : vector<1x32xf32> to vector<2x32xf32>
    %408 = arith.mulf %407, %405 : vector<2x32xf32>
    %409 = arith.addf %392, %408 : vector<2x32xf32>
    %410 = vector.extract_strided_slice %286 {offsets = [7, 0], sizes = [1, 32], strides = [1, 1]} : vector<8x32xf32> to vector<1x32xf32>
    %411 = vector.shape_cast %410 : vector<1x32xf32> to vector<32xf32>
    %412 = vector.extract_strided_slice %282 {offsets = [7, 0], sizes = [1, 32], strides = [1, 1]} : vector<8x32xf32> to vector<1x32xf32>
    %413 = vector.shape_cast %412 : vector<1x32xf32> to vector<32xf32>
    %414 = vector.shape_cast %413 : vector<32xf32> to vector<1x32xf32>
    %415 = vector.broadcast %414 : vector<1x32xf32> to vector<2x32xf32>
    %416 = arith.mulf %415, %280 : vector<2x32xf32>
    %417 = vector.extract_strided_slice %284 {offsets = [7, 0], sizes = [1, 32], strides = [1, 1]} : vector<8x32xf32> to vector<1x32xf32>
    %418 = vector.shape_cast %417 : vector<1x32xf32> to vector<32xf32>
    %419 = vector.shape_cast %418 : vector<32xf32> to vector<1x32xf32>
    %420 = vector.broadcast %419 : vector<1x32xf32> to vector<2x32xf32>
    %421 = arith.addf %416, %420 : vector<2x32xf32>
    %422 = math.sin %421 : vector<2x32xf32>
    %423 = vector.shape_cast %411 : vector<32xf32> to vector<1x32xf32>
    %424 = vector.broadcast %423 : vector<1x32xf32> to vector<2x32xf32>
    %425 = arith.mulf %424, %422 : vector<2x32xf32>
    %426 = arith.addf %409, %425 : vector<2x32xf32>
    %c0_73 = arith.constant 0 : index
    %c0_74 = arith.constant 0 : index
    %427 = vector.load %arg16[%c0_73, %c0_74] : memref<32x128xf32, #tpu.memory_space<vmem>>, vector<32x128xf32>
    %cst_75 = arith.constant dense<0.000000e+00> : vector<2x128xf32>
    %428 = tpu.matmul %426, %427, %cst_75 {dimension_numbers = #tpu.dot_dimension_numbers<[1], [0], [0], [1], [0, 0, 1, 1], [], []>} : vector<2x32xf32>, vector<32x128xf32>, vector<2x128xf32> -> vector<2x128xf32>
    %c0_76 = arith.constant 0 : index
    %c0_77 = arith.constant 0 : index
    %429 = vector.load %arg17[%c0_76, %c0_77] : memref<1x128xf32, #tpu.memory_space<vmem>>, vector<1x128xf32>
    %430 = vector.broadcast %429 : vector<1x128xf32> to vector<2x128xf32>
    %431 = arith.addf %428, %430 : vector<2x128xf32>
    %c0_78 = arith.constant 0 : index
    %c0_79 = arith.constant 0 : index
    %432 = vector.load %arg18[%c0_78, %c0_79] : memref<2x128xf32, #tpu.memory_space<vmem>>, vector<2x128xf32>
    tpu.vector_store %arg18[%c0_78, %c0_79], %431 {strides = array<i32>} : memref<2x128xf32, #tpu.memory_space<vmem>>, vector<2x128xf32>,
    return
  }
  func.func @transform_0(%arg0: i32) -> (i32, i32, i32) {
    %c0_i32 = arith.constant 0 : i32
    %c0_i32_0 = arith.constant 0 : i32
    %c0_i32_1 = arith.constant 0 : i32
    return %arg0, %c0_i32, %c0_i32_0 : i32, i32, i32
  }
  func.func @transform_1(%arg0: i32) -> (i32, i32) {
    %c0_i32 = arith.constant 0 : i32
    %c0_i32_0 = arith.constant 0 : i32
    %c0_i32_1 = arith.constant 0 : i32
    return %c0_i32, %c0_i32_0 : i32, i32
  }
  func.func @transform_2(%arg0: i32) -> (i32, i32) {
    %c0_i32 = arith.constant 0 : i32
    %c0_i32_0 = arith.constant 0 : i32
    %c0_i32_1 = arith.constant 0 : i32
    return %c0_i32, %c0_i32_0 : i32, i32
  }
  func.func @transform_3(%arg0: i32) -> (i32, i32) {
    %c0_i32 = arith.constant 0 : i32
    %c0_i32_0 = arith.constant 0 : i32
    %c0_i32_1 = arith.constant 0 : i32
    return %c0_i32, %c0_i32_0 : i32, i32
  }
  func.func @transform_4(%arg0: i32) -> (i32, i32) {
    %c0_i32 = arith.constant 0 : i32
    %c0_i32_0 = arith.constant 0 : i32
    %c0_i32_1 = arith.constant 0 : i32
    return %c0_i32, %c0_i32_0 : i32, i32
  }
  func.func @transform_5(%arg0: i32) -> (i32, i32) {
    %c0_i32 = arith.constant 0 : i32
    %c0_i32_0 = arith.constant 0 : i32
    %c0_i32_1 = arith.constant 0 : i32
    return %c0_i32, %c0_i32_0 : i32, i32
  }
  func.func @transform_6(%arg0: i32) -> (i32, i32) {
    %c0_i32 = arith.constant 0 : i32
    %c0_i32_0 = arith.constant 0 : i32
    %c0_i32_1 = arith.constant 0 : i32
    return %c0_i32, %c0_i32_0 : i32, i32
  }
  func.func @transform_7(%arg0: i32) -> (i32, i32) {
    %c0_i32 = arith.constant 0 : i32
    %c0_i32_0 = arith.constant 0 : i32
    %c0_i32_1 = arith.constant 0 : i32
    return %c0_i32, %c0_i32_0 : i32, i32
  }
  func.func @transform_8(%arg0: i32) -> (i32, i32) {
    %c0_i32 = arith.constant 0 : i32
    %c0_i32_0 = arith.constant 0 : i32
    %c0_i32_1 = arith.constant 0 : i32
    return %c0_i32, %c0_i32_0 : i32, i32
  }
  func.func @transform_9(%arg0: i32) -> (i32, i32) {
    %c0_i32 = arith.constant 0 : i32
    %c0_i32_0 = arith.constant 0 : i32
    %c0_i32_1 = arith.constant 0 : i32
    return %c0_i32, %c0_i32_0 : i32, i32
  }
  func.func @transform_10(%arg0: i32) -> (i32, i32) {
    %c0_i32 = arith.constant 0 : i32
    %c0_i32_0 = arith.constant 0 : i32
    %c0_i32_1 = arith.constant 0 : i32
    return %c0_i32, %c0_i32_0 : i32, i32
  }
  func.func @transform_11(%arg0: i32) -> (i32, i32, i32) {
    %c0_i32 = arith.constant 0 : i32
    %c0_i32_0 = arith.constant 0 : i32
    %c0_i32_1 = arith.constant 0 : i32
    %c0_i32_2 = arith.constant 0 : i32
    return %c0_i32, %c0_i32_0, %c0_i32_1 : i32, i32, i32
  }
  func.func @transform_12(%arg0: i32) -> (i32, i32, i32) {
    %c0_i32 = arith.constant 0 : i32
    %c0_i32_0 = arith.constant 0 : i32
    %c0_i32_1 = arith.constant 0 : i32
    %c0_i32_2 = arith.constant 0 : i32
    return %c0_i32, %c0_i32_0, %c0_i32_1 : i32, i32, i32
  }
  func.func @transform_13(%arg0: i32) -> (i32, i32, i32) {
    %c0_i32 = arith.constant 0 : i32
    %c0_i32_0 = arith.constant 0 : i32
    %c0_i32_1 = arith.constant 0 : i32
    %c0_i32_2 = arith.constant 0 : i32
    return %c0_i32, %c0_i32_0, %c0_i32_1 : i32, i32, i32
  }
  func.func @transform_14(%arg0: i32) -> (i32, i32) {
    %c0_i32 = arith.constant 0 : i32
    %c0_i32_0 = arith.constant 0 : i32
    %c0_i32_1 = arith.constant 0 : i32
    return %c0_i32, %c0_i32_0 : i32, i32
  }
  func.func @transform_15(%arg0: i32) -> (i32, i32) {
    %c0_i32 = arith.constant 0 : i32
    %c0_i32_0 = arith.constant 0 : i32
    %c0_i32_1 = arith.constant 0 : i32
    return %c0_i32, %c0_i32_0 : i32, i32
  }
  func.func @transform_16(%arg0: i32) -> (i32, i32) {
    %c0_i32 = arith.constant 0 : i32
    %c0_i32_0 = arith.constant 0 : i32
    %c0_i32_1 = arith.constant 0 : i32
    return %c0_i32, %c0_i32_0 : i32, i32
  }
  func.func @transform_17(%arg0: i32) -> (i32, i32) {
    %c0_i32 = arith.constant 0 : i32
    %c0_i32_0 = arith.constant 0 : i32
    return %arg0, %c0_i32 : i32, i32
  }
}

</mosaic_0001>

<bundles_post_ra>
// kernel: tpu_custom_call.1
= control target key start
LH: loop header
LB: loop body
LE: loop exit
PB: predicated region body
PF: predicated region fallthrough
CT: control target
= control target key end

     0   :  { %s6899_s0 = inlined_call_operand.hbm [shape: f32[2,8,8], index: 0, kind: input, shape index: {}]   ;;  %s6900_s1 = inlined_call_operand.hbm [shape: f32[8,8], index: 1, kind: input, shape index: {}]   ;;  %s6901_s2 = inlined_call_operand.hbm [shape: f32[1,8], index: 2, kind: input, shape index: {}]   ;;  %s6902_s3 = inlined_call_operand.vmem [shape: f32[8,24], index: 3, kind: input, shape index: {}]   ;;  %s6903_s4 = inlined_call_operand.hbm [shape: f32[1,24], index: 4, kind: input, shape index: {}]   ;;  %s6904_s5 = inlined_call_operand.hbm [shape: f32[8,8], index: 5, kind: input, shape index: {}]   ;;  %s6905_s6 = inlined_call_operand.hbm [shape: f32[1,8], index: 6, kind: input, shape index: {}]   ;;  %s6906_s7 = inlined_call_operand.hbm [shape: f32[1,8], index: 7, kind: input, shape index: {}]   ;;  %s6907_s8 = inlined_call_operand.hbm [shape: f32[1,8], index: 8, kind: input, shape index: {}]   ;;  %s6908_s9 = inlined_call_operand.hbm [shape: f32[8,32], index: 9, kind: input, shape index: {}]   ;;  %s6909_s10 = inlined_call_operand.hbm [shape: f32[1,32], index: 10, kind: input, shape index: {}]   ;;  %s6910_s11 = inlined_call_operand.vmem [shape: f32[2,8,32], index: 11, kind: input, shape index: {}]   ;;  %s6911_s12 = inlined_call_operand.hbm [shape: f32[2,8,32], index: 12, kind: input, shape index: {}]   ;;  %s6912_s13 = inlined_call_operand.hbm [shape: f32[2,8,32], index: 13, kind: input, shape index: {}]   ;;  %s6913_s14 = inlined_call_operand.hbm [shape: f32[2,32], index: 14, kind: input, shape index: {}]   ;;  %s6914_s15 = inlined_call_operand.vmem [shape: f32[32,128], index: 15, kind: input, shape index: {}]   ;;  %s6915_s16 = inlined_call_operand.vmem [shape: f32[1,128], index: 16, kind: input, shape index: {}]   ;;  %s6916_s17 = inlined_call_operand.hbm [shape: f32[2,128], index: 17, kind: output, shape index: {}]  }
   0x1   :  { %6962 = sst [smem:[#allocation38_spill]] %s6899_s0 }
   0x2   :  { %6963 = sst [smem:[#allocation39_spill]] %s6900_s1 }
   0x3   :  { %22 = vsyncpa [#allocation3], 0 }
   0x4   :  { %23 = vsyncpa [#allocation6], 0 }
   0x5   :  { %24 = vsyncpa [#allocation9], 0 }
   0x6   :  { %25 = vsyncpa [#allocation12], 0 }
   0x7   :  { %26 = vsyncpa [#allocation15], 0 }
   0x8   :  { %27 = vsyncpa [#allocation18], 0 }
   0x9   :  { %28 = vsyncpa [#allocation21], 0 }
   0xa   :  { %29 = vsyncpa [#allocation4], 0  ;;  %s4836_s24 = smov [#allocation5]   ;;  %s4837_s26 = smov [#allocation8]  }
   0xb   :  { %s48_s25 = sshll.u32 %s4836_s24, 4  ;;  %s70_s27 = sshll.u32 %s4837_s26, 4  ;;  %s49_s25 = int_to_ptr.vmem [resolvable:$true] %s48_s25  ;;  %s71_s27 = int_to_ptr.vmem [resolvable:$true] %s70_s27 }
   0xc   :  { %s6964_s0 = sld [smem:[#allocation39_spill]] }
  0x12   :  { %s4512_s30 = scalar_lea.hbm %s6964_s0, 128 }
  0x13   :  { %p4513_p0 = scmp.ne.s32.totalorder %s6964_s0, %s4512_s30  ;;  %p4516_p1 = scmp.lt.u32.totalorder %s4512_s30, %s6964_s0 }
  0x15   :  { %p4518_p2 = pnand %p4516_p1, %p4513_p0 }
  0x17   :  { %4521 = shalt.err (!%p4518_p2)
}
  0x18   :  { %s4522_s21 = scalar_lea.vmem %s49_s25, 128  ;;  %p4527_p4 = scmp.lt.s32.totalorder %s49_s25, %s49_s25 }
  0x19   :  { %p4523_p3 = scmp.ne.s32.totalorder %s49_s25, %s4522_s21  ;;  %p4528_p5 = scmp.lt.s32.totalorder %s4522_s21, %s4522_s21 }
  0x1b   :  { %p4529_p6 = por %p4528_p5, %p4527_p4 }
  0x1d   :  { %p4530_p7 = pnand %p4529_p6, %p4523_p3 }
  0x1f   :  { %4533 = shalt.err (!%p4530_p7)
}
  0x20   :  { %51 = dma.hbm_to_vmem [thread:$0]  %s6964_s0, 128, %s49_s25, [#allocation6]  }
  0x21   :  { %s4534_s28 = scalar_lea.hbm %s6903_s4, 16 }
  0x22   :  { %p4535_p8 = scmp.ne.s32.totalorder %s6903_s4, %s4534_s28  ;;  %p4538_p9 = scmp.lt.u32.totalorder %s4534_s28, %s6903_s4 }
  0x24   :  { %p4540_p10 = pnand %p4538_p9, %p4535_p8 }
  0x26   :  { %4543 = shalt.err (!%p4540_p10)
}
  0x27   :  { %s4544_s1 = scalar_lea.vmem %s71_s27, 16  ;;  %s4548_s20 = scalar_lea.vmem %s71_s27, 32 }
  0x28   :  { %p4545_p11 = scmp.ne.s32.totalorder %s71_s27, %s4544_s1  ;;  %p4549_p12 = scmp.lt.s32.totalorder %s71_s27, %s71_s27 }
  0x29   :  { %p4550_p13 = scmp.lt.s32.totalorder %s4548_s20, %s4544_s1 }
  0x2b   :  { %p4551_p0 = por %p4550_p13, %p4549_p12 }
  0x2d   :  { %p4552_p1 = pnand %p4551_p0, %p4545_p11 }
  0x2f   :  { %4555 = shalt.err (!%p4552_p1)
}
  0x30   :  { %73 = dma.hbm_to_vmem [thread:$0]  %s6903_s4, 16, %s71_s27, [#allocation9]  }
  0x31   :  { %s4838_s21 = smov [#allocation11]   ;;  %s4839_s23 = smov [#allocation14]  }
  0x32   :  { %s90_s22 = sshll.u32 %s4838_s21, 4  ;;  %s110_s24 = sshll.u32 %s4839_s23, 4  ;;  %s91_s22 = int_to_ptr.vmem [resolvable:$true] %s90_s22  ;;  %s111_s24 = int_to_ptr.vmem [resolvable:$true] %s110_s24 }
  0x33   :  { %s4556_s29 = scalar_lea.hbm %s6905_s6, 16 }
  0x34   :  { %p4557_p2 = scmp.ne.s32.totalorder %s6905_s6, %s4556_s29  ;;  %p4560_p3 = scmp.lt.u32.totalorder %s4556_s29, %s6905_s6 }
  0x36   :  { %p4562_p4 = pnand %p4560_p3, %p4557_p2 }
  0x38   :  { %4565 = shalt.err (!%p4562_p4)
}
  0x39   :  { %s4566_s4 = scalar_lea.vmem %s91_s22, 16  ;;  %s4570_s27 = scalar_lea.vmem %s91_s22, 32 }
  0x3a   :  { %p4567_p5 = scmp.ne.s32.totalorder %s91_s22, %s4566_s4  ;;  %p4571_p6 = scmp.lt.s32.totalorder %s91_s22, %s91_s22 }
  0x3b   :  { %p4572_p7 = scmp.lt.s32.totalorder %s4570_s27, %s4566_s4 }
  0x3d   :  { %p4573_p8 = por %p4572_p7, %p4571_p6 }
  0x3f   :  { %p4574_p9 = pnand %p4573_p8, %p4567_p5 }
  0x41   :  { %4577 = shalt.err (!%p4574_p9)
}
  0x42   :  { %93 = dma.hbm_to_vmem [thread:$0]  %s6905_s6, 16, %s91_s22, [#allocation12]  }
  0x43   :  { %s4578_s23 = scalar_lea.hbm %s6907_s8, 16 }
  0x44   :  { %p4579_p10 = scmp.ne.s32.totalorder %s6907_s8, %s4578_s23  ;;  %p4582_p11 = scmp.lt.u32.totalorder %s4578_s23, %s6907_s8 }
  0x46   :  { %p4584_p12 = pnand %p4582_p11, %p4579_p10 }
  0x48   :  { %4587 = shalt.err (!%p4584_p12)
}
  0x49   :  { %s4588_s30 = scalar_lea.vmem %s111_s24, 16  ;;  %s4592_s19 = scalar_lea.vmem %s111_s24, 32 }
  0x4a   :  { %p4589_p13 = scmp.ne.s32.totalorder %s111_s24, %s4588_s30  ;;  %p4593_p0 = scmp.lt.s32.totalorder %s111_s24, %s111_s24 }
  0x4b   :  { %p4594_p1 = scmp.lt.s32.totalorder %s4592_s19, %s4588_s30 }
  0x4d   :  { %p4595_p2 = por %p4594_p1, %p4593_p0 }
  0x4f   :  { %p4596_p3 = pnand %p4595_p2, %p4589_p13 }
  0x51   :  { %4599 = shalt.err (!%p4596_p3)
}
  0x52   :  { %113 = dma.hbm_to_vmem [thread:$0]  %s6907_s8, 16, %s111_s24, [#allocation15]  }
  0x53   :  { %s4840_s1 = smov [#allocation17]   ;;  %s4600_s25 = scalar_lea.hbm %s6909_s10, 16 }
  0x54   :  { %s130_s4 = sshll.u32 %s4840_s1, 4  ;;  %p4601_p4 = scmp.ne.s32.totalorder %s6909_s10, %s4600_s25  ;;  %s131_s4 = int_to_ptr.vmem [resolvable:$true] %s130_s4 }
  0x55   :  { %p4604_p5 = scmp.lt.u32.totalorder %s4600_s25, %s6909_s10 }
  0x57   :  { %p4606_p6 = pnand %p4604_p5, %p4601_p4 }
  0x59   :  { %4609 = shalt.err (!%p4606_p6)
}
  0x5a   :  { %s4610_s28 = scalar_lea.vmem %s131_s4, 16  ;;  %s4614_s8 = scalar_lea.vmem %s131_s4, 32 }
  0x5b   :  { %p4611_p7 = scmp.ne.s32.totalorder %s131_s4, %s4610_s28  ;;  %p4615_p8 = scmp.lt.s32.totalorder %s131_s4, %s131_s4 }
  0x5c   :  { %p4616_p9 = scmp.lt.s32.totalorder %s4614_s8, %s4610_s28 }
  0x5e   :  { %p4617_p10 = por %p4616_p9, %p4615_p8 }
  0x60   :  { %p4618_p11 = pnand %p4617_p10, %p4611_p7 }
  0x62   :  { %4621 = shalt.err (!%p4618_p11)
}
  0x63   :  { %133 = dma.hbm_to_vmem [thread:$0]  %s6909_s10, 16, %s131_s4, [#allocation18]  }
  0x64   :  { %s4841_s18 = smov [#allocation20]   ;;  %s4842_s19 = smov [#allocation2]  }
  0x65   :  { %s153_s30 = sshll.u32 %s4841_s18, 4  ;;  %s35_s6 = sshll.u32 %s4842_s19, 4  ;;  %s154_s30 = int_to_ptr.vmem [resolvable:$true] %s153_s30  ;;  %s36_s6 = int_to_ptr.vmem [resolvable:$true] %s35_s6 }
  0x66   :  { %s4622_s27 = scalar_lea.hbm %s6912_s13, 256 }
  0x67   :  { %p4623_p12 = scmp.ne.s32.totalorder %s6912_s13, %s4622_s27  ;;  %p4626_p13 = scmp.lt.u32.totalorder %s4622_s27, %s6912_s13 }
  0x69   :  { %p4628_p0 = pnand %p4626_p13, %p4623_p12 }
  0x6b   :  { %4631 = shalt.err (!%p4628_p0)
}
  0x6c   :  { %s4632_s10 = scalar_lea.vmem %s154_s30, 256  ;;  %p4637_p2 = scmp.lt.s32.totalorder %s154_s30, %s154_s30 }
  0x6d   :  { %p4633_p1 = scmp.ne.s32.totalorder %s154_s30, %s4632_s10  ;;  %p4638_p3 = scmp.lt.s32.totalorder %s4632_s10, %s4632_s10 }
  0x6f   :  { %p4639_p4 = por %p4638_p3, %p4637_p2 }
  0x71   :  { %p4640_p5 = pnand %p4639_p4, %p4633_p1 }
  0x73   :  { %4643 = shalt.err (!%p4640_p5)
}
  0x74   :  { %s4843_s4 = smov 128   ;;  %s4844_s23 = smov 8  }
  0x75   :  { %159 = dma.hbm_to_vmem [thread:$0]  %s6912_s13, 256, %s154_s30, [#allocation21], %s4843_s4, %s4843_s4, %s4844_s23  }
  0x76   :  { %s6965_s29 = sld [smem:[#allocation38_spill]] }
  0x7c   :  { %s4644_s18 = scalar_lea.hbm %s6965_s29, 256 }
  0x7d   :  { %p4645_p6 = scmp.ne.s32.totalorder %s6965_s29, %s4644_s18  ;;  %p4648_p7 = scmp.lt.u32.totalorder %s4644_s18, %s6965_s29 }
  0x7f   :  { %p4650_p8 = pnand %p4648_p7, %p4645_p6 }
  0x81   :  { %4653 = shalt.err (!%p4650_p8)
}
  0x82   :  { %s4654_s20 = scalar_lea.vmem %s36_s6, 256  ;;  %p4659_p10 = scmp.lt.s32.totalorder %s36_s6, %s36_s6 }
  0x83   :  { %p4655_p9 = scmp.ne.s32.totalorder %s36_s6, %s4654_s20  ;;  %p4660_p11 = scmp.lt.s32.totalorder %s4654_s20, %s4654_s20 }
  0x85   :  { %p4661_p12 = por %p4660_p11, %p4659_p10 }
  0x87   :  { %p4662_p13 = pnand %p4661_p12, %p4655_p9 }
  0x89   :  { %4665 = shalt.err (!%p4662_p13)
}
  0x8a   :  { %41 = dma.hbm_to_vmem [thread:$0]  %s6965_s29, 256, %s36_s6, [#allocation3], %s4843_s4, %s4843_s4, %s4844_s23  }
  0x8b   :  { %s4845_s25 = smov [#allocation7]   ;;  %s4846_s21 = smov [#allocation10]  }
  0x8c   :  { %s58_s0 = sshll.u32 %s4845_s25, 4  ;;  %s80_s10 = sshll.u32 %s4846_s21, 4  ;;  %s59_s0 = int_to_ptr.vmem [resolvable:$true] %s58_s0  ;;  %s81_s10 = int_to_ptr.vmem [resolvable:$true] %s80_s10 }
  0x8d   :  { %s4666_s8 = scalar_lea.hbm %s6901_s2, 16 }
  0x8e   :  { %p4667_p0 = scmp.ne.s32.totalorder %s6901_s2, %s4666_s8  ;;  %p4670_p1 = scmp.lt.u32.totalorder %s4666_s8, %s6901_s2 }
  0x90   :  { %p4672_p2 = pnand %p4670_p1, %p4667_p0 }
  0x92   :  { %4675 = shalt.err (!%p4672_p2)
}
  0x93   :  { %s4676_s6 = scalar_lea.vmem %s59_s0, 16  ;;  %s4680_s29 = scalar_lea.vmem %s59_s0, 32 }
  0x94   :  { %p4677_p3 = scmp.ne.s32.totalorder %s59_s0, %s4676_s6  ;;  %p4681_p4 = scmp.lt.s32.totalorder %s59_s0, %s59_s0 }
  0x95   :  { %p4682_p5 = scmp.lt.s32.totalorder %s4680_s29, %s4676_s6 }
  0x97   :  { %p4683_p6 = por %p4682_p5, %p4681_p4 }
  0x99   :  { %p4684_p7 = pnand %p4683_p6, %p4677_p3 }
  0x9b   :  { %4687 = shalt.err (!%p4684_p7)
}
  0x9c   :  { %61 = dma.hbm_to_vmem [thread:$0]  %s6901_s2, 16, %s59_s0, [#allocation6]  }
  0x9d   :  { %s4688_s30 = scalar_lea.hbm %s6904_s5, 128 }
  0x9e   :  { %p4689_p8 = scmp.ne.s32.totalorder %s6904_s5, %s4688_s30  ;;  %p4692_p9 = scmp.lt.u32.totalorder %s4688_s30, %s6904_s5 }
  0xa0   :  { %p4694_p10 = pnand %p4692_p9, %p4689_p8 }
  0xa2   :  { %4697 = shalt.err (!%p4694_p10)
}
  0xa3   :  { %s4698_s8 = scalar_lea.vmem %s81_s10, 128  ;;  %p4703_p12 = scmp.lt.s32.totalorder %s81_s10, %s81_s10 }
  0xa4   :  { %p4699_p11 = scmp.ne.s32.totalorder %s81_s10, %s4698_s8  ;;  %p4704_p13 = scmp.lt.s32.totalorder %s4698_s8, %s4698_s8 }
  0xa6   :  { %p4705_p0 = por %p4704_p13, %p4703_p12 }
  0xa8   :  { %p4706_p1 = pnand %p4705_p0, %p4699_p11 }
  0xaa   :  { %4709 = shalt.err (!%p4706_p1)
}
  0xab   :  { %83 = dma.hbm_to_vmem [thread:$0]  %s6904_s5, 128, %s81_s10, [#allocation9]  }
  0xac   :  { %s4847_s24 = smov [#allocation13]   ;;  %s4848_s19 = smov [#allocation16]  }
  0xad   :  { %s100_s18 = sshll.u32 %s4847_s24, 4  ;;  %s120_s22 = sshll.u32 %s4848_s19, 4  ;;  %s101_s18 = int_to_ptr.vmem [resolvable:$true] %s100_s18  ;;  %s121_s22 = int_to_ptr.vmem [resolvable:$true] %s120_s22 }
  0xae   :  { %s4710_s1 = scalar_lea.hbm %s6906_s7, 16 }
  0xaf   :  { %p4711_p2 = scmp.ne.s32.totalorder %s6906_s7, %s4710_s1  ;;  %p4714_p3 = scmp.lt.u32.totalorder %s4710_s1, %s6906_s7 }
  0xb1   :  { %p4716_p4 = pnand %p4714_p3, %p4711_p2 }
  0xb3   :  { %4719 = shalt.err (!%p4716_p4)
}
  0xb4   :  { %s4720_s5 = scalar_lea.vmem %s101_s18, 16  ;;  %s4724_s10 = scalar_lea.vmem %s101_s18, 32 }
  0xb5   :  { %p4721_p5 = scmp.ne.s32.totalorder %s101_s18, %s4720_s5  ;;  %p4725_p6 = scmp.lt.s32.totalorder %s101_s18, %s101_s18 }
  0xb6   :  { %p4726_p7 = scmp.lt.s32.totalorder %s4724_s10, %s4720_s5 }
  0xb8   :  { %p4727_p8 = por %p4726_p7, %p4725_p6 }
  0xba   :  { %p4728_p9 = pnand %p4727_p8, %p4721_p5 }
  0xbc   :  { %4731 = shalt.err (!%p4728_p9)
}
  0xbd   :  { %103 = dma.hbm_to_vmem [thread:$0]  %s6906_s7, 16, %s101_s18, [#allocation12]  }
  0xbe   :  { %s4732_s8 = scalar_lea.hbm %s6908_s9, 128 }
  0xbf   :  { %p4733_p10 = scmp.ne.s32.totalorder %s6908_s9, %s4732_s8  ;;  %p4736_p11 = scmp.lt.u32.totalorder %s4732_s8, %s6908_s9 }
  0xc1   :  { %p4738_p12 = pnand %p4736_p11, %p4733_p10 }
  0xc3   :  { %4741 = shalt.err (!%p4738_p12)
}
  0xc4   :  { %s4742_s6 = scalar_lea.vmem %s121_s22, 128  ;;  %p4747_p0 = scmp.lt.s32.totalorder %s121_s22, %s121_s22 }
  0xc5   :  { %p4743_p13 = scmp.ne.s32.totalorder %s121_s22, %s4742_s6  ;;  %p4748_p1 = scmp.lt.s32.totalorder %s4742_s6, %s4742_s6 }
  0xc7   :  { %p4749_p2 = por %p4748_p1, %p4747_p0 }
  0xc9   :  { %p4750_p3 = pnand %p4749_p2, %p4743_p13 }
  0xcb   :  { %4753 = shalt.err (!%p4750_p3)
}
  0xcc   :  { %123 = dma.hbm_to_vmem [thread:$0]  %s6908_s9, 128, %s121_s22, [#allocation15]  }
  0xcd   :  { %s4849_s29 = smov [#allocation19]   ;;  %s4850_s27 = smov [#allocation22]  }
  0xce   :  { %s141_s1 = sshll.u32 %s4849_s29, 4  ;;  %s166_s20 = sshll.u32 %s4850_s27, 4  ;;  %s142_s1 = int_to_ptr.vmem [resolvable:$true] %s141_s1  ;;  %s167_s20 = int_to_ptr.vmem [resolvable:$true] %s166_s20 }
  0xcf   :  { %s4754_s5 = scalar_lea.hbm %s6911_s12, 256 }
  0xd0   :  { %p4755_p4 = scmp.ne.s32.totalorder %s6911_s12, %s4754_s5  ;;  %p4758_p5 = scmp.lt.u32.totalorder %s4754_s5, %s6911_s12 }
  0xd2   :  { %p4760_p6 = pnand %p4758_p5, %p4755_p4 }
  0xd4   :  { %4763 = shalt.err (!%p4760_p6)
}
  0xd5   :  { %s4764_s9 = scalar_lea.vmem %s142_s1, 256  ;;  %p4769_p8 = scmp.lt.s32.totalorder %s142_s1, %s142_s1 }
  0xd6   :  { %p4765_p7 = scmp.ne.s32.totalorder %s142_s1, %s4764_s9  ;;  %p4770_p9 = scmp.lt.s32.totalorder %s4764_s9, %s4764_s9 }
  0xd8   :  { %p4771_p10 = por %p4770_p9, %p4769_p8 }
  0xda   :  { %p4772_p11 = pnand %p4771_p10, %p4765_p7 }
  0xdc   :  { %4775 = shalt.err (!%p4772_p11)
}
  0xdd   :  { %147 = dma.hbm_to_vmem [thread:$0]  %s6911_s12, 256, %s142_s1, [#allocation18], %s4843_s4, %s4843_s4, %s4844_s23  }
  0xde   :  { %s4776_s0 = scalar_lea.hbm %s6913_s14, 32 }
  0xdf   :  { %p4777_p12 = scmp.ne.s32.totalorder %s6913_s14, %s4776_s0  ;;  %p4780_p13 = scmp.lt.u32.totalorder %s4776_s0, %s6913_s14 }
  0xe1   :  { %p4782_p0 = pnand %p4780_p13, %p4777_p12 }
  0xe3   :  { %4785 = shalt.err (!%p4782_p0)
}
  0xe4   :  { %s4786_s18 = scalar_lea.vmem %s167_s20, 32  ;;  %p4791_p2 = scmp.lt.s32.totalorder %s167_s20, %s167_s20 }
  0xe5   :  { %p4787_p1 = scmp.ne.s32.totalorder %s167_s20, %s4786_s18  ;;  %p4792_p3 = scmp.lt.s32.totalorder %s4786_s18, %s4786_s18 }
  0xe7   :  { %p4793_p4 = por %p4792_p3, %p4791_p2 }
  0xe9   :  { %p4794_p5 = pnand %p4793_p4, %p4787_p1 }
  0xeb   :  { %4797 = shalt.err (!%p4794_p5)
}
  0xec   :  { %169 = dma.hbm_to_vmem [thread:$0]  %s6913_s14, 32, %s167_s20, [#allocation21]  }
  0xed   :  { %4820 = dma.done.wait [#allocation3], 256  }
  0xee   :  { %4821 = vsyncadd [#allocation3], 4294967040 }
  0xef   :  { %4822 = dma.done.wait [#allocation6], 144  }
  0xf0   :  { %4823 = vsyncadd [#allocation6], 4294967152 }
  0xf1   :  { %4824 = dma.done.wait [#allocation9], 144  }
  0xf2   :  { %4825 = vsyncadd [#allocation9], 4294967152 }
  0xf3   :  { %4826 = dma.done.wait [#allocation12], 32  }
  0xf4   :  { %4827 = vsyncadd [#allocation12], 4294967264 }
  0xf5   :  { %4828 = dma.done.wait [#allocation15], 144  }
  0xf6   :  { %4829 = vsyncadd [#allocation15], 4294967152 }
  0xf7   :  { %4830 = dma.done.wait [#allocation18], 272  }
  0xf8   :  { %4831 = vsyncadd [#allocation18], 4294967024 }
  0xf9   :  { %4832 = dma.done.wait [#allocation21], 288  }
  0xfa   :  { %4833 = vsyncadd [#allocation21], 4294967008  ;;  %vm223_vm0 = vcmask 64512   ;;  %v215_v0 = vld [vmem:[#allocation5] sm:$0xff]  ;;  %v213_v1 = vld [vmem:[#allocation2] sm:$0xff]  ;;  %v4851_v9 = vmov 0.0  }
  0xfb   :  { %v214_v2 = vld [vmem:[#allocation2 + $0x8] sm:$0xff]  ;;  %4189 = vmatprep.subr.mxu0 %v215_v0  ;;  %4191 = vmatprep.mubr.msk.f32.mxu0 %vm223_vm0, %v213_v1  ;;  %v305_v3 = vld [vmem:[%s6902_s3] sm:$0xff]  ;;  %v4035_v4 = vld [vmem:[#allocation7] ss:$0 sm:$0xff]  ;;  %vm4852_vm1 = vmmov 0   ;;  %s4853_s3 = smov 120  }
  0xfc   :  { %4190 = vmatpush3.msra.mxu0 %v215_v0  ;;  %4194 = vmatprep.subr.mxu1 %v305_v3  ;;  %v4038_v10 = vld [vmem:[#allocation8] ss:$0 sm:$0xff]  ;;  %vm397_vm2 = vcmask 15360   ;;  %s4854_s29 = smov 112   ;;  %s4855_s1 = smov 118   ;;  %vm1750_vm3 = vcmask 48128  }
  0xfd   :  { %4192 = vmatmul.mubr.msk.f32.vlgmr.msra.gmra.mrb[0].mxu0 %vm223_vm0, %v214_v2  ;;  %4195 = vmatpush3.msra.mxu1 %v305_v3  ;;  %s4856_s27 = smov 126   ;;  %s4857_s20 = smov 110   ;;  %vm1747_vm4 = vcmask 31744   ;;  %vm1915_vm5 = vcmask 1041409  }
  0xfe   :  { %4199 = vmatprep.subr.mxu1 %v4851_v9  ;;  %4209 = vmatprep.subr.mxu0 %v4851_v9  ;;  %s4858_s13 = smov 116   ;;  %s4859_s30 = smov 124  }
  0xff   :  { %4211 = vmatprep.mubr.msk.f32.mxu0 %vm4852_vm1, %v4851_v9  ;;  %s4860_s5 = smov 108   ;;  %s4861_s10 = smov 114  }
 0x100   :  { %s4862_s25 = smov 122   ;;  %s4863_s21 = smov 106  }
 0x101   :  { %s4864_s26 = smov 2   ;;  %s4865_s9 = smov 4  }
 0x102   :  { %s4866_s22 = smov 6  }
 0x1d0   :  { %v4193_v5 = vpop.f32.mrb[0].mxu0 }
 0x1d1   :  { %v296_v6 = vpop.f32.mrb[1].mxu0  ;;  %v5137_v8 = vadd.f32 %v4193_v5, %v4035_v4 }
 0x1d2   :  { %v5135_v7 = vadd.f32 %v4035_v4, %v296_v6 }
 0x1d4   :  { %4196 = vmatprep.mubr.msk.f32.mxu1 %vm223_vm0, %v5135_v7 }
 0x1d5   :  { %4197 = vmatmul.mubr.msk.f32.vlgmr.msra.gmra.mrb[0].mxu1 %vm223_vm0, %v5137_v8 }
 0x1d6   :  { %4201 = vmatprep.mubr.msk.f32.mxu1 %vm4852_vm1, %v4851_v9 }
 0x2a8   :  { %v4198_v11 = vpop.f32.mrb[0].mxu1 }
 0x2a9   :  { %v385_v12 = vpop.f32.mrb[1].mxu1  ;;  %v5152_v14 = vadd.f32 %v4198_v11, %v4038_v10 }
 0x2aa   :  { %v5149_v13 = vadd.f32 %v4038_v10, %v385_v12 }
 0x2ac   :  { %395 = vrot.lane.b32.xlu0 %v5149_v13, %s4853_s3 }
 0x2b0   :  { %473 = vrot.lane.b32.xlu0 %v5152_v14, %s4853_s3 }
 0x31e   :  { %v396_v15 = vpop.permute.xlu0 %395 }
 0x31f   :  { %4200 = vmatpush3.xpose.msk.msra.mxu1 %vm397_vm2, %v396_v15 }
 0x320   :  { %4204 = vmatprep.subr.mxu1 %v4851_v9 }
 0x322   :  { %4202 = vmatmul.mubr.msk.f32.vlgmr.msra.gmra.mrb[2].mxu1 %vm397_vm2, %v5149_v13  ;;  %v474_v16 = vpop.permute.xlu0 %473 }
 0x323   :  { %4205 = vmatpush3.xpose.msk.msra.mxu1 %vm397_vm2, %v474_v16  ;;  %4206 = vmatprep.mubr.msk.f32.mxu1 %vm4852_vm1, %v4851_v9 }
 0x324   :  { %4214 = vmatprep.subr.mxu1 %v4851_v9 }
 0x326   :  { %4207 = vmatmul.mubr.msk.f32.vlgmr.msra.gmra.mrb[4].mxu1 %vm397_vm2, %v5152_v14 }
 0x327   :  { %4216 = vmatprep.mubr.msk.f32.mxu1 %vm4852_vm1, %v4851_v9 }
 0x3f5   :  { %v468_v17 = vpop.f32.mrb[2].mxu1 }
 0x3f6   :  { %v549_v18 = vmul.f32 0.70710677, %v468_v17  ;;  %v4203_v19 = vpop.f32.mrb[3].mxu1 }
 0x3f8   :  { %v551_v20 = vsel %vm223_vm0, %v549_v18, -inf }
 0x3f9   :  { %552 = vmax.xlane.f32.xlu1 %v551_v20  ;;  %v545_v21 = vpop.f32.mrb[4].mxu1 }
 0x3fa   :  { %v550_v22 = vmul.f32 0.70710677, %v545_v21  ;;  %v4208_v23 = vpop.f32.mrb[5].mxu1 }
 0x3fc   :  { %v554_v24 = vsel %vm223_vm0, %v550_v22, -inf }
 0x3fd   :  { %555 = vmax.xlane.f32.xlu1 %v554_v24 }
 0x40e   :  { %573 = vrot.lane.b32.xlu1 %v5149_v13, %s4854_s29 }
 0x412   :  { %649 = vrot.lane.b32.xlu1 %v5152_v14, %s4854_s29 }
 0x416   :  { %727 = vrot.lane.b32.xlu1 %v5149_v13, %s4855_s1 }
 0x41a   :  { %805 = vrot.lane.b32.xlu1 %v5152_v14, %s4855_s1 }
 0x486   :  { %v553_v25 = vpop.xlane.xlu1 %552 }
 0x487   :  { %v557_v26 = vsub.f32 %v549_v18, %v553_v25 }
 0x489   :  { %v559_v27 = vmul.f32 1.442695, %v557_v26 }
 0x48a   :  { %v556_v28 = vpop.xlane.xlu1 %555 }
 0x48b   :  { %4409 = vpow2.f32 %v559_v27  ;;  %v558_v29 = vsub.f32 %v550_v22, %v556_v28 }
 0x48d   :  { %v561_v30 = vmul.f32 1.442695, %v558_v29 }
 0x48e   :  { %v574_v31 = vpop.permute.xlu1 %573 }
 0x48f   :  { %4411 = vpow2.f32 %v561_v30  ;;  %4210 = vmatpush3.msra.mxu0 %v574_v31 }
 0x490   :  { %4219 = vmatprep.subr.mxu0 %v4851_v9 }
 0x492   :  { %v650_v32 = vpop.permute.xlu1 %649 }
 0x493   :  { %4215 = vmatpush3.msra.mxu1 %v650_v32 }
 0x494   :  { %4224 = vmatprep.subr.mxu1 %v4851_v9 }
 0x495   :  { %v4410_v33 = vpop.eup %4409 }
 0x496   :  { %v563_v34 = vsel %vm223_vm0, %v4410_v33, 0.0  ;;  %v728_v37 = vpop.permute.xlu1 %727 }
 0x497   :  { %564 = vadd.xlane.f32.xlu0 %v563_v34 }
 0x499   :  { %v4412_v35 = vpop.eup %4411 }
 0x49a   :  { %v566_v36 = vsel %vm223_vm0, %v4412_v35, 0.0  ;;  %v806_v38 = vpop.permute.xlu1 %805 }
 0x49b   :  { %567 = vadd.xlane.f32.xlu1 %v566_v36 }
 0x4ac   :  { %803 = vrot.lane.b32.xlu1 %v5152_v14, %s4856_s27 }
 0x4ad   :  { %725 = vrot.lane.b32.xlu0 %v5149_v13, %s4856_s27  ;;  %s4874_s27 = smov [#allocation23]  }
 0x524   :  { %v565_v39 = vpop.xlane.xlu0 %564 }
 0x525   :  { %4413 = vrcp.f32 %v565_v39 }
 0x528   :  { %v568_v40 = vpop.xlane.xlu1 %567  ;;  %v726_v45 = vpop.permute.xlu0 %725 }
 0x529   :  { %4415 = vrcp.f32 %v568_v40 }
 0x52c   :  { %v804_v46 = vpop.permute.xlu1 %803 }
 0x52f   :  { %v4414_v41 = vpop.eup %4413 }
 0x530   :  { %v571_v42 = vmul.f32 %v4414_v41, %v4410_v33 }
 0x532   :  { %4212 = vmatmul.mubr.msk.f32.vlgmr.msra.gmra.mrb[2].mxu0 %vm223_vm0, %v571_v42 }
 0x533   :  { %v4416_v43 = vpop.eup %4415  ;;  %4220 = vmatpush3.xpose.msk.msra.mxu0 %vm397_vm2, %v728_v37  ;;  %4221 = vmatprep.mubr.msk.f32.mxu0 %vm4852_vm1, %v4851_v9 }
 0x534   :  { %v572_v44 = vmul.f32 %v4416_v43, %v4412_v35  ;;  %4229 = vmatprep.subr.mxu0 %v4851_v9 }
 0x536   :  { %4217 = vmatmul.mubr.msk.f32.vlgmr.msra.gmra.mrb[6].mxu1 %vm223_vm0, %v572_v44  ;;  %4222 = vmatmul.mubr.msk.f32.vlgmr.msra.gmra.mrb[4].mxu0 %vm397_vm2, %v726_v45 }
 0x537   :  { %4225 = vmatpush3.xpose.msk.msra.mxu1 %vm397_vm2, %v806_v38  ;;  %4226 = vmatprep.mubr.msk.f32.mxu1 %vm4852_vm1, %v4851_v9 }
 0x538   :  { %4234 = vmatprep.subr.mxu1 %v4851_v9  ;;  %4231 = vmatprep.mubr.msk.f32.mxu0 %vm4852_vm1, %v4851_v9 }
 0x53a   :  { %4227 = vmatmul.mubr.msk.f32.vlgmr.msra.gmra.mrb[8].mxu1 %vm397_vm2, %v804_v46 }
 0x53b   :  { %4236 = vmatprep.mubr.msk.f32.mxu1 %vm4852_vm1, %v4851_v9 }
 0x605   :  { %v5195_v47 = vpop.f32.mrb[2].mxu0 }
 0x606   :  { %v4213_v48 = vpop.f32.mrb[3].mxu0 }
 0x609   :  { %v5197_v49 = vpop.f32.mrb[6].mxu1  ;;  %v799_v50 = vpop.f32.mrb[4].mxu0 }
 0x60a   :  { %v881_v51 = vmul.f32 0.70710677, %v799_v50  ;;  %v4218_v52 = vpop.f32.mrb[7].mxu1  ;;  %v4223_v53 = vpop.f32.mrb[5].mxu0 }
 0x60c   :  { %v883_v54 = vsel %vm223_vm0, %v881_v51, -inf }
 0x60d   :  { %v877_v55 = vpop.f32.mrb[8].mxu1  ;;  %884 = vmax.xlane.f32.xlu1 %v883_v54 }
 0x60e   :  { %v882_v56 = vmul.f32 0.70710677, %v877_v55  ;;  %v4228_v57 = vpop.f32.mrb[9].mxu1 }
 0x610   :  { %v886_v58 = vsel %vm223_vm0, %v882_v56, -inf }
 0x611   :  { %887 = vmax.xlane.f32.xlu0 %v886_v58 }
 0x61e   :  { %905 = vrot.lane.b32.xlu1 %v5149_v13, %s4857_s20 }
 0x622   :  { %1059 = vrot.lane.b32.xlu1 %v5149_v13, %s4858_s13 }
 0x626   :  { %1137 = vrot.lane.b32.xlu1 %v5152_v14, %s4858_s13 }
 0x627   :  { %981 = vrot.lane.b32.xlu0 %v5152_v14, %s4857_s20  ;;  %s4020_s20 = sshll.u32 %s4874_s27, 4  ;;  %s4021_s20 = int_to_ptr.vmem [resolvable:$true] %s4020_s20 }
 0x628   :  { %s4798_s13 = scalar_lea.vmem %s4021_s20, 32  ;;  %p4803_p7 = scmp.lt.s32.totalorder %s4021_s20, %s4021_s20 }
 0x629   :  { %p4799_p6 = scmp.ne.s32.totalorder %s4021_s20, %s4798_s13  ;;  %p4804_p8 = scmp.lt.s32.totalorder %s4798_s13, %s4798_s13 }
 0x62b   :  { %1057 = vrot.lane.b32.xlu0 %v5149_v13, %s4859_s30  ;;  %p4805_p9 = por %p4804_p8, %p4803_p7 }
 0x62d   :  { %p4806_p10 = pnand %p4805_p9, %p4799_p6 }
 0x69a   :  { %v885_v59 = vpop.xlane.xlu1 %884 }
 0x69b   :  { %v889_v60 = vsub.f32 %v881_v51, %v885_v59 }
 0x69d   :  { %v891_v61 = vmul.f32 1.442695, %v889_v60 }
 0x69e   :  { %v906_v62 = vpop.permute.xlu1 %905  ;;  %v888_v63 = vpop.xlane.xlu0 %887 }
 0x69f   :  { %4417 = vpow2.f32 %v891_v61  ;;  %v890_v0 = vsub.f32 %v882_v56, %v888_v63  ;;  %4230 = vmatpush3.msra.mxu0 %v906_v62 }
 0x6a0   :  { %4239 = vmatprep.subr.mxu0 %v4851_v9 }
 0x6a1   :  { %v893_v1 = vmul.f32 1.442695, %v890_v0 }
 0x6a2   :  { %v982_v2 = vpop.permute.xlu0 %981  ;;  %v1060_v10 = vpop.permute.xlu1 %1059 }
 0x6a3   :  { %4419 = vpow2.f32 %v893_v1  ;;  %4235 = vmatpush3.msra.mxu1 %v982_v2 }
 0x6a4   :  { %4244 = vmatprep.subr.mxu1 %v4851_v9 }
 0x6a6   :  { %v1138_v11 = vpop.permute.xlu1 %1137  ;;  %v1058_v20 = vpop.permute.xlu0 %1057 }
 0x6a9   :  { %v4418_v3 = vpop.eup %4417 }
 0x6aa   :  { %v895_v4 = vsel %vm223_vm0, %v4418_v3, 0.0 }
 0x6ab   :  { %896 = vadd.xlane.f32.xlu1 %v895_v4 }
 0x6ad   :  { %v4420_v5 = vpop.eup %4419 }
 0x6ae   :  { %v898_v6 = vsel %vm223_vm0, %v4420_v5, 0.0 }
 0x6af   :  { %899 = vadd.xlane.f32.xlu1 %v898_v6 }
 0x6c0   :  { %1135 = vrot.lane.b32.xlu1 %v5152_v14, %s4859_s30 }
 0x738   :  { %v897_v12 = vpop.xlane.xlu1 %896 }
 0x739   :  { %4421 = vrcp.f32 %v897_v12 }
 0x73c   :  { %v900_v15 = vpop.xlane.xlu1 %899 }
 0x73d   :  { %4423 = vrcp.f32 %v900_v15 }
 0x740   :  { %v1136_v21 = vpop.permute.xlu1 %1135 }
 0x743   :  { %v4422_v16 = vpop.eup %4421 }
 0x744   :  { %v903_v17 = vmul.f32 %v4422_v16, %v4418_v3 }
 0x746   :  { %4232 = vmatmul.mubr.msk.f32.vlgmr.msra.gmra.mrb[6].mxu0 %vm223_vm0, %v903_v17 }
 0x747   :  { %v4424_v18 = vpop.eup %4423  ;;  %4240 = vmatpush3.xpose.msk.msra.mxu0 %vm397_vm2, %v1060_v10  ;;  %4241 = vmatprep.mubr.msk.f32.mxu0 %vm4852_vm1, %v4851_v9 }
 0x748   :  { %v904_v19 = vmul.f32 %v4424_v18, %v4420_v5  ;;  %4249 = vmatprep.subr.mxu0 %v4851_v9 }
 0x74a   :  { %4237 = vmatmul.mubr.msk.f32.vlgmr.msra.gmra.mrb[10].mxu1 %vm223_vm0, %v904_v19  ;;  %4242 = vmatmul.mubr.msk.f32.vlgmr.msra.gmra.mrb[8].mxu0 %vm397_vm2, %v1058_v20 }
 0x74b   :  { %4245 = vmatpush3.xpose.msk.msra.mxu1 %vm397_vm2, %v1138_v11  ;;  %4246 = vmatprep.mubr.msk.f32.mxu1 %vm4852_vm1, %v4851_v9 }
 0x74c   :  { %4254 = vmatprep.subr.mxu1 %v4851_v9  ;;  %4251 = vmatprep.mubr.msk.f32.mxu0 %vm4852_vm1, %v4851_v9 }
 0x74e   :  { %4247 = vmatmul.mubr.msk.f32.vlgmr.msra.gmra.mrb[12].mxu1 %vm397_vm2, %v1136_v21 }
 0x74f   :  { %4256 = vmatprep.mubr.msk.f32.mxu1 %vm4852_vm1, %v4851_v9 }
 0x819   :  { %v5227_v22 = vpop.f32.mrb[6].mxu0 }
 0x81a   :  { %v4233_v23 = vpop.f32.mrb[7].mxu0 }
 0x81d   :  { %v5229_v24 = vpop.f32.mrb[10].mxu1  ;;  %v1131_v25 = vpop.f32.mrb[8].mxu0 }
 0x81e   :  { %v1213_v26 = vmul.f32 0.70710677, %v1131_v25  ;;  %v4238_v27 = vpop.f32.mrb[11].mxu1  ;;  %v4243_v28 = vpop.f32.mrb[9].mxu0 }
 0x820   :  { %v1215_v29 = vsel %vm223_vm0, %v1213_v26, -inf }
 0x821   :  { %v1209_v30 = vpop.f32.mrb[12].mxu1  ;;  %1216 = vmax.xlane.f32.xlu0 %v1215_v29 }
 0x822   :  { %v1214_v31 = vmul.f32 0.70710677, %v1209_v30  ;;  %v4248_v32 = vpop.f32.mrb[13].mxu1 }
 0x824   :  { %v1218_v33 = vsel %vm223_vm0, %v1214_v31, -inf }
 0x825   :  { %1219 = vmax.xlane.f32.xlu1 %v1218_v33 }
 0x836   :  { %1237 = vrot.lane.b32.xlu1 %v5149_v13, %s4860_s5 }
 0x837   :  { %1313 = vrot.lane.b32.xlu0 %v5152_v14, %s4860_s5 }
 0x83a   :  { %1391 = vrot.lane.b32.xlu1 %v5149_v13, %s4861_s10 }
 0x83e   :  { %1469 = vrot.lane.b32.xlu1 %v5152_v14, %s4861_s10 }
 0x842   :  { %1467 = vrot.lane.b32.xlu1 %v5152_v14, %s4862_s25 }
 0x8ae   :  { %v1217_v34 = vpop.xlane.xlu0 %1216 }
 0x8af   :  { %v1221_v35 = vsub.f32 %v1213_v26, %v1217_v34 }
 0x8b1   :  { %v1223_v36 = vmul.f32 1.442695, %v1221_v35 }
 0x8b2   :  { %v1220_v37 = vpop.xlane.xlu1 %1219  ;;  %v1314_v38 = vpop.permute.xlu0 %1313 }
 0x8b3   :  { %4425 = vpow2.f32 %v1223_v36  ;;  %v1222_v39 = vsub.f32 %v1214_v31, %v1220_v37  ;;  %4255 = vmatpush3.msra.mxu1 %v1314_v38 }
 0x8b4   :  { %4264 = vmatprep.subr.mxu1 %v4851_v9 }
 0x8b5   :  { %v1225_v40 = vmul.f32 1.442695, %v1222_v39 }
 0x8b6   :  { %v1238_v41 = vpop.permute.xlu1 %1237 }
 0x8b7   :  { %4427 = vpow2.f32 %v1225_v40  ;;  %4250 = vmatpush3.msra.mxu0 %v1238_v41 }
 0x8b8   :  { %4259 = vmatprep.subr.mxu0 %v4851_v9 }
 0x8ba   :  { %v1392_v50 = vpop.permute.xlu1 %1391 }
 0x8bd   :  { %v4426_v42 = vpop.eup %4425 }
 0x8be   :  { %v1227_v43 = vsel %vm223_vm0, %v4426_v42, 0.0  ;;  %v1470_v54 = vpop.permute.xlu1 %1469 }
 0x8bf   :  { %1228 = vadd.xlane.f32.xlu0 %v1227_v43 }
 0x8c1   :  { %v4428_v44 = vpop.eup %4427 }
 0x8c2   :  { %v1230_v45 = vsel %vm223_vm0, %v4428_v44, 0.0  ;;  %v1468_v57 = vpop.permute.xlu1 %1467 }
 0x8c3   :  { %1231 = vadd.xlane.f32.xlu0 %v1230_v45 }
 0x8d9   :  { %1389 = vrot.lane.b32.xlu0 %v5149_v13, %s4862_s25 }
 0x94c   :  { %v1229_v46 = vpop.xlane.xlu0 %1228 }
 0x94d   :  { %4429 = vrcp.f32 %v1229_v46 }
 0x950   :  { %v1232_v48 = vpop.xlane.xlu0 %1231 }
 0x951   :  { %4431 = vrcp.f32 %v1232_v48 }
 0x954   :  { %v1390_v56 = vpop.permute.xlu0 %1389 }
 0x957   :  { %v4430_v51 = vpop.eup %4429 }
 0x958   :  { %v1235_v52 = vmul.f32 %v4430_v51, %v4426_v42 }
 0x95a   :  { %4252 = vmatmul.mubr.msk.f32.vlgmr.msra.gmra.mrb[10].mxu0 %vm223_vm0, %v1235_v52 }
 0x95b   :  { %v4432_v53 = vpop.eup %4431  ;;  %4260 = vmatpush3.xpose.msk.msra.mxu0 %vm397_vm2, %v1392_v50  ;;  %4261 = vmatprep.mubr.msk.f32.mxu0 %vm4852_vm1, %v4851_v9 }
 0x95c   :  { %v1236_v55 = vmul.f32 %v4432_v53, %v4428_v44  ;;  %4269 = vmatprep.subr.mxu0 %v4851_v9  ;;  %v4065_v44 = vld [vmem:[#allocation11] ss:$0 sm:$0xff] }
 0x95e   :  { %4257 = vmatmul.mubr.msk.f32.vlgmr.msra.gmra.mrb[14].mxu1 %vm223_vm0, %v1236_v55  ;;  %4262 = vmatmul.mubr.msk.f32.vlgmr.msra.gmra.mrb[12].mxu0 %vm397_vm2, %v1390_v56 }
 0x95f   :  { %4265 = vmatpush3.xpose.msk.msra.mxu1 %vm397_vm2, %v1470_v54  ;;  %4266 = vmatprep.mubr.msk.f32.mxu1 %vm4852_vm1, %v4851_v9 }
 0x960   :  { %4274 = vmatprep.subr.mxu1 %v4851_v9  ;;  %4271 = vmatprep.mubr.msk.f32.mxu0 %vm4852_vm1, %v4851_v9 }
 0x962   :  { %4267 = vmatmul.mubr.msk.f32.vlgmr.msra.gmra.mrb[16].mxu1 %vm397_vm2, %v1468_v57 }
 0x963   :  { %4276 = vmatprep.mubr.msk.f32.mxu1 %vm4852_vm1, %v4851_v9 }
 0xa2d   :  { %v1309_v58 = vpop.f32.mrb[10].mxu0 }
 0xa2e   :  { %v4253_v59 = vpop.f32.mrb[11].mxu0 }
 0xa31   :  { %v1385_v60 = vpop.f32.mrb[14].mxu1  ;;  %v1463_v61 = vpop.f32.mrb[12].mxu0 }
 0xa32   :  { %v1545_v62 = vmul.f32 0.70710677, %v1463_v61  ;;  %v4258_v63 = vpop.f32.mrb[15].mxu1  ;;  %v4263_v0 = vpop.f32.mrb[13].mxu0 }
 0xa34   :  { %v1547_v1 = vsel %vm223_vm0, %v1545_v62, -inf }
 0xa35   :  { %v1541_v2 = vpop.f32.mrb[16].mxu1  ;;  %1548 = vmax.xlane.f32.xlu0 %v1547_v1 }
 0xa36   :  { %v1546_v3 = vmul.f32 0.70710677, %v1541_v2  ;;  %v4268_v4 = vpop.f32.mrb[17].mxu1 }
 0xa37   :  { %v4068_v4 = vld [vmem:[#allocation13] ss:$0 sm:$0xff] }
 0xa38   :  { %v1550_v5 = vsel %vm223_vm0, %v1546_v3, -inf }
 0xa39   :  { %1551 = vmax.xlane.f32.xlu1 %v1550_v5 }
 0xa4a   :  { %1569 = vrot.lane.b32.xlu1 %v5149_v13, %s4863_s21 }
 0xa4e   :  { %1723 = vrot.lane.b32.xlu1 %v5227_v22, %s4864_s26 }
 0xa52   :  { %1725 = vrot.lane.b32.xlu1 %v5229_v24, %s4864_s26 }
 0xa56   :  { %1733 = vrot.lane.b32.xlu1 %v1385_v60, %s4865_s9 }
 0xac2   :  { %v1549_v6 = vpop.xlane.xlu0 %1548 }
 0xac3   :  { %v1553_v10 = vsub.f32 %v1545_v62, %v1549_v6  ;;  %v4069_v6 = vld [vmem:[#allocation14] ss:$0 sm:$0xff] }
 0xac5   :  { %v1555_v11 = vmul.f32 1.442695, %v1553_v10 }
 0xac6   :  { %v1552_v12 = vpop.xlane.xlu1 %1551 }
 0xac7   :  { %4433 = vpow2.f32 %v1555_v11  ;;  %v1554_v15 = vsub.f32 %v1546_v3, %v1552_v12 }
 0xac9   :  { %v1557_v16 = vmul.f32 1.442695, %v1554_v15 }
 0xaca   :  { %v1570_v17 = vpop.permute.xlu1 %1569 }
 0xacb   :  { %4435 = vpow2.f32 %v1557_v16  ;;  %4270 = vmatpush3.msra.mxu0 %v1570_v17 }
 0xace   :  { %v1724_v32 = vpop.permute.xlu1 %1723 }
 0xacf   :  { %v1745_v35 = vsel %vm397_vm2, %v5195_v47, %v1724_v32 }
 0xad1   :  { %v4434_v18 = vpop.eup %4433 }
 0xad2   :  { %v1559_v13 = vsel %vm223_vm0, %v4434_v18, 0.0  ;;  %v1726_v33 = vpop.permute.xlu1 %1725 }
 0xad3   :  { %1560 = vadd.xlane.f32.xlu0 %v1559_v13  ;;  %v1746_v40 = vsel %vm397_vm2, %v5197_v49, %v1726_v33  ;;  %v1997_v33 = vlaneseq }
 0xad5   :  { %v4436_v19 = vpop.eup %4435 }
 0xad6   :  { %v1562_v20 = vsel %vm223_vm0, %v4436_v19, 0.0  ;;  %v1734_v36 = vpop.permute.xlu1 %1733 }
 0xad7   :  { %1563 = vadd.xlane.f32.xlu0 %v1562_v20  ;;  %v1749_v41 = vsel %vm1747_vm4, %v1746_v40, %v1734_v36 }
 0xaed   :  { %1645 = vrot.lane.b32.xlu0 %v5152_v14, %s4863_s21  ;;  %v1753_v14 = vld [vmem:[#allocation10] sm:$0xff] }
 0xaee   :  { %4279 = vmatprep.subr.mxu0 %v1753_v14 }
 0xaf1   :  { %1731 = vrot.lane.b32.xlu0 %v1309_v58, %s4865_s9 }
 0xb60   :  { %v1561_v21 = vpop.xlane.xlu0 %1560 }
 0xb61   :  { %4437 = vrcp.f32 %v1561_v21 }
 0xb64   :  { %v1564_v22 = vpop.xlane.xlu0 %1563 }
 0xb65   :  { %4439 = vrcp.f32 %v1564_v22 }
 0xb68   :  { %v1646_v23 = vpop.permute.xlu0 %1645 }
 0xb69   :  { %4275 = vmatpush3.msra.mxu1 %v1646_v23 }
 0xb6a   :  { %4284 = vmatprep.subr.mxu1 %v4851_v9 }
 0xb6b   :  { %v4438_v24 = vpop.eup %4437 }
 0xb6c   :  { %v1567_v25 = vmul.f32 %v4438_v24, %v4434_v18  ;;  %v1732_v34 = vpop.permute.xlu0 %1731 }
 0xb6d   :  { %v1748_v37 = vsel %vm1747_vm4, %v1745_v35, %v1732_v34  ;;  %v5289_v34 = vshrl.u32 %v1997_v33, 7 }
 0xb6e   :  { %4272 = vmatmul.mubr.msk.f32.vlgmr.msra.gmra.mrb[14].mxu0 %vm223_vm0, %v1567_v25 }
 0xb6f   :  { %v4440_v26 = vpop.eup %4439  ;;  %4280 = vmatpush3.msra.mxu0 %v1753_v14  ;;  %v5292_v35 = vsub.s32 0, %v5289_v34  ;;  %v5295_v36 = vsub.s32 1, %v5289_v34 }
 0xb70   :  { %v1568_v27 = vmul.f32 %v4440_v26, %v4436_v19 }
 0xb72   :  { %4277 = vmatmul.mubr.msk.f32.vlgmr.msra.gmra.mrb[18].mxu1 %vm223_vm0, %v1568_v27 }
 0xb73   :  { %4286 = vmatprep.mubr.msk.f32.mxu1 %vm4852_vm1, %v4851_v9 }
 0xc41   :  { %v1641_v28 = vpop.f32.mrb[14].mxu0 }
 0xc42   :  { %1739 = vrot.lane.b32.xlu0 %v1641_v28, %s4866_s22  ;;  %v4273_v29 = vpop.f32.mrb[15].mxu0 }
 0xc45   :  { %v1717_v30 = vpop.f32.mrb[18].mxu1 }
 0xc46   :  { %1741 = vrot.lane.b32.xlu1 %v1717_v30, %s4866_s22  ;;  %v4278_v31 = vpop.f32.mrb[19].mxu1 }
 0xcb4   :  { %v1740_v38 = vpop.permute.xlu0 %1739 }
 0xcb5   :  { %v1751_v39 = vsel %vm1750_vm3, %v1748_v37, %v1740_v38  ;;  %v5300_v37 = vld [vmem:[%s6910_s11] sm:$0xff]  ;;  %v4070_v38 = vld [vmem:[#allocation17] ss:$0 sm:$0xff] }
 0xcb6   :  { %4281 = vmatprep.mubr.msk.f32.mxu0 %vm223_vm0, %v1751_v39  ;;  %v5302_v39 = vld [vmem:[#allocation19] sm:$0xff]  ;;  %v2000_v40 = vrot.slane %v5300_v37, %v5292_v35 }
 0xcb8   :  { %v1742_v42 = vpop.permute.xlu1 %1741 }
 0xcb9   :  { %v1752_v43 = vsel %vm1750_vm3, %v1749_v41, %v1742_v42  ;;  %v2120_v41 = vrot.slane %v5300_v37, %v5295_v36 }
 0xcba   :  { %4282 = vmatmul.mubr.msk.f32.vlgmr.msra.gmra.mrb[16].mxu0 %vm223_vm0, %v1752_v43 }
 0xcbb   :  { %4297 = vmatprep.mubr.msk.f32.mxu0 %vm4852_vm1, %v4851_v9 }
 0xd8d   :  { %v4283_v47 = vpop.f32.mrb[16].mxu0 }
 0xd8e   :  { %v1839_v45 = vadd.f32 %v4283_v47, %v4065_v44  ;;  %v1833_v46 = vpop.f32.mrb[17].mxu0  ;;  %v2125_v47 = vrot.slane %v5302_v39, %v5295_v36 }
 0xd8f   :  { %v1834_v48 = vadd.f32 %v4065_v44, %v1833_v46  ;;  %v2005_v44 = vrot.slane %v5302_v39, %v5292_v35 }
 0xd90   :  { %v1843_v50 = vadd.f32 %v1839_v45, %v5137_v8 }
 0xd91   :  { %v1842_v51 = vadd.f32 %v1834_v48, %v5135_v7  ;;  %v1905_v7 = vld [vmem:[#allocation16] sm:$0xff] }
 0xd92   :  { %v1847_v52 = vsel %vm223_vm0, %v1843_v50, 0.0  ;;  %4285 = vmatpush3.msra.mxu1 %v1905_v7 }
 0xd93   :  { %1848 = vadd.xlane.f32.xlu1 %v1847_v52  ;;  %v1844_v49 = vsel %vm223_vm0, %v1842_v51, 0.0 }
 0xd94   :  { %1845 = vadd.xlane.f32.xlu0 %v1844_v49  ;;  %v5322_v49 = vsub.s32 2, %v5289_v34 }
 0xe20   :  { %v1849_v53 = vpop.xlane.xlu1 %1848 }
 0xe21   :  { %v1852_v54 = vmul.f32 0.125, %v1849_v53  ;;  %v1846_v55 = vpop.xlane.xlu0 %1845 }
 0xe22   :  { %v1851_v56 = vmul.f32 0.125, %v1846_v55 }
 0xe23   :  { %v1854_v9 = vsub.f32 %v1843_v50, %v1852_v54 }
 0xe24   :  { %v1853_v57 = vsub.f32 %v1842_v51, %v1851_v56 }
 0xe25   :  { %v1856_v60 = vmul.f32 %v1854_v9, %v1854_v9 }
 0xe26   :  { %v1855_v58 = vmul.f32 %v1853_v57, %v1853_v57 }
 0xe27   :  { %v1860_v8 = vsel %vm223_vm0, %v1856_v60, 0.0 }
 0xe28   :  { %v1857_v59 = vsel %vm223_vm0, %v1855_v58, 0.0 }
 0xe29   :  { %1858 = vadd.xlane.f32.xlu0 %v1857_v59 }
 0xe2d   :  { %1861 = vadd.xlane.f32.xlu0 %v1860_v8  ;;  %v2245_v8 = vrot.slane %v5302_v39, %v5322_v49 }
 0xeb6   :  { %v1859_v61 = vpop.xlane.xlu0 %1858 }
 0xeb7   :  { %v1863_v62 = vmul.f32 0.125, %v1859_v61 }
 0xeb9   :  { %v1865_v63 = vadd.f32 1e-05, %v1863_v62 }
 0xeba   :  { %v1862_v0 = vpop.xlane.xlu0 %1861 }
 0xebb   :  { %4441 = vrsqrt.f32 %v1865_v63  ;;  %v1864_v1 = vmul.f32 0.125, %v1862_v0 }
 0xebd   :  { %v1866_v2 = vadd.f32 1e-05, %v1864_v1 }
 0xebf   :  { %4443 = vrsqrt.f32 %v1866_v2 }
 0xec5   :  { %v4442_v3 = vpop.eup %4441 }
 0xec6   :  { %v1869_v5 = vmul.f32 %v4442_v3, %v1853_v57 }
 0xec8   :  { %v1878_v10 = vmul.f32 %v4068_v4, %v1869_v5 }
 0xec9   :  { %v4444_v11 = vpop.eup %4443 }
 0xeca   :  { %v1887_v12 = vadd.f32 %v4069_v6, %v1878_v10  ;;  %v1870_v15 = vmul.f32 %v4444_v11, %v1854_v9  ;;  %v2240_v9 = vrot.slane %v5300_v37, %v5322_v49 }
 0xecc   :  { %v1879_v16 = vmul.f32 %v4068_v4, %v1870_v15  ;;  %v1889_v17 = vsel %vm223_vm0, %v1887_v12, 0.0  ;;  %v6928_v4 = vmov 683565275   ;;  %v6924_v12 = vmov 2131351028  }
 0xecd   :  { %v1890_v18 = vrot.slane %v1889_v17, 4 }
 0xece   :  { %v1888_v13 = vadd.f32 %v4069_v6, %v1879_v16  ;;  %v6926_v6 = vmov 2475754826  }
 0xecf   :  { %v1891_v19 = vadd.f32 %v1890_v18, %v1889_v17  ;;  %v6930_v17 = vmov 2102212464  }
 0xed0   :  { %v1896_v20 = vsel %vm223_vm0, %v1888_v13, 0.0 }
 0xed1   :  { %v1892_v21 = vrot.slane %v1891_v19, 2  ;;  %v1897_v22 = vrot.slane %v1896_v20, 4 }
 0xed3   :  { %v1893_v23 = vadd.f32 %v1892_v21, %v1891_v19  ;;  %v1898_v24 = vadd.f32 %v1897_v22, %v1896_v20  ;;  %v4871_v19 = vmov 920167782   ;;  %v6945_v22 = vmov 1326507024  }
 0xed5   :  { %v1894_v25 = vrot.slane %v1893_v23, 1  ;;  %v1899_v26 = vrot.slane %v1898_v24, 2 }
 0xed7   :  { %v1900_v27 = vadd.f32 %v1899_v26, %v1898_v24  ;;  %v1895_v14 = vadd.f32 %v1894_v25, %v1893_v23 }
 0xed9   :  { %v1901_v28 = vrot.slane %v1900_v27, 1  ;;  %v1903_v30 = vmul.f32 0.125, %v1895_v14 }
 0xedb   :  { %v1902_v29 = vadd.f32 %v1901_v28, %v1900_v27 }
 0xedd   :  { %v1904_v31 = vmul.f32 0.125, %v1902_v29 }
 0xedf   :  { %v1916_v32 = vsel %vm1915_vm5, %v1904_v31, %v1903_v30 }
 0xee0   :  { %4287 = vmatmul.mubr.msk.f32.vlgmr.msra.gmra.mrb[20].mxu1 %vm223_vm0, %v1916_v32 }
 0xfb3   :  { %v1985_v42 = vpop.f32.mrb[20].mxu1 }
 0xfb4   :  { %v5308_v43 = vadd.f32 %v4070_v38, %v1985_v42  ;;  %v4288_v45 = vpop.f32.mrb[21].mxu1 }
 0xfb6   :  { %v2001_v46 = vmul.f32 %v2000_v40, %v5308_v43  ;;  %v2121_v48 = vmul.f32 %v2120_v41, %v5308_v43  ;;  %v2241_v60 = vmul.f32 %v2240_v9, %v5308_v43  ;;  %v5355_v9 = vsub.s32 3, %v5289_v34 }
 0xfb8   :  { %v5316_v50 = vadd.f32 %v2005_v44, %v2001_v46  ;;  %v5318_v51 = vadd.f32 %v2125_v47, %v2121_v48  ;;  %v5333_v1 = vadd.f32 %v2245_v8, %v2241_v60  ;;  %6966 = vst [vmem:[#allocation32_spill] sm:$0xff] %v5355_v9 }
 0xfba   :  { %v2010_v52 = vand.u32 2139095040, %v5316_v50  ;;  %v2130_v53 = vand.u32 2139095040, %v5318_v51  ;;  %v2007_v57 = vand.u32 2147483647, %v5316_v50  ;;  %vm2009_vm3 = vcmp.lt.s32.totalorder %v5316_v50, 0 }
 0xfbc   :  { %v2011_v54 = vshrl.u32 %v2010_v52, 23  ;;  %v2131_v56 = vshrl.u32 %v2130_v53, 23  ;;  %v2014_v7 = vand.u32 8388607, %v2007_v57  ;;  %vm5445_vm4 = vcmp.le.f32.partialorder %v2007_v57, 0.7853982 }
 0xfbe   :  { %v4073_v55 = vadd.s32 4294967169, %v2011_v54  ;;  %v4077_v59 = vadd.s32 4294967169, %v2131_v56  ;;  %v2015_v2 = vor.u32 8388608, %v2014_v7 }
 0xfc0   :  { %v2017_v58 = vadd.s32 1, %v4073_v55  ;;  %v2137_v0 = vadd.s32 1, %v4077_v59  ;;  %v2055_v31 = vshll.u32 %v2015_v2, 8 }
 0xfc2   :  { %vm2018_vm6 = vcmp.gt.s32.totalorder %v2017_v58, 0  ;;  %vm2138_vm7 = vcmp.gt.s32.totalorder %v2137_v0, 0 }
 0xfc3   :  { %v2019_v61 = vsel %vm2018_vm6, %v2017_v58, 0  ;;  %v2139_v42 = vsel %vm2138_vm7, %v2137_v0, 0  ;;  %v2250_v58 = vand.u32 2139095040, %v5333_v1 }
 0xfc4   :  { %v2021_v62 = vand.u32 31, %v2019_v61  ;;  %v2020_v3 = vshrl.u32 %v2019_v61, 5  ;;  %v2141_v55 = vand.u32 31, %v2139_v42  ;;  %v2360_v61 = vrot.slane %v5300_v37, %v5355_v9 }
 0xfc6   :  { %v2022_v63 = vsub.s32 32, %v2021_v62  ;;  %v2024_v5 = vshll.u32 %v6928_v4, %v2021_v62  ;;  %v2027_v10 = vshll.u32 %v6926_v6, %v2021_v62  ;;  %v2030_v16 = vshll.u32 %v6924_v12, %v2021_v62 }
 0xfc7   :  { %v2033_v13 = vshll.u32 %v6930_v17, %v2021_v62  ;;  %v2036_v21 = vshll.u32 %v4871_v19, %v2021_v62  ;;  %vm2039_vm8 = vcmp.lt.s32.totalorder %v2020_v3, 1  ;;  %vm2042_vm9 = vcmp.lt.s32.totalorder %v2020_v3, 4 }
 0xfc8   :  { %v2025_v11 = vshrl.u32 %v6926_v6, %v2022_v63  ;;  %v2028_v15 = vshrl.u32 %v6924_v12, %v2022_v63  ;;  %v2031_v18 = vshrl.u32 %v6930_v17, %v2022_v63  ;;  %v2034_v20 = vshrl.u32 %v4871_v19, %v2022_v63 }
 0xfc9   :  { %v2037_v23 = vshrl.u32 %v6945_v22, %v2022_v63  ;;  %v2023_v32 = vshrl.u32 %v6928_v4, %v2022_v63  ;;  %vm2041_vm10 = vcmp.lt.s32.totalorder %v2020_v3, 3  ;;  %vm2040_vm11 = vcmp.lt.s32.totalorder %v2020_v3, 2 }
 0xfca   :  { %v2026_v24 = vor.u32 %v2025_v11, %v2024_v5  ;;  %v2029_v25 = vor.u32 %v2028_v15, %v2027_v10  ;;  %v2032_v26 = vor.u32 %v2031_v18, %v2030_v16  ;;  %v2035_v27 = vor.u32 %v2034_v20, %v2033_v13 }
 0xfcb   :  { %v2038_v14 = vor.u32 %v2037_v23, %v2036_v21  ;;  %v5361_v8 = vsub.s32 32, %v2141_v55  ;;  %v2251_v63 = vshrl.u32 %v2250_v58, 23  ;;  %v6923_v3 = vand.u32 2147483647, %v5318_v51 }
 0xfcc   :  { %v2044_v28 = vsel %vm2042_vm9, %v2032_v26, 2102212464  ;;  %v2047_v29 = vsel %vm2039_vm8, %v2026_v24, %v2029_v25  ;;  %v2051_v30 = vsel %vm2039_vm8, %v2029_v25, %v2032_v26  ;;  %v2048_v33 = vsel %vm2042_vm9, %v2035_v27, 920167782 }
 0xfcd   :  { %v2052_v38 = vsel %vm2042_vm9, %v2038_v14, 1326507024  ;;  %v2049_v40 = vsel %vm2041_vm10, %v2032_v26, %v2048_v33  ;;  %v2043_v44 = vsel %vm2039_vm8, %v2023_v32, %v2026_v24  ;;  %v2045_v47 = vsel %vm2041_vm10, %v2029_v25, %v2044_v28 }
 0xfce   :  { %v2053_v41 = vsel %vm2041_vm10, %v2035_v27, %v2052_v38  ;;  %v2050_v45 = vsel %vm2040_vm11, %v2047_v29, %v2049_v40  ;;  %v2046_v56 = vsel %vm2040_vm11, %v2043_v44, %v2045_v47  ;;  %v2154_v2 = vshrl.u32 %v4871_v19, %v5361_v8 }
 0xfcf   :  { %v2054_v46 = vsel %vm2040_vm11, %v2051_v30, %v2053_v41  ;;  %v5350_v53 = vmul.u32.u64.low %v2055_v31, %v2050_v45  ;;  %v5351_v54 = vmul.u32.u64.high %v2055_v31, %v2050_v45, %v5350_v53  ;;  %v2062_v60 = vmul.u32 %v2055_v31, %v2046_v56 }
 0xfd0   :  { %v5347_v48 = vmul.u32.u64.low %v2055_v31, %v2054_v46  ;;  %v5348_v52 = vmul.u32.u64.high %v2055_v31, %v2054_v46, %v5347_v48  ;;  %v2157_v5 = vshrl.u32 %v6945_v22, %v5361_v8  ;;  %v2361_v10 = vmul.f32 %v2360_v61, %v5308_v43 }
 0xfd1   :  { %v2065_v59 = vadd.s32 1, %v5351_v54  ;;  %v2365_v11 = vrot.slane %v5302_v39, %v5355_v9  ;;  %v5376_v16 = vshrl.u32 %v2139_v42, 5  ;;  %v2153_v18 = vshll.u32 %v6930_v17, %v2141_v55 }
 0xfd2   :  { %vm2064_vm12 = vc.u32 %v5348_v52, %v5350_v53  ;;  %v4081_v13 = vadd.s32 4294967169, %v2251_v63  ;;  %v2145_v20 = vshrl.u32 %v6926_v6, %v5361_v8  ;;  %v2148_v21 = vshrl.u32 %v6924_v12, %v5361_v8 }
 0xfd3   :  { %v2066_v7 = vsel %vm2064_vm12, %v2065_v59, %v5351_v54  ;;  %v2151_v23 = vshrl.u32 %v6930_v17, %v5361_v8  ;;  %v2156_v24 = vshll.u32 %v4871_v19, %v2141_v55  ;;  %v2155_v26 = vor.u32 %v2154_v2, %v2153_v18 }
 0xfd4   :  { %v2067_v62 = vadd.s32 %v2066_v7, %v2062_v60  ;;  %v2144_v27 = vshll.u32 %v6928_v4, %v2141_v55  ;;  %v2147_v14 = vshll.u32 %v6926_v6, %v2141_v55  ;;  %v2150_v28 = vshll.u32 %v6924_v12, %v2141_v55 }
 0xfd5   :  { %v2158_v29 = vor.u32 %v2157_v5, %v2156_v24  ;;  %v2134_v31 = vand.u32 8388607, %v6923_v3  ;;  %v2257_v32 = vadd.s32 1, %v4081_v13  ;;  %v5392_v33 = vadd.f32 %v2365_v11, %v2361_v10 }
 0xfd6   :  { %v2068_v0 = vadd.s32 536870912, %v2067_v62  ;;  %v2146_v38 = vor.u32 %v2145_v20, %v2144_v27  ;;  %v2149_v40 = vor.u32 %v2148_v21, %v2147_v14  ;;  %v2152_v41 = vor.u32 %v2151_v23, %v2150_v28 }
 0xfd7   :  { %vm2162_vm13 = vcmp.lt.s32.totalorder %v5376_v16, 4  ;;  %v2135_v46 = vor.u32 8388608, %v2134_v31  ;;  %vm2159_vm14 = vcmp.lt.s32.totalorder %v5376_v16, 1  ;;  %vm2161_vm15 = vcmp.lt.s32.totalorder %v5376_v16, 3 }
 0xfd8   :  { %v5374_v15 = vshrl.u32 %v2068_v0, 30  ;;  %v2168_v44 = vsel %vm2162_vm13, %v2155_v26, 920167782  ;;  %v2172_v47 = vsel %vm2162_vm13, %v2158_v29, 1326507024  ;;  %v2167_v48 = vsel %vm2159_vm14, %v2146_v38, %v2149_v40 }
 0xfd9   :  { %v2169_v54 = vsel %vm2161_vm15, %v2152_v41, %v2168_v44  ;;  %vm2258_vm0 = vcmp.gt.s32.totalorder %v2257_v32, 0  ;;  %v2370_v55 = vand.u32 2139095040, %v5392_v33  ;;  %v2171_v58 = vsel %vm2159_vm14, %v2149_v40, %v2152_v41 }
 0xfda   :  { %v2070_v25 = vshll.u32 %v5374_v15, 30  ;;  %v2173_v59 = vsel %vm2161_vm15, %v2155_v26, %v2172_v47  ;;  %vm2160_vm1 = vcmp.lt.s32.totalorder %v5376_v16, 2  ;;  %v2259_v61 = vsel %vm2258_vm0, %v2257_v32, 0 }
 0xfdb   :  { %v2170_v7 = vsel %vm2160_vm1, %v2167_v48, %v2169_v54  ;;  %v5415_v63 = vshll.u32 %v2135_v46, 8  ;;  %v2371_v0 = vshrl.u32 %v2370_v55, 23  ;;  %v2063_v2 = vadd.s32 %v5350_v53, %v5348_v52 }
 0xfdc   :  { %v2071_v30 = vsub.s32 %v2067_v62, %v2070_v25  ;;  %v2174_v62 = vsel %vm2160_vm1, %v2171_v58, %v2173_v59  ;;  %v2261_v18 = vand.u32 31, %v2259_v61  ;;  %v2164_v24 = vsel %vm2162_vm13, %v2152_v41, 2102212464 }
 0xfdd   :  { %v5420_v10 = vmul.u32.u64.low %v5415_v63, %v2170_v7  ;;  %v5421_v11 = vmul.u32.u64.high %v5415_v63, %v2170_v7, %v5420_v10  ;;  %v5425_v21 = vmul.u32.u64.low %v5415_v63, %v2174_v62  ;;  %v5426_v23 = vmul.u32.u64.high %v5415_v63, %v2174_v62, %v5425_v21 }
 0xfde   :  { %v2073_v42 = vsub.s32 0, %v2071_v30  ;;  %v4085_v25 = vadd.s32 4294967169, %v2371_v0  ;;  %v5431_v52 = vsub.s32 4, %v5289_v34  ;;  %v2143_v14 = vshrl.u32 %v6928_v4, %v5361_v8 }
 0xfdf   :  { %v5435_v28 = vsub.s32 32, %v2261_v18  ;;  %v2165_v41 = vsel %vm2161_vm15, %v2149_v40, %v2164_v24  ;;  %v6922_v47 = vand.u32 2147483647, %v5333_v1  ;;  %v5455_v46 = vshrl.u32 %v2259_v61, 5 }
 0xfe0   :  { %v4074_v45 = vmin.u32 %v2073_v42, %v2071_v30  ;;  %6967 = vst [vmem:[#allocation33_spill] sm:$0xff] %v5431_v52  ;;  %v2163_v32 = vsel %vm2159_vm14, %v2143_v14, %v2146_v38  ;;  %v2093_v42 = vsub.s32 4, %v5374_v15  ;;  %v2480_v38 = vrot.slane %v5300_v37, %v5431_v52 }
 0xfe1   :  { %v2166_v40 = vsel %vm2160_vm1, %v2163_v32, %v2165_v41  ;;  %v2274_v48 = vshrl.u32 %v4871_v19, %v5435_v28  ;;  %vm2184_vm5 = vc.u32 %v5426_v23, %v5420_v10  ;;  %v2277_v55 = vshrl.u32 %v6945_v22, %v5435_v28 }
 0xfe2   :  { %v2075_v56 = vclz %v4074_v45  ;;  %v2185_v45 = vadd.s32 1, %v5421_v11  ;;  %v2094_v16 = vsel %vm2009_vm3, %v2093_v42, %v5374_v15  ;;  %v2273_v58 = vshll.u32 %v6930_v17, %v2261_v18 }
 0xfe3   :  { %v2271_v7 = vshrl.u32 %v6930_v17, %v5435_v28  ;;  %v2276_v61 = vshll.u32 %v4871_v19, %v2261_v18  ;;  %v2264_v0 = vshll.u32 %v6928_v4, %v2261_v18  ;;  %v2267_v15 = vshll.u32 %v6926_v6, %v2261_v18 }
 0xfe4   :  { %v4075_v60 = vadd.s32 4294967294, %v2075_v56  ;;  %v2265_v56 = vshrl.u32 %v6926_v6, %v5435_v28  ;;  %v2186_v62 = vsel %vm2184_vm5, %v2185_v45, %v5421_v11  ;;  %v2096_v24 = vsel %vm5445_vm4, 0, %v2094_v16 }
 0xfe5   :  { %vm2282_vm7 = vcmp.lt.s32.totalorder %v5455_v46, 4  ;;  %v2100_v32 = vadd.s32 3, %v2096_v24  ;;  %v2485_v42 = vrot.slane %v5302_v39, %v5431_v52  ;;  %vm2279_vm8 = vcmp.lt.s32.totalorder %v5455_v46, 1 }
 0xfe6   :  { %vm4076_vm2 = vcmp.lt.s32.totalorder %v4075_v60, 0  ;;  %vm2281_vm9 = vcmp.lt.s32.totalorder %v5455_v46, 3  ;;  %v6921_v45 = vand.u32 2147483647, %v5392_v33  ;;  %vm2280_vm10 = vcmp.lt.s32.totalorder %v5455_v46, 2 }
 0xfe7   :  { %v2078_v5 = vsel %vm4076_vm2, 0, %v4075_v60  ;;  %v2268_v60 = vshrl.u32 %v6924_v12, %v5435_v28  ;;  %v2263_v16 = vshrl.u32 %v6928_v4, %v5435_v28  ;;  %vm2099_vm11 = vweird.f32 %v5316_v50 }
 0xfe8   :  { %v2079_v13 = vsub.s32 32, %v2078_v5  ;;  %v2083_v20 = vsub.s32 4294967266, %v2078_v5  ;;  %v2080_v53 = vshll.u32 %v2071_v30, %v2078_v5  ;;  %v2377_v30 = vadd.s32 1, %v4085_v25 }
 0xfe9   :  { %v2182_v25 = vmul.u32 %v5415_v63, %v2166_v40  ;;  %v2374_v28 = vand.u32 8388607, %v6921_v45 }
 0xfea   :  { %v2081_v26 = vshrl.u32 %v2063_v2, %v2079_v13  ;;  %v2084_v27 = vadd.s32 127, %v2083_v20  ;;  %vm2378_vm6 = vcmp.gt.s32.totalorder %v2377_v30, 0  ;;  %v2275_v2 = vor.u32 %v2274_v48, %v2273_v58 }
 0xfeb   :  { %v2270_v13 = vshll.u32 %v6924_v12, %v2261_v18  ;;  %v2278_v20 = vor.u32 %v2277_v55, %v2276_v61  ;;  %v2379_v21 = vsel %vm2378_vm6, %v2377_v30, 0  ;;  %v2481_v30 = vmul.f32 %v2480_v38, %v5308_v43 }
 0xfec   :  { %v2082_v29 = vor.u32 %v2081_v26, %v2080_v53  ;;  %v2085_v31 = vshll.u32 %v2084_v27, 23  ;;  %v2254_v53 = vand.u32 8388607, %v6922_v47  ;;  %v2266_v26 = vor.u32 %v2265_v56, %v2264_v0 }
 0xfed   :  { %v5486_v27 = vor.u32 %v2268_v60, %v2267_v15  ;;  %v2272_v14 = vor.u32 %v2271_v7, %v2270_v13  ;;  %v2288_v63 = vsel %vm2282_vm7, %v2275_v2, 920167782  ;;  %v2292_v41 = vsel %vm2282_vm7, %v2278_v20, 1326507024 }
 0xfee   :  { %v2086_v8 = vor.u32 4788187, %v2085_v31  ;;  %v2089_v54 = vcvt.s32.f32 %v2082_v29  ;;  %v5491_v29 = vadd.s32 %v2186_v62, %v2182_v25  ;;  %v2381_v31 = vand.u32 31, %v2379_v21 }
 0xfef   :  { %v2255_v44 = vor.u32 8388608, %v2254_v53  ;;  %v2289_v40 = vsel %vm2281_vm9, %v2272_v14, %v2288_v63  ;;  %v2101_v55 = vand.u32 3, %v2100_v32  ;;  %v5525_v60 = vadd.f32 %v2485_v42, %v2481_v30 }
 0xff0   :  { %v2087_v57 = vand.u32 2147483647, %v2086_v8  ;;  %v2287_v8 = vsel %vm2279_vm8, %v2266_v26, %v5486_v27  ;;  %v2188_v48 = vadd.s32 536870912, %v5491_v29  ;;  %v5514_v38 = vsub.s32 32, %v2381_v31 }
 0xff1   :  { %v2290_v56 = vsel %vm2280_vm10, %v2287_v8, %v2289_v40  ;;  %v2283_v61 = vsel %vm2279_vm8, %v2263_v16, %v2266_v26  ;;  %vm2106_vm12 = vcmp.eq.s32.totalorder %v2101_v55, 2  ;;  %v2393_v24 = vshll.u32 %v6930_v17, %v2381_v31 }
 0xff2   :  { %v2090_v59 = vmul.f32 %v2089_v54, %v2087_v57  ;;  %v2291_v57 = vsel %vm2279_vm8, %v5486_v27, %v2272_v14  ;;  %v2293_v54 = vsel %vm2281_vm9, %v2275_v2, %v2292_v41  ;;  %v5528_v7 = vshrl.u32 %v2188_v48, 30 }
 0xff3   :  { %v2294_v58 = vsel %vm2280_vm10, %v2291_v57, %v2293_v54  ;;  %v2394_v62 = vshrl.u32 %v4871_v19, %v5514_v38  ;;  %v2397_v2 = vshrl.u32 %v6945_v22, %v5514_v38  ;;  %v2385_v20 = vshrl.u32 %v6926_v6, %v5514_v38 }
 0xff4   :  { %v2091_v5 = vxor.u32 2147483648, %v2090_v59  ;;  %v5550_v53 = vshrl.u32 %v2379_v21, 5  ;;  %v2391_v26 = vshrl.u32 %v6930_v17, %v5514_v38  ;;  %v2284_v41 = vsel %vm2282_vm7, %v2272_v14, 2102212464 }
 0xff5   :  { %v2384_v42 = vshll.u32 %v6928_v4, %v2381_v31  ;;  %v2395_v30 = vor.u32 %v2394_v62, %v2393_v24  ;;  %v2387_v21 = vshll.u32 %v6926_v6, %v2381_v31  ;;  %v2390_v8 = vshll.u32 %v6924_v12, %v2381_v31 }
 0xff6   :  { %v2092_v11 = vsel %vm2009_vm3, %v2091_v5, %v2090_v59  ;;  %v5523_v59 = vshll.u32 %v2255_v44, 8  ;;  %vm2102_vm13 = vcmp.lt.s32.totalorder %v2101_v55, 2  ;;  %vm2103_vm14 = vcmp.eq.s32.totalorder %v2101_v55, 0 }
 0xff7   :  { %v2095_v18 = vsel %vm5445_vm4, %v5316_v50, %v2092_v11  ;;  %v2388_v11 = vshrl.u32 %v6924_v12, %v5514_v38  ;;  %v2386_v57 = vor.u32 %v2385_v20, %v2384_v42  ;;  %vm2402_vm15 = vcmp.lt.s32.totalorder %v5550_v53, 4 }
 0xff8   :  { %4445 = vcosq.f32 %v2095_v18  ;;  %v5537_v0 = vmul.u32.u64.low %v5523_v59, %v2290_v56  ;;  %v5538_v15 = vmul.u32.u64.high %v5523_v59, %v2290_v56, %v5537_v0  ;;  %v2392_v56 = vor.u32 %v2391_v26, %v2390_v8 }
 0xff9   :  { %4447 = vsinq.f32 %v2095_v18  ;;  %v5544_v5 = vmul.u32.u64.low %v5523_v59, %v2294_v58  ;;  %v5545_v13 = vmul.u32.u64.high %v5523_v59, %v2294_v58, %v5544_v5  ;;  %v2396_v18 = vshll.u32 %v4871_v19, %v2381_v31 }
 0xffa   :  { %v2389_v16 = vor.u32 %v2388_v11, %v2387_v21  ;;  %v2285_v58 = vsel %vm2281_vm9, %v5486_v27, %v2284_v41  ;;  %v2408_v62 = vsel %vm2402_vm15, %v2395_v30, 920167782  ;;  %v2490_v31 = vand.u32 2139095040, %v5525_v60 }
 0xffb   :  { %v2398_v40 = vor.u32 %v2397_v2, %v2396_v18  ;;  %v2305_v2 = vadd.s32 1, %v5538_v15  ;;  %v5578_v20 = vsub.s32 5, %v5289_v34  ;;  %vm2304_vm0 = vc.u32 %v5545_v13, %v5537_v0 }
 0xffc   :  { %v2375_v27 = vor.u32 8388608, %v2374_v28  ;;  %vm2399_vm1 = vcmp.lt.s32.totalorder %v5550_v53, 1  ;;  %vm2401_vm2 = vcmp.lt.s32.totalorder %v5550_v53, 3  ;;  %v2286_v50 = vsel %vm2280_vm10, %v2283_v61, %v2285_v58 }
 0xffd   :  { %v2412_v5 = vsel %vm2402_vm15, %v2398_v40, 1326507024  ;;  %6970 = vst [vmem:[#allocation34_spill] sm:$0xff] %v5578_v20  ;;  %v2407_v24 = vsel %vm2399_vm1, %v2386_v57, %v2389_v16  ;;  %v2491_v11 = vshrl.u32 %v2490_v31, 23  ;;  %v2190_v26 = vshll.u32 %v5528_v7, 30 }
 0xffe   :  { %v2411_v18 = vsel %vm2399_vm1, %v2389_v16, %v2392_v56  ;;  %v2413_v28 = vsel %vm2401_vm2, %v2395_v30, %v2412_v5  ;;  %vm2400_vm3 = vcmp.lt.s32.totalorder %v5550_v53, 2  ;;  %v2302_v61 = vmul.u32 %v5523_v59, %v2286_v50 }
 0xfff   :  { %v4089_v46 = vadd.s32 4294967169, %v2491_v11  ;;  %v2414_v41 = vsel %vm2400_vm3, %v2411_v18, %v2413_v28  ;;  %v5602_v42 = vshll.u32 %v2375_v27, 8  ;;  %v2600_v21 = vrot.slane %v5300_v37, %v5578_v20 }
0x1000   :  { %v5607_v30 = vsub.s32 %v5491_v29, %v2190_v26  ;;  %v2383_v27 = vshrl.u32 %v6928_v4, %v5514_v38  ;;  %v6920_v50 = vand.u32 2147483647, %v5525_v60 }
0x1001   :  { %v2601_v58 = vmul.f32 %v2600_v21, %v5308_v43 }
0x1002   :  { %v4446_v25 = vpop.eup %4445  ;;  %v2193_v29 = vsub.s32 0, %v5607_v30 }
0x1003   :  { %v4448_v63 = vpop.eup %4447  ;;  %v2107_v32 = vxor.u32 2147483648, %v4446_v25 }
0x1004   :  { %v2104_v44 = vxor.u32 2147483648, %v4448_v63  ;;  %v4078_v26 = vmin.u32 %v2193_v29, %v5607_v30 }
0x1005   :  { %v2108_v48 = vsel %vm2106_vm12, %v2107_v32, %v4448_v63  ;;  %v2306_v63 = vsel %vm2304_vm0, %v2305_v2, %v5538_v15  ;;  %v2404_v2 = vsel %vm2402_vm15, %v2392_v56, 2102212464 }
0x1006   :  { %v2105_v54 = vsel %vm2103_vm14, %v4446_v25, %v2104_v44  ;;  %v2409_v25 = vsel %vm2401_vm2, %v2392_v56, %v2408_v62  ;;  %v2497_v44 = vadd.s32 1, %v4089_v46  ;;  %v2307_v15 = vadd.s32 %v2306_v63, %v2302_v61 }
0x1007   :  { %v2109_v14 = vsel %vm2102_vm13, %v2105_v54, %v2108_v48  ;;  %v2410_v32 = vsel %vm2400_vm3, %v2407_v24, %v2409_v25  ;;  %v5615_v59 = vmul.u32.u64.low %v5602_v42, %v2414_v41  ;;  %v5616_v48 = vmul.u32.u64.high %v5602_v42, %v2414_v41, %v5615_v59 }
0x1008   :  { %v5572_v55 = vsel %vm2099_vm11, nan, %v2109_v14  ;;  %v5610_v8 = vmul.u32.u64.low %v5602_v42, %v2410_v32  ;;  %v5611_v40 = vmul.u32.u64.high %v5602_v42, %v2410_v32, %v5610_v8  ;;  %vm2498_vm4 = vcmp.gt.s32.totalorder %v2497_v44, 0 }
0x1009   :  { %v2499_v54 = vsel %vm2498_vm4, %v2497_v44, 0  ;;  %v2605_v62 = vrot.slane %v5302_v39, %v5578_v20  ;;  %v2308_v31 = vadd.s32 536870912, %v2307_v15  ;;  %v2403_v56 = vsel %vm2399_vm1, %v2383_v27, %v2386_v57 }
0x100a   :  { %v2501_v14 = vand.u32 31, %v2499_v54  ;;  %v2405_v38 = vsel %vm2401_vm2, %v2389_v16, %v2404_v2  ;;  %v2425_v28 = vadd.s32 1, %v5611_v40  ;;  %vm2424_vm5 = vc.u32 %v5616_v48, %v5610_v8 }
0x100b   :  { %v5633_v11 = vadd.f32 %v2605_v62, %v2601_v58  ;;  %v5636_v18 = vshrl.u32 %v2308_v31, 30  ;;  %v2494_v32 = vand.u32 8388607, %v6920_v50  ;;  %v5651_v41 = vshrl.u32 %v2499_v54, 5 }
0x100c   :  { %v5624_v5 = vsub.s32 32, %v2501_v14  ;;  %v2504_v63 = vshll.u32 %v6928_v4, %v2501_v14  ;;  %v2507_v46 = vshll.u32 %v6926_v6, %v2501_v14  ;;  %v2510_v57 = vshll.u32 %v6924_v12, %v2501_v14 }
0x100d   :  { %v2513_v21 = vshll.u32 %v6930_v17, %v2501_v14  ;;  %v2310_v58 = vshll.u32 %v5636_v18, 30  ;;  %v2516_v62 = vshll.u32 %v4871_v19, %v2501_v14  ;;  %v2195_v31 = vclz %v4078_v26 }
0x100e   :  { %v2505_v24 = vshrl.u32 %v6926_v6, %v5624_v5  ;;  %v2508_v25 = vshrl.u32 %v6924_v12, %v5624_v5  ;;  %v2511_v61 = vshrl.u32 %v6930_v17, %v5624_v5  ;;  %v2514_v59 = vshrl.u32 %v4871_v19, %v5624_v5 }
0x100f   :  { %v2517_v29 = vshrl.u32 %v6945_v22, %v5624_v5  ;;  %v2406_v54 = vsel %vm2400_vm3, %v2403_v56, %v2405_v38  ;;  %vm2519_vm6 = vcmp.lt.s32.totalorder %v5651_v41, 1  ;;  %vm2522_vm7 = vcmp.lt.s32.totalorder %v5651_v41, 4 }
0x1010   :  { %v2506_v16 = vor.u32 %v2505_v24, %v2504_v63  ;;  %v2509_v44 = vor.u32 %v2508_v25, %v2507_v46  ;;  %v2512_v2 = vor.u32 %v2511_v61, %v2510_v57  ;;  %v2515_v27 = vor.u32 %v2514_v59, %v2513_v21 }
0x1011   :  { %v2426_v24 = vsel %vm2424_vm5, %v2425_v28, %v5611_v40  ;;  %v2518_v25 = vor.u32 %v2517_v29, %v2516_v62  ;;  %v2495_v63 = vor.u32 8388608, %v2494_v32  ;;  %v2610_v26 = vand.u32 2139095040, %v5633_v11 }
0x1012   :  { %v2527_v14 = vsel %vm2519_vm6, %v2506_v16, %v2509_v44  ;;  %v2528_v46 = vsel %vm2522_vm7, %v2515_v27, 920167782  ;;  %v5671_v53 = vsub.s32 %v2307_v15, %v2310_v58  ;;  %v2422_v56 = vmul.u32 %v5602_v42, %v2406_v54 }
0x1013   :  { %vm2521_vm8 = vcmp.lt.s32.totalorder %v5651_v41, 3  ;;  %v5676_v40 = vsub.s32 6, %v5289_v34  ;;  %vm2520_vm9 = vcmp.lt.s32.totalorder %v5651_v41, 2  ;;  %v2531_v28 = vsel %vm2519_vm6, %v2509_v44, %v2512_v2 }
0x1014   :  { %v2529_v38 = vsel %vm2521_vm8, %v2512_v2, %v2528_v46  ;;  %v2532_v61 = vsel %vm2522_vm7, %v2518_v25, 1326507024  ;;  %v5685_v15 = vadd.s32 %v2426_v24, %v2422_v56  ;;  %v4079_v57 = vadd.s32 4294967294, %v2195_v31 }
0x1015   :  { %6971 = vst [vmem:[#allocation35_spill] sm:$0xff] %v5676_v40  ;;  %v2530_v42 = vsel %vm2520_vm9, %v2527_v14, %v2529_v38  ;;  %v2533_v32 = vsel %vm2521_vm8, %v2515_v27, %v2532_v61  ;;  %v2535_v59 = vshll.u32 %v2495_v63, 8  ;;  %v2611_v58 = vshrl.u32 %v2610_v26, 23 }
0x1016   :  { %v2534_v21 = vsel %vm2520_vm9, %v2531_v28, %v2533_v32  ;;  %v2720_v62 = vrot.slane %v5300_v37, %v5676_v40  ;;  %v2313_v29 = vsub.s32 0, %v5671_v53  ;;  %v2428_v14 = vadd.s32 536870912, %v5685_v15 }
0x1017   :  { %v5696_v54 = vmul.u32.u64.low %v2535_v59, %v2530_v42  ;;  %v5697_v24 = vmul.u32.u64.high %v2535_v59, %v2530_v42, %v5696_v54  ;;  %v4093_v25 = vadd.s32 4294967169, %v2611_v58  ;;  %vm4080_vm10 = vcmp.lt.s32.totalorder %v4079_v57, 0 }
0x1018   :  { %v5701_v46 = vmul.u32.u64.low %v2535_v59, %v2534_v21  ;;  %v5702_v27 = vmul.u32.u64.high %v2535_v59, %v2534_v21, %v5701_v46  ;;  %v2524_v63 = vsel %vm2522_vm7, %v2512_v2, 2102212464  ;;  %v2721_v26 = vmul.f32 %v2720_v62, %v5308_v43 }
0x1019   :  { %v2617_v31 = vadd.s32 1, %v4093_v25  ;;  %v2725_v37 = vrot.slane %v5302_v39, %v5676_v40  ;;  %v4082_v56 = vmin.u32 %v2313_v29, %v5671_v53  ;;  %v2503_v38 = vshrl.u32 %v6928_v4, %v5624_v5 }
0x101a   :  { %v5712_v28 = vsel %vm4080_vm10, 0, %v4079_v57  ;;  %v5714_v61 = vshrl.u32 %v2428_v14, 30  ;;  %v6919_v42 = vand.u32 2147483647, %v5633_v11  ;;  %v2525_v21 = vsel %vm2521_vm8, %v2509_v44, %v2524_v63 }
0x101b   :  { %vm2618_vm11 = vcmp.gt.s32.totalorder %v2617_v31, 0  ;;  %v2523_v2 = vsel %vm2519_vm6, %v2503_v38, %v2506_v16  ;;  %v5721_v58 = vadd.f32 %v2725_v37, %v2721_v26  ;;  %v2203_v62 = vsub.s32 4294967266, %v5712_v28 }
0x101c   :  { %v2619_v32 = vsel %vm2618_vm11, %v2617_v31, 0  ;;  %v2315_v5 = vclz %v4082_v56  ;;  %v2545_v57 = vadd.s32 1, %v5697_v24  ;;  %v2430_v25 = vshll.u32 %v5714_v61, 30 }
0x101d   :  { %v2621_v39 = vand.u32 31, %v2619_v32  ;;  %6972 = vst [vmem:[#allocation36_spill] sm:$0xff] %v5721_v58  ;;  %v2526_v14 = vsel %vm2520_vm9, %v2523_v2, %v2525_v21  ;;  %vm2544_vm12 = vc.u32 %v5702_v27, %v5696_v54  ;;  %v2614_v16 = vand.u32 8388607, %v6919_v42 }
0x101e   :  { %v2546_v38 = vsel %vm2544_vm12, %v2545_v57, %v5697_v24  ;;  %v2620_v2 = vshrl.u32 %v2619_v32, 5  ;;  %v2204_v40 = vadd.s32 127, %v2203_v62  ;;  %v4083_v20 = vadd.s32 4294967294, %v2315_v5 }
0x101f   :  { %v2622_v29 = vsub.s32 32, %v2621_v39  ;;  %v2624_v44 = vshll.u32 %v6928_v4, %v2621_v39  ;;  %v2627_v31 = vshll.u32 %v6926_v6, %v2621_v39  ;;  %v2630_v63 = vshll.u32 %v6924_v12, %v2621_v39 }
0x1020   :  { %v2633_v41 = vshll.u32 %v6930_v17, %v2621_v39  ;;  %v2636_v42 = vshll.u32 %v4871_v19, %v2621_v39  ;;  %v2542_v4 = vmul.u32 %v2535_v59, %v2526_v14  ;;  %v2730_v24 = vand.u32 2139095040, %v5721_v58 }
0x1021   :  { %v2625_v46 = vshrl.u32 %v6926_v6, %v2622_v29  ;;  %v2628_v26 = vshrl.u32 %v6924_v12, %v2622_v29  ;;  %v2631_v37 = vshrl.u32 %v6930_v17, %v2622_v29  ;;  %v2634_v56 = vshrl.u32 %v4871_v19, %v2622_v29 }
0x1022   :  { %v2637_v3 = vshrl.u32 %v6945_v22, %v2622_v29  ;;  %v2183_v12 = vadd.s32 %v5420_v10, %v5426_v23  ;;  %v2199_v6 = vsub.s32 32, %v5712_v28  ;;  %v2615_v17 = vor.u32 8388608, %v2614_v16 }
0x1023   :  { %v2626_v21 = vor.u32 %v2625_v46, %v2624_v44  ;;  %v2629_v50 = vor.u32 %v2628_v26, %v2627_v31  ;;  %v2632_v45 = vor.u32 %v2631_v37, %v2630_v63  ;;  %v2635_v47 = vor.u32 %v2634_v56, %v2633_v41 }
0x1024   :  { %v2638_v52 = vor.u32 %v2637_v3, %v2636_v42  ;;  %v5748_v32 = vsub.s32 %v5685_v15, %v2430_v25  ;;  %v2547_v39 = vadd.s32 %v2546_v38, %v2542_v4  ;;  %vm2639_vm13 = vcmp.lt.s32.totalorder %v2620_v2, 1 }
0x1025   :  { %vm2642_vm14 = vcmp.lt.s32.totalorder %v2620_v2, 4  ;;  %vm2641_vm15 = vcmp.lt.s32.totalorder %v2620_v2, 3  ;;  %v2647_v44 = vsel %vm2639_vm13, %v2626_v21, %v2629_v50  ;;  %v6973_v23 = vmov 683565275  }
0x1026   :  { %v2644_v57 = vsel %vm2642_vm14, %v2632_v45, 2102212464  ;;  %v2648_v10 = vsel %vm2642_vm14, %v2635_v47, 920167782  ;;  %v2623_v46 = vshrl.u32 %v6973_v23, %v2622_v29  ;;  %vm2640_vm0 = vcmp.lt.s32.totalorder %v2620_v2, 2 }
0x1027   :  { %v2649_v59 = vsel %vm2641_vm15, %v2632_v45, %v2648_v10  ;;  %v2655_v62 = vshll.u32 %v2615_v17, 8  ;;  %v2651_v42 = vsel %vm2639_vm13, %v2629_v50, %v2632_v45  ;;  %v2652_v15 = vsel %vm2642_vm14, %v2638_v52, 1326507024 }
0x1028   :  { %v2650_v3 = vsel %vm2640_vm0, %v2647_v44, %v2649_v59  ;;  %v2731_v5 = vshrl.u32 %v2730_v24, 23  ;;  %v2433_v4 = vsub.s32 0, %v5748_v32  ;;  %v2548_v25 = vadd.s32 536870912, %v2547_v39 }
0x1029   :  { %v2643_v14 = vsel %vm2639_vm13, %v2623_v46, %v2626_v21  ;;  %v2645_v16 = vsel %vm2641_vm15, %v2629_v50, %v2644_v57  ;;  %v2653_v31 = vsel %vm2641_vm15, %v2635_v47, %v2652_v15  ;;  %vm4084_vm1 = vcmp.lt.s32.totalorder %v4083_v20, 0 }
0x102a   :  { %v5759_v29 = vmul.u32.u64.low %v2655_v62, %v2650_v3  ;;  %v5760_v63 = vmul.u32.u64.high %v2655_v62, %v2650_v3, %v5759_v29  ;;  %v4097_v17 = vadd.s32 4294967169, %v2731_v5  ;;  %v2654_v26 = vsel %vm2640_vm0, %v2651_v42, %v2653_v31 }
0x102b   :  { %v2201_v45 = vshrl.u32 %v2183_v12, %v2199_v6  ;;  %v5764_v52 = vmul.u32.u64.low %v2655_v62, %v2654_v26  ;;  %v5765_v37 = vmul.u32.u64.high %v2655_v62, %v2654_v26, %v5764_v52  ;;  %v2200_v56 = vshll.u32 %v5607_v30, %v5712_v28 }
0x102c   :  { %v2737_v41 = vadd.s32 1, %v4097_v17  ;;  %v2205_v38 = vshll.u32 %v2204_v40, 23  ;;  %v4086_v50 = vmin.u32 %v2433_v4, %v5748_v32  ;;  %v2646_v47 = vsel %vm2640_vm0, %v2643_v14, %v2645_v16 }
0x102d   :  { %v2318_v21 = vsel %vm4084_vm1, 0, %v4083_v20  ;;  %v5771_v24 = vshrl.u32 %v2548_v25, 30  ;;  %v2665_v57 = vadd.s32 1, %v5760_v63  ;;  %v2202_v44 = vor.u32 %v2201_v45, %v2200_v56 }
0x102e   :  { %vm2738_vm2 = vcmp.gt.s32.totalorder %v2737_v41, 0  ;;  %v2662_v6 = vmul.u32 %v2655_v62, %v2646_v47  ;;  %vm2664_vm3 = vc.u32 %v5765_v37, %v5759_v29  ;;  %v2206_v10 = vor.u32 4788187, %v2205_v38 }
0x102f   :  { %v2739_v12 = vsel %vm2738_vm2, %v2737_v41, 0  ;;  %v2323_v46 = vsub.s32 4294967266, %v2318_v21  ;;  %v2435_v30 = vclz %v4086_v50  ;;  %v2666_v40 = vsel %vm2664_vm3, %v2665_v57, %v5760_v63 }
0x1030   :  { %v2550_v28 = vshll.u32 %v5771_v24, 30  ;;  %v2667_v2 = vadd.s32 %v2666_v40, %v2662_v6  ;;  %v2741_v20 = vand.u32 31, %v2739_v12  ;;  %v6938_v59 = vand.u32 2147483647, %v5721_v58 }
0x1031   :  { %v2209_v3 = vcvt.s32.f32 %v2202_v44  ;;  %v2303_v42 = vadd.s32 %v5537_v0, %v5545_v13  ;;  %v2207_v5 = vand.u32 2147483647, %v2206_v10  ;;  %v2319_v4 = vsub.s32 32, %v2318_v21 }
0x1032   :  { %v2668_v62 = vadd.s32 536870912, %v2667_v2  ;;  %v2742_v15 = vsub.s32 32, %v2741_v20  ;;  %v2324_v25 = vadd.s32 127, %v2323_v46  ;;  %v4087_v14 = vadd.s32 4294967294, %v2435_v30 }
0x1033   :  { %v5781_v16 = vsub.s32 %v2547_v39, %v2550_v28  ;;  %v6974_v63 = vmov 2475754826   ;;  %v6975_v26 = vmov 2131351028   ;;  %v2734_v52 = vand.u32 8388607, %v6938_v59 }
0x1034   :  { %v5783_v31 = vshrl.u32 %v2668_v62, 30  ;;  %v2745_v17 = vshrl.u32 %v6974_v63, %v2742_v15  ;;  %v2748_v45 = vshrl.u32 %v6975_v26, %v2742_v15  ;;  %v6976_v41 = vmov 2102212464  }
0x1035   :  { %v2751_v56 = vshrl.u32 %v6976_v41, %v2742_v15  ;;  %v2753_v0 = vshll.u32 %v6976_v41, %v2741_v20  ;;  %v2754_v13 = vshrl.u32 %v4871_v19, %v2742_v15  ;;  %v2740_v50 = vshrl.u32 %v2739_v12, 5 }
0x1036   :  { %v2670_v38 = vshll.u32 %v5783_v31, 30  ;;  %v2744_v39 = vshll.u32 %v6973_v23, %v2741_v20  ;;  %v2747_v47 = vshll.u32 %v6974_v63, %v2741_v20  ;;  %v2321_v57 = vshrl.u32 %v2303_v42, %v2319_v4 }
0x1037   :  { %v2750_v44 = vshll.u32 %v6975_v26, %v2741_v20  ;;  %v2755_v6 = vor.u32 %v2754_v13, %v2753_v0  ;;  %v2757_v10 = vshrl.u32 %v6945_v22, %v2742_v15  ;;  %v2320_v46 = vshll.u32 %v5671_v53, %v2318_v21  ;;  %v3929_v13 = vld [vmem:[%s6914_s15 + $0x8] sm:$0xff] }
0x1038   :  { %v2325_v30 = vshll.u32 %v2324_v25, 23  ;;  %v2746_v40 = vor.u32 %v2745_v17, %v2744_v39  ;;  %v2749_v28 = vor.u32 %v2748_v45, %v2747_v47  ;;  %vm4088_vm4 = vcmp.lt.s32.totalorder %v4087_v14, 0 }
0x1039   :  { %v2553_v62 = vsub.s32 0, %v5781_v16  ;;  %v2752_v59 = vor.u32 %v2751_v56, %v2750_v44  ;;  %v2756_v12 = vshll.u32 %v4871_v19, %v2741_v20  ;;  %v5800_v9 = vmul.f32 %v2209_v3, %v2207_v5 }
0x103a   :  { %v5802_v58 = vsub.s32 %v2667_v2, %v2670_v38  ;;  %v2735_v42 = vor.u32 8388608, %v2734_v52  ;;  %vm2762_vm5 = vcmp.lt.s32.totalorder %v2740_v50, 4  ;;  %v2322_v4 = vor.u32 %v2321_v57, %v2320_v46  ;;  %v3930_v46 = vld [vmem:[%s6914_s15 + $0x10] sm:$0xff] }
0x103b   :  { %v2758_v0 = vor.u32 %v2757_v10, %v2756_v12  ;;  %vm2759_vm6 = vcmp.lt.s32.totalorder %v2740_v50, 1  ;;  %v2768_v53 = vsel %vm2762_vm5, %v2755_v6, 920167782  ;;  %v2326_v21 = vor.u32 4788187, %v2325_v30  ;;  %v3931_v30 = vld [vmem:[%s6914_s15 + $0x18] sm:$0xff] }
0x103c   :  { %v5805_v25 = vsel %vm4088_vm4, 0, %v4087_v14  ;;  %vm2761_vm7 = vcmp.lt.s32.totalorder %v2740_v50, 3  ;;  %v2767_v17 = vsel %vm2759_vm6, %v2746_v40, %v2749_v28  ;;  %v4090_v45 = vmin.u32 %v2553_v62, %v5781_v16  ;;  %v3928_v14 = vld [vmem:[%s6914_s15] sm:$0xff] }
0x103d   :  { %v2743_v20 = vshrl.u32 %v6973_v23, %v2742_v15  ;;  %v2764_v2 = vsel %vm2762_vm5, %v2752_v59, 2102212464  ;;  %v2769_v3 = vsel %vm2761_vm7, %v2752_v59, %v2768_v53  ;;  %v2673_v5 = vsub.s32 0, %v5802_v58 }
0x103e   :  { %vm2760_vm8 = vcmp.lt.s32.totalorder %v2740_v50, 2  ;;  %v2771_v52 = vsel %vm2759_vm6, %v2749_v28, %v2752_v59  ;;  %v2775_v56 = vshll.u32 %v2735_v42, 8  ;;  %v2443_v15 = vsub.s32 4294967266, %v5805_v25 }
0x103f   :  { %v2763_v38 = vsel %vm2759_vm6, %v2743_v20, %v2746_v40  ;;  %v2770_v39 = vsel %vm2760_vm8, %v2767_v17, %v2769_v3  ;;  %v2772_v47 = vsel %vm2762_vm5, %v2758_v0, 1326507024  ;;  %v2765_v57 = vsel %vm2761_vm7, %v2749_v28, %v2764_v2  ;;  %v4509_v20 = vld [vmem:[%s6910_s11] sm:$0xff]  ;;  %v4510_v3 = vld [vmem:[#allocation19] sm:$0xff] }
0x1040   :  { %v2773_v59 = vsel %vm2761_vm7, %v2755_v6, %v2772_v47  ;;  %v5826_v44 = vmul.u32.u64.low %v2775_v56, %v2770_v39  ;;  %v5827_v10 = vmul.u32.u64.high %v2775_v56, %v2770_v39, %v5826_v44  ;;  %v5838_v62 = vsub.s32 7, %v5289_v34 }
0x1041   :  { %v2774_v40 = vsel %vm2760_vm8, %v2771_v52, %v2773_v59  ;;  %v4301_v28 = vpack.c.bf16 %v3929_v13, %v3928_v14  ;;  %v2555_v12 = vclz %v4090_v45  ;;  %v4094_v6 = vmin.u32 %v2673_v5, %v5802_v58 }
0x1042   :  { %v5841_v42 = vmul.u32.u64.low %v2775_v56, %v2774_v40  ;;  %v5842_v0 = vmul.u32.u64.high %v2775_v56, %v2774_v40, %v5841_v42  ;;  %v4873_v53 = vmov 0.0|0.0   ;;  %v2766_v17 = vsel %vm2760_vm8, %v2763_v38, %v2765_v57 }
0x1043   :  { %4300 = vmatprep.subr.bf16.mxu0 %v4873_v53  ;;  %v2840_v2 = vrot.slane %v4509_v20, %v5838_v62  ;;  %v2845_v34 = vrot.slane %v4510_v3, %v5838_v62  ;;  %v4304_v45 = vpack.c.bf16 %v3931_v30, %v3930_v46  ;;  %v2327_v52 = vand.u32 2147483647, %v2326_v21 }
0x1044   :  { %4302 = vmatpush3.bf16.msra.mxu0 %v4301_v28  ;;  %v2785_v5 = vadd.s32 1, %v5827_v10  ;;  %v2211_v14 = vxor.u32 2147483648, %v5800_v9  ;;  %v2213_v50 = vsub.s32 4, %v5528_v7  ;;  %v2329_v38 = vcvt.s32.f32 %v2322_v4 }
0x1045   :  { %4303 = vmatprep.subr.bf16.mxu0 %v4873_v53  ;;  %v2841_v13 = vmul.f32 %v2840_v2, %v5308_v43  ;;  %v2444_v39 = vadd.s32 127, %v2443_v15  ;;  %v2782_v47 = vmul.u32 %v2775_v56, %v2766_v17  ;;  %vm2784_vm9 = vc.u32 %v5842_v0, %v5826_v44 }
0x1046   :  { %v4091_v57 = vadd.s32 4294967294, %v2555_v12  ;;  %v2675_v59 = vclz %v4094_v6  ;;  %v2786_v46 = vsel %vm2784_vm9, %v2785_v5, %v5827_v10  ;;  %v2330_v30 = vmul.f32 %v2329_v38, %v2327_v52 }
0x1047   :  { %v5857_v21 = vadd.f32 %v2845_v34, %v2841_v13  ;;  %v2787_v40 = vadd.s32 %v2786_v46, %v2782_v47  ;;  %vm2129_vm10 = vcmp.lt.s32.totalorder %v5318_v51, 0  ;;  %v2333_v28 = vsub.s32 4, %v5636_v18 }
0x1048   :  { %4305 = vmatpush3.bf16.msra.mxu0 %v4304_v45  ;;  %v2212_v4 = vsel %vm2129_vm10, %v2211_v14, %v5800_v9  ;;  %v5864_v56 = vsel %vm2129_vm10, %v2213_v50, %v5528_v7  ;;  %v2439_v15 = vsub.s32 32, %v5805_v25  ;;  %v2445_v10 = vshll.u32 %v2444_v39, 23 }
0x1049   :  { %v2850_v43 = vand.u32 2139095040, %v5857_v21  ;;  %v2788_v12 = vadd.s32 536870912, %v2787_v40  ;;  %vm4092_vm11 = vcmp.lt.s32.totalorder %v4091_v57, 0  ;;  %v4095_v6 = vadd.s32 4294967294, %v2675_v59 }
0x104a   :  { %v6977_v53 = vand.u32 2147483647, %v5318_v51  ;;  %vm2249_vm13 = vcmp.lt.s32.totalorder %v5333_v1, 0  ;;  %v2331_v20 = vxor.u32 2147483648, %v2330_v30  ;;  %v2423_v3 = vadd.s32 %v5610_v8, %v5616_v48 }
0x104b   :  { %v2851_v42 = vshrl.u32 %v2850_v43, 23  ;;  %v5874_v9 = vshrl.u32 %v2788_v12, 30  ;;  %v5882_v2 = vsel %vm2249_vm13, %v2333_v28, %v5636_v18  ;;  %v6980_v52 = vand.u32 2147483647, %v5333_v1 }
0x104c   :  { %vm5869_vm12 = vcmp.le.f32.partialorder %v6977_v53, 0.7853982  ;;  %v5895_v14 = vsel %vm4092_vm11, 0, %v4091_v57  ;;  %v2441_v18 = vshrl.u32 %v2423_v3, %v2439_v15  ;;  %v5898_v13 = vor.u32 4788187, %v2445_v10 }
0x104d   :  { %v2215_v7 = vsel %vm5869_vm12, %v5318_v51, %v2212_v4  ;;  %v4101_v34 = vadd.s32 4294967169, %v2851_v42  ;;  %vm5891_vm14 = vcmp.le.f32.partialorder %v6980_v52, 0.7853982  ;;  %v2790_v50 = vshll.u32 %v5874_v9, 30 }
0x104e   :  { %vm4096_vm15 = vcmp.lt.s32.totalorder %v4095_v6, 0  ;;  %4449 = vcosq.f32 %v2215_v7  ;;  %v2332_v48 = vsel %vm2249_vm13, %v2331_v20, %v2330_v30  ;;  %v2440_v47 = vshll.u32 %v5748_v32, %v5805_v25 }
0x104f   :  { %v2857_v8 = vadd.s32 1, %v4101_v34  ;;  %v5905_v39 = vsub.s32 %v2787_v40, %v2790_v50  ;;  %4451 = vsinq.f32 %v2215_v7  ;;  %v2563_v57 = vsub.s32 4294967266, %v5895_v14 }
0x1050   :  { %v5910_v59 = vsel %vm4096_vm15, 0, %v4095_v6  ;;  %v6943_v28 = vand.u32 2147483647, %v5857_v21  ;;  %v5917_v43 = vsel %vm5891_vm14, %v5333_v1, %v2332_v48  ;;  %v5919_v40 = vor.u32 %v2441_v18, %v2440_v47 }
0x1051   :  { %vm2858_vm0 = vcmp.gt.s32.totalorder %v2857_v8, 0  ;;  %v2793_v46 = vsub.s32 0, %v5905_v39  ;;  %v2543_v25 = vadd.s32 %v5696_v54, %v5702_v27  ;;  %v2559_v15 = vsub.s32 32, %v5895_v14 }
0x1052   :  { %v2859_v30 = vsel %vm2858_vm0, %v2857_v8, 0  ;;  %v2560_v12 = vshll.u32 %v5781_v16, %v5895_v14  ;;  %v2564_v6 = vadd.s32 127, %v2563_v57  ;;  %v2663_v42 = vadd.s32 %v5759_v29, %v5765_v37 }
0x1053   :  { %v2861_v32 = vand.u32 31, %v2859_v30  ;;  %v4098_v10 = vmin.u32 %v2793_v46, %v5905_v39  ;;  %v2683_v53 = vsub.s32 4294967266, %v5910_v59  ;;  %v2854_v3 = vand.u32 8388607, %v6943_v28 }
0x1054   :  { %v2860_v34 = vshrl.u32 %v2859_v30, 5  ;;  %v2565_v8 = vshll.u32 %v2564_v6, 23  ;;  %4453 = vcosq.f32 %v5917_v43  ;;  %vm2369_vm7 = vcmp.lt.s32.totalorder %v5392_v33, 0 }
0x1055   :  { %v2862_v20 = vsub.s32 32, %v2861_v32  ;;  %v2795_v7 = vclz %v4098_v10  ;;  %v2864_v54 = vshll.u32 %v6973_v23, %v2861_v32  ;;  %v2867_v16 = vshll.u32 %v6974_v63, %v2861_v32 }
0x1056   :  { %v2870_v14 = vshll.u32 %v6975_v26, %v2861_v32  ;;  %v2873_v37 = vshll.u32 %v6976_v41, %v2861_v32  ;;  %v2876_v28 = vshll.u32 %v4871_v19, %v2861_v32  ;;  %v2684_v45 = vadd.s32 127, %v2683_v53 }
0x1057   :  { %v2865_v27 = vshrl.u32 %v6974_v63, %v2862_v20  ;;  %v2868_v52 = vshrl.u32 %v6975_v26, %v2862_v20  ;;  %v4099_v50 = vadd.s32 4294967294, %v2795_v7  ;;  %v2871_v29 = vshrl.u32 %v6976_v41, %v2862_v20 }
0x1058   :  { %v2874_v18 = vshrl.u32 %v4871_v19, %v2862_v20  ;;  %v2877_v57 = vshrl.u32 %v6945_v22, %v2862_v20  ;;  %v5942_v46 = vpop.eup %4449  ;;  %v2561_v7 = vshrl.u32 %v2543_v25, %v2559_v15  ;;  %v2855_v41 = vor.u32 8388608, %v2854_v3 }
0x1059   :  { %v2866_v48 = vor.u32 %v2865_v27, %v2864_v54  ;;  %v2869_v47 = vor.u32 %v2868_v52, %v2867_v16  ;;  %vm4100_vm1 = vcmp.lt.s32.totalorder %v4099_v50, 0  ;;  %v2872_v30 = vor.u32 %v2871_v29, %v2870_v14  ;;  %v5945_v38 = vpop.eup %4451 }
0x105a   :  { %v2875_v10 = vor.u32 %v2874_v18, %v2873_v37  ;;  %v5947_v4 = vsel %vm4100_vm1, 0, %v4099_v50  ;;  %v2878_v54 = vor.u32 %v2877_v57, %v2876_v28  ;;  %vm2879_vm2 = vcmp.lt.s32.totalorder %v2860_v34, 1 }
0x105b   :  { %v2803_v6 = vsub.s32 4294967266, %v5947_v4  ;;  %vm2882_vm3 = vcmp.lt.s32.totalorder %v2860_v34, 4  ;;  %v2566_v27 = vor.u32 4788187, %v2565_v8  ;;  %vm2881_vm4 = vcmp.lt.s32.totalorder %v2860_v34, 3 }
0x105c   :  { %v2887_v16 = vsel %vm2879_vm2, %v2866_v48, %v2869_v47  ;;  %v2888_v52 = vsel %vm2882_vm3, %v2875_v10, 920167782  ;;  %v2863_v32 = vshrl.u32 %v6973_v23, %v2862_v20  ;;  %vm2880_vm5 = vcmp.lt.s32.totalorder %v2860_v34, 2 }
0x105d   :  { %v2884_v25 = vsel %vm2882_vm3, %v2872_v30, 2102212464  ;;  %v2889_v15 = vsel %vm2881_vm4, %v2872_v30, %v2888_v52  ;;  %v2679_v53 = vsub.s32 32, %v5910_v59  ;;  %v2891_v28 = vsel %vm2879_vm2, %v2869_v47, %v2872_v30 }
0x105e   :  { %v2890_v3 = vsel %vm2880_vm5, %v2887_v16, %v2889_v15  ;;  %v2895_v14 = vshll.u32 %v2855_v41, 8  ;;  %v2685_v50 = vshll.u32 %v2684_v45, 23  ;;  %v2804_v29 = vadd.s32 127, %v2803_v6 }
0x105f   :  { %v2883_v37 = vsel %vm2879_vm2, %v2863_v32, %v2866_v48  ;;  %v2892_v18 = vsel %vm2882_vm3, %v2878_v54, 1326507024  ;;  %v2885_v20 = vsel %vm2881_vm4, %v2869_v47, %v2884_v25  ;;  %v2449_v16 = vcvt.s32.f32 %v5919_v40 }
0x1060   :  { %v2893_v8 = vsel %vm2881_vm4, %v2875_v10, %v2892_v18  ;;  %v5962_v57 = vmul.u32.u64.low %v2895_v14, %v2890_v3  ;;  %v5963_v22 = vmul.u32.u64.high %v2895_v14, %v2890_v3, %v5962_v57  ;;  %v2562_v30 = vor.u32 %v2561_v7, %v2560_v12 }
0x1061   :  { %v2894_v41 = vsel %vm2880_vm5, %v2891_v28, %v2893_v8  ;;  %v2681_v45 = vshrl.u32 %v2663_v42, %v2679_v53  ;;  %v2799_v48 = vsub.s32 32, %v5947_v4  ;;  %v6983_v47 = vand.u32 2147483647, %v5898_v13  ;;  %v4454_v8 = vpop.eup %4453 }
0x1062   :  { %v5970_v6 = vmul.u32.u64.low %v2895_v14, %v2894_v41  ;;  %v5971_v54 = vmul.u32.u64.high %v2895_v14, %v2894_v41, %v5970_v6  ;;  %v2567_v52 = vand.u32 2147483647, %v2566_v27  ;;  %v2680_v32 = vshll.u32 %v5802_v58, %v5910_v59  ;;  %v5986_v27 = vld [vmem:[#allocation20] sm:$0xff] }
0x1063   :  { %v2450_v10 = vmul.f32 %v2449_v16, %v6983_v47  ;;  %v2886_v25 = vsel %vm2880_vm5, %v2883_v37, %v2885_v20  ;;  %v2686_v15 = vor.u32 4788187, %v2685_v50  ;;  %v2783_v40 = vadd.s32 %v5826_v44, %v5842_v0 }
0x1064   :  { %v2805_v12 = vshll.u32 %v2804_v29, 23  ;;  %v2905_v42 = vadd.s32 1, %v5963_v22  ;;  %v6984_v7 = vsel %vm5869_vm12, 0, %v5864_v56  ;;  %4455 = vsinq.f32 %v5917_v43 }
0x1065   :  { %v2220_v53 = vadd.s32 3, %v6984_v7  ;;  %v2569_v13 = vcvt.s32.f32 %v2562_v30  ;;  %v2682_v58 = vor.u32 %v2681_v45, %v2680_v32  ;;  %v2801_v59 = vshrl.u32 %v2783_v40, %v2799_v48 }
0x1066   :  { %v2902_v34 = vmul.u32 %v2895_v14, %v2886_v25  ;;  %vm2904_vm6 = vc.u32 %v5971_v54, %v5962_v57  ;;  %v6985_v44 = vsel %vm5891_vm14, 0, %v5882_v2  ;;  %v2451_v17 = vxor.u32 2147483648, %v2450_v10 }
0x1067   :  { %v2340_v0 = vadd.s32 3, %v6985_v44  ;;  %v2570_v3 = vmul.f32 %v2569_v13, %v2567_v52  ;;  %v2906_v56 = vsel %vm2904_vm6, %v2905_v42, %v5963_v22  ;;  %v2687_v28 = vand.u32 2147483647, %v2686_v15 }
0x1068   :  { %v2800_v43 = vshll.u32 %v5905_v39, %v5947_v4  ;;  %v2806_v50 = vor.u32 4788187, %v2805_v12  ;;  %v2907_v29 = vadd.s32 %v2906_v56, %v2902_v34  ;;  %v2114_v14 = vrot.slane %v5986_v27, %v5292_v35 }
0x1069   :  { %v2221_v37 = vand.u32 3, %v2220_v53  ;;  %v2234_v5 = vrot.slane %v5986_v27, %v5295_v36  ;;  %v2689_v2 = vcvt.s32.f32 %v2682_v58  ;;  %v2341_v22 = vand.u32 3, %v2340_v0 }
0x106a   :  { %v2802_v18 = vor.u32 %v2801_v59, %v2800_v43  ;;  %v2908_v20 = vadd.s32 536870912, %v2907_v29  ;;  %v2354_v16 = vrot.slane %v5986_v27, %v5322_v49  ;;  %v6986_v39 = vand.u32 2147483647, %v5392_v33 }
0x106b   :  { %v2452_v30 = vsel %vm2369_vm7, %v2451_v17, %v2450_v10  ;;  %v2571_v41 = vxor.u32 2147483648, %v2570_v3  ;;  %v2690_v45 = vmul.f32 %v2689_v2, %v2687_v28  ;;  %v2807_v48 = vand.u32 2147483647, %v2806_v50 }
0x106c   :  { %vm6006_vm8 = vcmp.le.f32.partialorder %v6986_v39, 0.7853982  ;;  %v6012_v6 = vshrl.u32 %v2908_v20, 30  ;;  %vm2222_vm9 = vcmp.lt.s32.totalorder %v2221_v37, 2  ;;  %vm2223_vm10 = vcmp.eq.s32.totalorder %v2221_v37, 0 }
0x106d   :  { %v2224_v47 = vxor.u32 2147483648, %v5945_v38  ;;  %v2227_v52 = vxor.u32 2147483648, %v5942_v46  ;;  %v2453_v32 = vsub.s32 4, %v5714_v61  ;;  %v2455_v25 = vsel %vm6006_vm8, %v5392_v33, %v2452_v30 }
0x106e   :  { %v2809_v15 = vcvt.s32.f32 %v2802_v18  ;;  %v2910_v10 = vshll.u32 %v6012_v6, 30  ;;  %v4456_v40 = vpop.eup %4455  ;;  %vm2219_vm11 = vweird.f32 %v5318_v51  ;;  %vm2226_vm12 = vcmp.eq.s32.totalorder %v2221_v37, 2  ;;  %v4072_v18 = vld [vmem:[#allocation22] ss:$0 sm:$0xff] }
0x106f   :  { %vm2343_vm13 = vcmp.eq.s32.totalorder %v2341_v22, 0  ;;  %v6989_v12 = vand.u32 2147483647, %v5525_v60  ;;  %vm2489_vm15 = vcmp.lt.s32.totalorder %v5525_v60, 0  ;;  %v2691_v53 = vxor.u32 2147483648, %v2690_v45 }
0x1070   :  { %v2572_v7 = vsel %vm2489_vm15, %v2571_v41, %v2570_v3  ;;  %v2810_v13 = vmul.f32 %v2809_v15, %v2807_v48  ;;  %v6031_v58 = vsub.s32 %v2907_v29, %v2910_v10  ;;  %v2225_v59 = vsel %vm2223_vm10, %v5942_v46, %v2224_v47  ;;  %v6995_v41 = vld [vmem:[#allocation36_spill] sm:$0xff] }
0x1071   :  { %vm6024_vm14 = vcmp.le.f32.partialorder %v6989_v12, 0.7853982  ;;  %v2228_v34 = vsel %vm2226_vm12, %v2227_v52, %v5945_v38  ;;  %v2347_v44 = vxor.u32 2147483648, %v4454_v8  ;;  %4457 = vcosq.f32 %v2455_v25 }
0x1072   :  { %v2344_v0 = vxor.u32 2147483648, %v4456_v40  ;;  %v2454_v17 = vsel %vm2369_vm7, %v2453_v32, %v5714_v61  ;;  %4459 = vsinq.f32 %v2455_v25  ;;  %v2913_v56 = vsub.s32 0, %v6031_v58 }
0x1073   :  { %v2115_v3 = vmul.f32 %v2114_v14, %v5572_v55  ;;  %vm2346_vm0 = vcmp.eq.s32.totalorder %v2341_v22, 2  ;;  %v2575_v28 = vsel %vm6024_vm14, %v5525_v60, %v2572_v7  ;;  %vm2609_vm1 = vcmp.lt.s32.totalorder %v5633_v11, 0 }
0x1074   :  { %v6992_v38 = vand.u32 2147483647, %v5633_v11  ;;  %v2692_v61 = vsel %vm2609_vm1, %v2691_v53, %v2690_v45  ;;  %v2811_v43 = vxor.u32 2147483648, %v2810_v13  ;;  %v4102_v50 = vmin.u32 %v2913_v56, %v6031_v58 }
0x1075   :  { %v2229_v55 = vsel %vm2222_vm9, %v2225_v59, %v2228_v34  ;;  %v2348_v29 = vsel %vm2346_vm0, %v2347_v44, %v4456_v40  ;;  %v2456_v14 = vsel %vm6006_vm8, 0, %v2454_v17  ;;  %v2573_v2 = vsub.s32 4, %v5771_v24 }
0x1076   :  { %vm6047_vm2 = vcmp.le.f32.partialorder %v6992_v38, 0.7853982  ;;  %v2345_v20 = vsel %vm2343_vm13, %v4454_v8, %v2344_v0  ;;  %4461 = vcosq.f32 %v2575_v28  ;;  %v2693_v39 = vsub.s32 4, %v5783_v31 }
0x1077   :  { %v2915_v30 = vclz %v4102_v50  ;;  %vm2339_vm3 = vweird.f32 %v5333_v1  ;;  %4463 = vsinq.f32 %v2575_v28  ;;  %v2695_v37 = vsel %vm6047_vm2, %v5633_v11, %v2692_v61 }
0x1078   :  { %vm2729_vm4 = vcmp.lt.s32.totalorder %v6995_v41, 0  ;;  %v2230_v4 = vsel %vm2219_vm11, nan, %v2229_v55  ;;  %vm2342_vm5 = vcmp.lt.s32.totalorder %v2341_v22, 2  ;;  %v2116_v48 = vadd.f32 %v4072_v18, %v2115_v3 }
0x1079   :  { %v2812_v8 = vsel %vm2729_vm4, %v2811_v43, %v2810_v13  ;;  %v4103_v45 = vadd.s32 4294967294, %v2915_v30  ;;  %v2349_v47 = vsel %vm2342_vm5, %v2345_v20, %v2348_v29  ;;  %v2460_v52 = vadd.s32 3, %v2456_v14 }
0x107a   :  { %v2574_v32 = vsel %vm2489_vm15, %v2573_v2, %v5771_v24  ;;  %v2694_v25 = vsel %vm2609_vm1, %v2693_v39, %v5783_v31  ;;  %4465 = vcosq.f32 %v2695_v37  ;;  %v6996_v51 = vand.u32 2147483647, %v6995_v41 }
0x107b   :  { %vm4104_vm7 = vcmp.lt.s32.totalorder %v4103_v45, 0  ;;  %v4458_v15 = vpop.eup %4457  ;;  %v2235_v10 = vmul.f32 %v2234_v5, %v2230_v4  ;;  %4467 = vsinq.f32 %v2695_v37  ;;  %v2576_v12 = vsel %vm6024_vm14, 0, %v2574_v32 }
0x107c   :  { %vm6077_vm6 = vcmp.le.f32.partialorder %v6996_v51, 0.7853982  ;;  %v2918_v40 = vsel %vm4104_vm7, 0, %v4103_v45  ;;  %v4460_v31 = vpop.eup %4459  ;;  %v2903_v7 = vadd.s32 %v5962_v57, %v5971_v54  ;;  %v2350_v59 = vsel %vm2339_vm3, nan, %v2349_v47 }
0x107d   :  { %v2815_v24 = vsel %vm6077_vm6, %v6995_v41, %v2812_v8  ;;  %v2919_v53 = vsub.s32 32, %v2918_v40  ;;  %v2923_v13 = vsub.s32 4294967266, %v2918_v40  ;;  %v2461_v34 = vand.u32 3, %v2460_v52 }
0x107e   :  { %v2696_v5 = vsel %vm6047_vm2, 0, %v2694_v25  ;;  %v2813_v44 = vsub.s32 4, %v5874_v9  ;;  %4469 = vcosq.f32 %v2815_v24  ;;  %v2920_v0 = vshll.u32 %v6031_v58, %v2918_v40 }
0x107f   :  { %v2921_v17 = vshrl.u32 %v2903_v7, %v2919_v53  ;;  %v2924_v42 = vadd.s32 127, %v2923_v13  ;;  %v2464_v56 = vxor.u32 2147483648, %v4460_v31  ;;  %v2467_v3 = vxor.u32 2147483648, %v4458_v15 }
0x1080   :  { %v2580_v28 = vadd.s32 3, %v2576_v12  ;;  %4471 = vsinq.f32 %v2815_v24  ;;  %v4462_v57 = vpop.eup %4461  ;;  %v2236_v61 = vadd.f32 %v2235_v10, %v2116_v48  ;;  %vm2459_vm8 = vweird.f32 %v5392_v33 }
0x1081   :  { %v2922_v54 = vor.u32 %v2921_v17, %v2920_v0  ;;  %v2925_v38 = vshll.u32 %v2924_v42, 23  ;;  %v4464_v1 = vpop.eup %4463  ;;  %v2700_v46 = vadd.s32 3, %v2696_v5  ;;  %v2814_v43 = vsel %vm2729_vm4, %v2813_v44, %v5874_v9  ;;  %v6999_v9 = vld [vmem:[#allocation32_spill] sm:$0xff] }
0x1082   :  { %v2355_v58 = vmul.f32 %v2354_v16, %v2350_v59  ;;  %vm2463_vm9 = vcmp.eq.s32.totalorder %v2461_v34, 0  ;;  %vm2466_vm10 = vcmp.eq.s32.totalorder %v2461_v34, 2  ;;  %v2581_v14 = vand.u32 3, %v2580_v28 }
0x1083   :  { %v2926_v50 = vor.u32 4788187, %v2925_v38  ;;  %v2465_v55 = vsel %vm2463_vm9, %v4458_v15, %v2464_v56  ;;  %v2468_v29 = vsel %vm2466_vm10, %v2467_v3, %v4460_v31  ;;  %v2587_v2 = vxor.u32 2147483648, %v4462_v57  ;;  %v7003_v56 = vld [vmem:[#allocation33_spill] sm:$0xff] }
0x1084   :  { %v4466_v18 = vpop.eup %4465  ;;  %v2584_v20 = vxor.u32 2147483648, %v4464_v1  ;;  %v2816_v39 = vsel %vm6077_vm6, 0, %v2814_v43  ;;  %v2929_v37 = vcvt.s32.f32 %v2922_v54  ;;  %vm2462_vm11 = vcmp.lt.s32.totalorder %v2461_v34, 2  ;;  %v7004_v43 = vld [vmem:[#allocation34_spill] sm:$0xff] }
0x1085   :  { %v2927_v30 = vand.u32 2147483647, %v2926_v50  ;;  %v4468_v4 = vpop.eup %4467  ;;  %v2474_v8 = vrot.slane %v5986_v27, %v6999_v9  ;;  %vm2579_vm12 = vweird.f32 %v5525_v60  ;;  %v2701_v16 = vand.u32 3, %v2700_v46 }
0x1086   :  { %v2356_v45 = vadd.f32 %v2355_v58, %v2236_v61  ;;  %v2469_v48 = vsel %vm2462_vm11, %v2465_v55, %v2468_v29  ;;  %v2933_v52 = vsub.s32 4, %v6012_v6  ;;  %vm2583_vm13 = vcmp.eq.s32.totalorder %v2581_v14, 0 }
0x1087   :  { %v2930_v47 = vmul.f32 %v2929_v37, %v2927_v30  ;;  %vm2586_vm14 = vcmp.eq.s32.totalorder %v2581_v14, 2  ;;  %v2707_v32 = vxor.u32 2147483648, %v4466_v18  ;;  %v2820_v25 = vadd.s32 3, %v2816_v39 }
0x1088   :  { %v4470_v51 = vpop.eup %4469  ;;  %v2585_v22 = vsel %vm2583_vm13, %v4462_v57, %v2584_v20  ;;  %v2588_v15 = vsel %vm2586_vm14, %v2587_v2, %v4464_v1  ;;  %v2704_v10 = vxor.u32 2147483648, %v4468_v4  ;;  %v2470_v31 = vsel %vm2459_vm8, nan, %v2469_v48  ;;  %v7005_v2 = vld [vmem:[#allocation35_spill] sm:$0xff] }
0x1089   :  { %v2931_v24 = vxor.u32 2147483648, %v2930_v47  ;;  %vm2582_vm15 = vcmp.lt.s32.totalorder %v2581_v14, 2  ;;  %vm2703_vm0 = vcmp.eq.s32.totalorder %v2701_v16, 0  ;;  %vm2849_vm1 = vcmp.lt.s32.totalorder %v5857_v21, 0 }
0x108a   :  { %v4472_v40 = vpop.eup %4471  ;;  %vm2706_vm2 = vcmp.eq.s32.totalorder %v2701_v16, 2  ;;  %v7000_v12 = vand.u32 2147483647, %v5857_v21  ;;  %v2934_v13 = vsel %vm2849_vm1, %v2933_v52, %v6012_v6  ;;  %v2589_v59 = vsel %vm2582_vm15, %v2585_v22, %v2588_v15 }
0x108b   :  { %v2932_v53 = vsel %vm2849_vm1, %v2931_v24, %v2930_v47  ;;  %v2708_v34 = vsel %vm2706_vm2, %v2707_v32, %v4468_v4  ;;  %v2821_v5 = vand.u32 3, %v2820_v25  ;;  %v2705_v44 = vsel %vm2703_vm0, %v4466_v18, %v2704_v10  ;;  %v6143_v25 = vld [vmem:[#allocation19 + $0x8] sm:$0xff] }
0x108c   :  { %vm6115_vm3 = vcmp.le.f32.partialorder %v7000_v12, 0.7853982  ;;  %v2824_v0 = vxor.u32 2147483648, %v4472_v40  ;;  %v2827_v17 = vxor.u32 2147483648, %v4470_v51  ;;  %v2475_v42 = vmul.f32 %v2474_v8, %v2470_v31 }
0x108d   :  { %v2935_v33 = vsel %vm6115_vm3, %v5857_v21, %v2932_v53  ;;  %v2594_v3 = vrot.slane %v5986_v27, %v7003_v56  ;;  %v2936_v28 = vsel %vm6115_vm3, 0, %v2934_v13  ;;  %v2590_v6 = vsel %vm2579_vm12, nan, %v2589_v59 }
0x108e   :  { %4473 = vcosq.f32 %v2935_v33  ;;  %vm2702_vm4 = vcmp.lt.s32.totalorder %v2701_v16, 2  ;;  %v2476_v57 = vadd.f32 %v2475_v42, %v2356_v45  ;;  %vm2823_vm5 = vcmp.eq.s32.totalorder %v2821_v5, 0 }
0x108f   :  { %4475 = vsinq.f32 %v2935_v33  ;;  %v2709_v54 = vsel %vm2702_vm4, %v2705_v44, %v2708_v34  ;;  %vm2826_vm6 = vcmp.eq.s32.totalorder %v2821_v5, 2  ;;  %v2825_v38 = vsel %vm2823_vm5, %v4470_v51, %v2824_v0 }
0x1090   :  { %v2828_v1 = vsel %vm2826_vm6, %v2827_v17, %v4472_v40  ;;  %v2940_v61 = vadd.s32 3, %v2936_v28  ;;  %v2595_v46 = vmul.f32 %v2594_v3, %v2590_v6  ;;  %vm2699_vm7 = vweird.f32 %v5633_v11 }
0x1091   :  { %v2714_v58 = vrot.slane %v5986_v27, %v7004_v43  ;;  %v2710_v50 = vsel %vm2699_vm7, nan, %v2709_v54  ;;  %vm2822_vm8 = vcmp.lt.s32.totalorder %v2821_v5, 2  ;;  %vm2819_vm9 = vweird.f32 %v6995_v41  ;;  %v6140_v41 = vld [vmem:[%s6910_s11 + $0x8] sm:$0xff] }
0x1092   :  { %v2596_v55 = vadd.f32 %v2595_v46, %v2476_v57  ;;  %v2829_v29 = vsel %vm2822_vm8, %v2825_v38, %v2828_v1  ;;  %v2941_v60 = vand.u32 3, %v2940_v61  ;;  %v2834_v18 = vrot.slane %v5986_v27, %v7005_v2 }
0x1093   :  { %v2715_v14 = vmul.f32 %v2714_v58, %v2710_v50  ;;  %v2830_v39 = vsel %vm2819_vm9, nan, %v2829_v29  ;;  %v2954_v45 = vrot.slane %v5986_v27, %v5838_v62  ;;  %vm2939_vm13 = vweird.f32 %v5857_v21 }
0x1094   :  { %vm2946_vm10 = vcmp.eq.s32.totalorder %v2941_v60, 2  ;;  %v2835_v8 = vmul.f32 %v2834_v18, %v2830_v39  ;;  %vm2943_vm11 = vcmp.eq.s32.totalorder %v2941_v60, 0  ;;  %vm2942_vm12 = vcmp.lt.s32.totalorder %v2941_v60, 2 }
0x1095   :  { %v2716_v37 = vadd.f32 %v2715_v14, %v2596_v55  ;;  %v2971_v22 = vrot.slane %v6140_v41, %v5292_v35  ;;  %v3091_v27 = vrot.slane %v6140_v41, %v5295_v36  ;;  %v2976_v10 = vrot.slane %v6143_v25, %v5292_v35 }
0x1096   :  { %v3096_v24 = vrot.slane %v6143_v25, %v5295_v36  ;;  %v3211_v5 = vrot.slane %v6140_v41, %v5322_v49  ;;  %v3216_v42 = vrot.slane %v6143_v25, %v5322_v49  ;;  %v7006_v60 = vmov 2102212464  }
0x1097   :  { %v2836_v47 = vadd.f32 %v2835_v8, %v2716_v37 }
0x1098   :  { %v4474_v20 = vpop.eup %4473 }
0x1099   :  { %v4476_v30 = vpop.eup %4475  ;;  %v2947_v4 = vxor.u32 2147483648, %v4474_v20 }
0x109a   :  { %v2944_v11 = vxor.u32 2147483648, %v4476_v30 }
0x109b   :  { %v2948_v16 = vsel %vm2946_vm10, %v2947_v4, %v4476_v30  ;;  %v7007_v30 = vmov 1326507024  }
0x109c   :  { %v2945_v48 = vsel %vm2943_vm11, %v4474_v20, %v2944_v11 }
0x109d   :  { %v2949_v52 = vsel %vm2942_vm12, %v2945_v48, %v2948_v16 }
0x109e   :  { %v2950_v32 = vsel %vm2939_vm13, nan, %v2949_v52 }
0x109f   :  { %v2955_v51 = vmul.f32 %v2954_v45, %v2950_v32 }
0x10a1   :  { %v6149_v15 = vadd.f32 %v2955_v51, %v2836_v47 }
0x10a3   :  { %v2972_v21 = vmul.f32 %v2971_v22, %v6149_v15  ;;  %v3092_v40 = vmul.f32 %v3091_v27, %v6149_v15  ;;  %v3212_v17 = vmul.f32 %v3211_v5, %v6149_v15 }
0x10a5   :  { %v6157_v31 = vadd.f32 %v2976_v10, %v2972_v21  ;;  %v6159_v12 = vadd.f32 %v3096_v24, %v3092_v40  ;;  %v6171_v38 = vadd.f32 %v3216_v42, %v3212_v17 }
0x10a7   :  { %v2981_v7 = vand.u32 2139095040, %v6157_v31  ;;  %v3101_v53 = vand.u32 2139095040, %v6159_v12  ;;  %v2978_v33 = vand.u32 2147483647, %v6157_v31  ;;  %v3221_v42 = vand.u32 2139095040, %v6171_v38 }
0x10a8   :  { %vm2980_vm12 = vcmp.lt.s32.totalorder %v6157_v31, 0 }
0x10a9   :  { %v2982_v13 = vshrl.u32 %v2981_v7, 23  ;;  %v3102_v34 = vshrl.u32 %v3101_v53, 23  ;;  %v2985_v3 = vand.u32 8388607, %v2978_v33  ;;  %vm6264_vm11 = vcmp.le.f32.partialorder %v2978_v33, 0.7853982 }
0x10ab   :  { %v4107_v59 = vadd.s32 4294967169, %v2982_v13  ;;  %v4111_v0 = vadd.s32 4294967169, %v3102_v34  ;;  %v2986_v1 = vor.u32 8388608, %v2985_v3 }
0x10ad   :  { %v2988_v44 = vadd.s32 1, %v4107_v59  ;;  %v3108_v54 = vadd.s32 1, %v4111_v0  ;;  %v3026_v32 = vshll.u32 %v2986_v1, 8  ;;  %v3222_v1 = vshrl.u32 %v3221_v42, 23 }
0x10af   :  { %vm2989_vm14 = vcmp.gt.s32.totalorder %v2988_v44, 0  ;;  %vm3109_vm15 = vcmp.gt.s32.totalorder %v3108_v54, 0 }
0x10b0   :  { %v2990_v28 = vsel %vm2989_vm14, %v2988_v44, 0  ;;  %v3110_v21 = vsel %vm3109_vm15, %v3108_v54, 0 }
0x10b1   :  { %v2992_v6 = vand.u32 31, %v2990_v28  ;;  %v2991_v61 = vshrl.u32 %v2990_v28, 5  ;;  %v3112_v0 = vand.u32 31, %v3110_v21 }
0x10b3   :  { %v2993_v57 = vsub.s32 32, %v2992_v6  ;;  %v2995_v46 = vshll.u32 %v6973_v23, %v2992_v6  ;;  %v2998_v58 = vshll.u32 %v6974_v63, %v2992_v6  ;;  %v3001_v29 = vshll.u32 %v6975_v26, %v2992_v6 }
0x10b4   :  { %v3004_v18 = vshll.u32 %v7006_v60, %v2992_v6  ;;  %v3007_v39 = vshll.u32 %v4871_v19, %v2992_v6  ;;  %vm3010_vm0 = vcmp.lt.s32.totalorder %v2991_v61, 1  ;;  %vm3013_vm1 = vcmp.lt.s32.totalorder %v2991_v61, 4 }
0x10b5   :  { %v2996_v50 = vshrl.u32 %v6974_v63, %v2993_v57  ;;  %v2999_v55 = vshrl.u32 %v6975_v26, %v2993_v57  ;;  %v3002_v14 = vshrl.u32 %v7006_v60, %v2993_v57  ;;  %v3005_v20 = vshrl.u32 %v4871_v19, %v2993_v57 }
0x10b6   :  { %v3008_v37 = vshrl.u32 %v7007_v30, %v2993_v57  ;;  %v2994_v51 = vshrl.u32 %v6973_v23, %v2993_v57  ;;  %vm3012_vm2 = vcmp.lt.s32.totalorder %v2991_v61, 3  ;;  %vm3011_vm3 = vcmp.lt.s32.totalorder %v2991_v61, 2 }
0x10b7   :  { %v2997_v4 = vor.u32 %v2996_v50, %v2995_v46  ;;  %v3000_v11 = vor.u32 %v2999_v55, %v2998_v58  ;;  %v3003_v8 = vor.u32 %v3002_v14, %v3001_v29  ;;  %v3006_v16 = vor.u32 %v3005_v20, %v3004_v18 }
0x10b8   :  { %v3009_v45 = vor.u32 %v3008_v37, %v3007_v39  ;;  %v3113_v6 = vsub.s32 32, %v3112_v0  ;;  %v3331_v58 = vrot.slane %v6140_v41, %v6999_v9  ;;  %v6951_v50 = vand.u32 2147483647, %v6159_v12 }
0x10b9   :  { %v3015_v48 = vsel %vm3013_vm1, %v3003_v8, 2102212464  ;;  %v3018_v47 = vsel %vm3010_vm0, %v2997_v4, %v3000_v11  ;;  %v3022_v52 = vsel %vm3010_vm0, %v3000_v11, %v3003_v8  ;;  %v3019_v22 = vsel %vm3013_vm1, %v3006_v16, 920167782 }
0x10ba   :  { %v3023_v27 = vsel %vm3013_vm1, %v3009_v45, 1326507024  ;;  %v3020_v10 = vsel %vm3012_vm2, %v3003_v8, %v3019_v22  ;;  %v3014_v40 = vsel %vm3010_vm0, %v2994_v51, %v2997_v4  ;;  %v3016_v7 = vsel %vm3012_vm2, %v3000_v11, %v3015_v48 }
0x10bb   :  { %v3024_v24 = vsel %vm3012_vm2, %v3006_v16, %v3023_v27  ;;  %v3021_v53 = vsel %vm3011_vm3, %v3018_v47, %v3020_v10  ;;  %v3017_v17 = vsel %vm3011_vm3, %v3014_v40, %v3016_v7  ;;  %v3125_v46 = vshrl.u32 %v4871_v19, %v3113_v6 }
0x10bc   :  { %v3025_v13 = vsel %vm3011_vm3, %v3022_v52, %v3024_v24  ;;  %v6188_v5 = vmul.u32.u64.low %v3026_v32, %v3021_v53  ;;  %v6189_v44 = vmul.u32.u64.high %v3026_v32, %v3021_v53, %v6188_v5  ;;  %v3033_v28 = vmul.u32 %v3026_v32, %v3017_v17 }
0x10bd   :  { %v6185_v59 = vmul.u32.u64.low %v3026_v32, %v3025_v13  ;;  %v6186_v34 = vmul.u32.u64.high %v3026_v32, %v3025_v13, %v6185_v59  ;;  %v3128_v55 = vshrl.u32 %v7007_v30, %v3113_v6  ;;  %v6202_v14 = vshrl.u32 %v3110_v21, 5 }
0x10be   :  { %v3036_v3 = vadd.s32 1, %v6189_v44  ;;  %v3124_v18 = vshll.u32 %v7006_v60, %v3112_v0  ;;  %v4115_v20 = vadd.s32 4294967169, %v3222_v1  ;;  %v3116_v39 = vshrl.u32 %v6974_v63, %v3113_v6 }
0x10bf   :  { %vm3035_vm4 = vc.u32 %v6186_v34, %v6188_v5  ;;  %v3119_v37 = vshrl.u32 %v6975_v26, %v3113_v6  ;;  %v3122_v4 = vshrl.u32 %v7006_v60, %v3113_v6  ;;  %v3127_v11 = vshll.u32 %v4871_v19, %v3112_v0 }
0x10c0   :  { %v3037_v57 = vsel %vm3035_vm4, %v3036_v3, %v6189_v44  ;;  %v3126_v16 = vor.u32 %v3125_v46, %v3124_v18  ;;  %v3332_v45 = vmul.f32 %v3331_v58, %v6149_v15  ;;  %v3336_v48 = vrot.slane %v6143_v25, %v6999_v9 }
0x10c1   :  { %v3038_v54 = vadd.s32 %v3037_v57, %v3033_v28  ;;  %v3115_v47 = vshll.u32 %v6973_v23, %v3112_v0  ;;  %v3118_v52 = vshll.u32 %v6974_v63, %v3112_v0  ;;  %v3121_v32 = vshll.u32 %v6975_v26, %v3112_v0 }
0x10c2   :  { %v3129_v51 = vor.u32 %v3128_v55, %v3127_v11  ;;  %v3105_v27 = vand.u32 8388607, %v6951_v50  ;;  %v3228_v10 = vadd.s32 1, %v4115_v20  ;;  %vm3133_vm5 = vcmp.lt.s32.totalorder %v6202_v14, 4 }
0x10c3   :  { %v3039_v61 = vadd.s32 536870912, %v3038_v54  ;;  %v3117_v24 = vor.u32 %v3116_v39, %v3115_v47  ;;  %v3120_v21 = vor.u32 %v3119_v37, %v3118_v52  ;;  %v3123_v40 = vor.u32 %v3122_v4, %v3121_v32 }
0x10c4   :  { %v3139_v53 = vsel %vm3133_vm5, %v3126_v16, 920167782  ;;  %v6221_v13 = vadd.f32 %v3336_v48, %v3332_v45  ;;  %v3143_v59 = vsel %vm3133_vm5, %v3129_v51, 1326507024  ;;  %vm3130_vm6 = vcmp.lt.s32.totalorder %v6202_v14, 1 }
0x10c5   :  { %v6200_v29 = vshrl.u32 %v3039_v61, 30  ;;  %vm3132_vm7 = vcmp.lt.s32.totalorder %v6202_v14, 3  ;;  %v3106_v0 = vor.u32 8388608, %v3105_v27  ;;  %v3138_v17 = vsel %vm3130_vm6, %v3117_v24, %v3120_v21 }
0x10c6   :  { %v3140_v42 = vsel %vm3132_vm7, %v3123_v40, %v3139_v53  ;;  %vm3229_vm8 = vcmp.gt.s32.totalorder %v3228_v10, 0  ;;  %v3142_v28 = vsel %vm3130_vm6, %v3120_v21, %v3123_v40  ;;  %v3144_v57 = vsel %vm3132_vm7, %v3126_v16, %v3143_v59 }
0x10c7   :  { %v3041_v8 = vshll.u32 %v6200_v29, 30  ;;  %vm3131_vm9 = vcmp.lt.s32.totalorder %v6202_v14, 2  ;;  %v3230_v46 = vsel %vm3229_vm8, %v3228_v10, 0  ;;  %v6241_v55 = vshll.u32 %v3106_v0, 8 }
0x10c8   :  { %v3141_v61 = vsel %vm3131_vm9, %v3138_v17, %v3140_v42  ;;  %v3145_v58 = vsel %vm3131_vm9, %v3142_v28, %v3144_v57  ;;  %v3034_v18 = vadd.s32 %v6188_v5, %v6186_v34  ;;  %v3232_v11 = vand.u32 31, %v3230_v46 }
0x10c9   :  { %v3042_v22 = vsub.s32 %v3038_v54, %v3041_v8  ;;  %v3341_v54 = vand.u32 2139095040, %v6221_v13  ;;  %v6245_v37 = vmul.u32.u64.low %v6241_v55, %v3141_v61  ;;  %v6246_v4 = vmul.u32.u64.high %v6241_v55, %v3141_v61, %v6245_v37 }
0x10ca   :  { %v6250_v45 = vmul.u32.u64.low %v6241_v55, %v3145_v58  ;;  %v6251_v48 = vmul.u32.u64.high %v6241_v55, %v3145_v58, %v6250_v45  ;;  %v3114_v47 = vshrl.u32 %v6973_v23, %v3113_v6  ;;  %v3135_v34 = vsel %vm3133_vm5, %v3123_v40, 2102212464 }
0x10cb   :  { %v3044_v7 = vsub.s32 0, %v3042_v22  ;;  %v3342_v20 = vshrl.u32 %v3341_v54, 23  ;;  %v6256_v27 = vsub.s32 32, %v3232_v11  ;;  %v3136_v59 = vsel %vm3132_vm7, %v3120_v21, %v3135_v34 }
0x10cc   :  { %v3134_v53 = vsel %vm3130_vm6, %v3114_v47, %v3117_v24  ;;  %v3451_v40 = vrot.slane %v6140_v41, %v7003_v56  ;;  %v6950_v0 = vand.u32 2147483647, %v6171_v38  ;;  %v3156_v17 = vadd.s32 1, %v6246_v4 }
0x10cd   :  { %v4108_v44 = vmin.u32 %v3044_v7, %v3042_v22  ;;  %v4119_v51 = vadd.s32 4294967169, %v3342_v20  ;;  %v3137_v21 = vsel %vm3131_vm9, %v3134_v53, %v3136_v59  ;;  %v6276_v33 = vshrl.u32 %v3230_v46, 5 }
0x10ce   :  { %v3245_v42 = vshrl.u32 %v4871_v19, %v6256_v27  ;;  %vm3155_vm13 = vc.u32 %v6251_v48, %v6245_v37  ;;  %v3248_v57 = vshrl.u32 %v7007_v30, %v6256_v27  ;;  %v3236_v54 = vshrl.u32 %v6974_v63, %v6256_v27 }
0x10cf   :  { %v3046_v3 = vclz %v4108_v44  ;;  %v3348_v24 = vadd.s32 1, %v4119_v51  ;;  %v3244_v61 = vshll.u32 %v7006_v60, %v3232_v11  ;;  %v3242_v58 = vshrl.u32 %v7006_v60, %v6256_v27 }
0x10d0   :  { %v3225_v20 = vand.u32 8388607, %v6950_v0  ;;  %v3157_v45 = vsel %vm3155_vm13, %v3156_v17, %v6246_v4  ;;  %v3241_v47 = vshll.u32 %v6975_v26, %v3232_v11  ;;  %vm3253_vm15 = vcmp.lt.s32.totalorder %v6276_v33, 4 }
0x10d1   :  { %v4109_v1 = vadd.s32 4294967294, %v3046_v3  ;;  %vm3349_vm14 = vcmp.gt.s32.totalorder %v3348_v24, 0  ;;  %vm3250_vm0 = vcmp.lt.s32.totalorder %v6276_v33, 1  ;;  %vm3252_vm1 = vcmp.lt.s32.totalorder %v6276_v33, 3 }
0x10d2   :  { %v3243_v53 = vor.u32 %v3242_v58, %v3241_v47  ;;  %v3456_v6 = vrot.slane %v6143_v25, %v7003_v56  ;;  %vm3251_vm2 = vcmp.lt.s32.totalorder %v6276_v33, 2  ;;  %vm3070_vm3 = vweird.f32 %v6157_v31 }
0x10d3   :  { %vm4110_vm10 = vcmp.lt.s32.totalorder %v4109_v1, 0 }
0x10d4   :  { %v3049_v39 = vsel %vm4110_vm10, 0, %v4109_v1  ;;  %v3239_v1 = vshrl.u32 %v6975_v26, %v6256_v27 }
0x10d5   :  { %v3050_v8 = vsub.s32 32, %v3049_v39  ;;  %v3054_v16 = vsub.s32 4294967266, %v3049_v39  ;;  %v3051_v5 = vshll.u32 %v3042_v22, %v3049_v39  ;;  %v3064_v22 = vsub.s32 4, %v6200_v29 }
0x10d6   :  { %v3238_v39 = vshll.u32 %v6974_v63, %v3232_v11 }
0x10d7   :  { %v3052_v52 = vshrl.u32 %v3034_v18, %v3050_v8  ;;  %v3055_v32 = vadd.s32 127, %v3054_v16  ;;  %v3065_v14 = vsel %vm2980_vm12, %v3064_v22, %v6200_v29  ;;  %v3247_v18 = vshll.u32 %v4871_v19, %v3232_v11 }
0x10d8   :  { %v3235_v29 = vshll.u32 %v6973_v23, %v3232_v11  ;;  %v3246_v8 = vor.u32 %v3245_v42, %v3244_v61  ;;  %v3452_v42 = vmul.f32 %v3451_v40, %v6149_v15  ;;  %v3234_v61 = vshrl.u32 %v6973_v23, %v6256_v27 }
0x10d9   :  { %v3053_v10 = vor.u32 %v3052_v52, %v3051_v5  ;;  %v3056_v7 = vshll.u32 %v3055_v32, 23  ;;  %v3249_v34 = vor.u32 %v3248_v57, %v3247_v18  ;;  %v3067_v5 = vsel %vm6264_vm11, 0, %v3065_v14 }
0x10da   :  { %v3153_v52 = vmul.u32 %v6241_v55, %v3137_v21  ;;  %v3350_v32 = vsel %vm3349_vm14, %v3348_v24, 0  ;;  %v3259_v59 = vsel %vm3253_vm15, %v3246_v8, 920167782  ;;  %v3071_v55 = vadd.s32 3, %v3067_v5 }
0x10db   :  { %v3057_v44 = vor.u32 4788187, %v3056_v7  ;;  %v3060_v28 = vcvt.s32.f32 %v3053_v10  ;;  %v3237_v10 = vor.u32 %v3236_v54, %v3235_v29  ;;  %v3240_v7 = vor.u32 %v3239_v1, %v3238_v39 }
0x10dc   :  { %v6310_v11 = vadd.s32 %v3157_v45, %v3153_v52  ;;  %v3263_v22 = vsel %vm3253_vm15, %v3249_v34, 1326507024  ;;  %v3226_v24 = vor.u32 8388608, %v3225_v20  ;;  %v3260_v17 = vsel %vm3252_vm1, %v3243_v53, %v3259_v59 }
0x10dd   :  { %v3058_v3 = vand.u32 2147483647, %v3057_v44  ;;  %v3352_v44 = vand.u32 31, %v3350_v32  ;;  %v3258_v21 = vsel %vm3250_vm0, %v3237_v10, %v3240_v7  ;;  %v3264_v57 = vsel %vm3252_vm1, %v3246_v8, %v3263_v22 }
0x10de   :  { %v6947_v14 = vand.u32 2147483647, %v6221_v13  ;;  %v3072_v54 = vand.u32 3, %v3071_v55  ;;  %v3261_v40 = vsel %vm3251_vm2, %v3258_v21, %v3260_v17  ;;  %v6340_v58 = vshll.u32 %v3226_v24, 8 }
0x10df   :  { %v3061_v46 = vmul.f32 %v3060_v28, %v3058_v3  ;;  %v3159_v3 = vadd.s32 536870912, %v6310_v11  ;;  %v3262_v28 = vsel %vm3250_vm0, %v3240_v7, %v3243_v53  ;;  %v6332_v1 = vsub.s32 32, %v3352_v44 }
0x10e0   :  { %v6342_v18 = vadd.f32 %v3456_v6, %v3452_v42  ;;  %v3254_v29 = vsel %vm3250_vm0, %v3234_v61, %v3237_v10  ;;  %v3345_v27 = vand.u32 8388607, %v6947_v14  ;;  %vm3073_vm4 = vcmp.lt.s32.totalorder %v3072_v54, 2 }
0x10e1   :  { %v3062_v16 = vxor.u32 2147483648, %v3061_v46  ;;  %v6345_v20 = vshrl.u32 %v3159_v3, 30  ;;  %v6352_v39 = vmul.u32.u64.low %v6340_v58, %v3261_v40  ;;  %v6353_v8 = vmul.u32.u64.high %v6340_v58, %v3261_v40, %v6352_v39 }
0x10e2   :  { %vm3077_vm5 = vcmp.eq.s32.totalorder %v3072_v54, 2  ;;  %v3255_v45 = vsel %vm3253_vm15, %v3243_v53, 2102212464  ;;  %v3356_v52 = vshrl.u32 %v6974_v63, %v6332_v1  ;;  %v3364_v10 = vshll.u32 %v7006_v60, %v3352_v44 }
0x10e3   :  { %v3063_v51 = vsel %vm2980_vm12, %v3062_v16, %v3061_v46  ;;  %v3265_v46 = vsel %vm3251_vm2, %v3262_v28, %v3264_v57  ;;  %v3365_v16 = vshrl.u32 %v4871_v19, %v6332_v1  ;;  %v6371_v22 = vshrl.u32 %v3350_v32, 5 }
0x10e4   :  { %v3066_v4 = vsel %vm6264_vm11, %v6157_v31, %v3063_v51  ;;  %v6361_v47 = vmul.u32.u64.low %v6340_v58, %v3265_v46  ;;  %v6362_v34 = vmul.u32.u64.high %v6340_v58, %v3265_v46, %v6361_v47  ;;  %v3359_v51 = vshrl.u32 %v6975_v26, %v6332_v1 }
0x10e5   :  { %4477 = vcosq.f32 %v3066_v4  ;;  %v3355_v53 = vshll.u32 %v6973_v23, %v3352_v44  ;;  %v3362_v6 = vshrl.u32 %v7006_v60, %v6332_v1  ;;  %v3358_v21 = vshll.u32 %v6974_v63, %v3352_v44 }
0x10e6   :  { %4479 = vsinq.f32 %v3066_v4  ;;  %v3368_v4 = vshrl.u32 %v7007_v30, %v6332_v1  ;;  %v3366_v17 = vor.u32 %v3365_v16, %v3364_v10  ;;  %v3367_v42 = vshll.u32 %v4871_v19, %v3352_v44 }
0x10e7   :  { %vm3074_vm6 = vcmp.eq.s32.totalorder %v3072_v54, 0  ;;  %v3256_v28 = vsel %vm3252_vm1, %v3240_v7, %v3255_v45  ;;  %v3361_v32 = vshll.u32 %v6975_v26, %v3352_v44  ;;  %v3357_v61 = vor.u32 %v3356_v52, %v3355_v53 }
0x10e8   :  { %v3360_v40 = vor.u32 %v3359_v51, %v3358_v21  ;;  %v3369_v46 = vor.u32 %v3368_v4, %v3367_v42  ;;  %vm3373_vm7 = vcmp.lt.s32.totalorder %v6371_v22, 4  ;;  %v3461_v16 = vand.u32 2139095040, %v6342_v18 }
0x10e9   :  { %v3363_v14 = vor.u32 %v3362_v6, %v3361_v32  ;;  %v3379_v7 = vsel %vm3373_vm7, %v3366_v17, 920167782  ;;  %v3161_v44 = vshll.u32 %v6345_v20, 30  ;;  %v3257_v54 = vsel %vm3251_vm2, %v3254_v29, %v3256_v28 }
0x10ea   :  { %vm3275_vm8 = vc.u32 %v6362_v34, %v6352_v39  ;;  %vm3370_vm9 = vcmp.lt.s32.totalorder %v6371_v22, 1  ;;  %vm3372_vm10 = vcmp.lt.s32.totalorder %v6371_v22, 3  ;;  %v3383_v31 = vsel %vm3373_vm7, %v3369_v46, 1326507024 }
0x10eb   :  { %v3462_v45 = vshrl.u32 %v3461_v16, 23  ;;  %v3378_v52 = vsel %vm3370_vm9, %v3357_v61, %v3360_v40  ;;  %v3380_v51 = vsel %vm3372_vm10, %v3363_v14, %v3379_v7  ;;  %v3273_v4 = vmul.u32 %v6340_v58, %v3257_v54 }
0x10ec   :  { %vm3371_vm11 = vcmp.lt.s32.totalorder %v6371_v22, 2  ;;  %v3384_v53 = vsel %vm3372_vm10, %v3366_v17, %v3383_v31  ;;  %v3576_v46 = vrot.slane %v6143_v25, %v7004_v43  ;;  %v6948_v7 = vand.u32 2147483647, %v6342_v18 }
0x10ed   :  { %v4123_v29 = vadd.s32 4294967169, %v3462_v45  ;;  %v3381_v6 = vsel %vm3371_vm11, %v3378_v52, %v3380_v51  ;;  %v3354_v54 = vshrl.u32 %v6973_v23, %v6332_v1  ;;  %v3375_v31 = vsel %vm3373_vm7, %v3363_v14, 2102212464 }
0x10ef   :  { %v4478_v5 = vpop.eup %4477 }
0x10f0   :  { %v4480_v59 = vpop.eup %4479  ;;  %v3078_v55 = vxor.u32 2147483648, %v4478_v5 }
0x10f1   :  { %v3075_v24 = vxor.u32 2147483648, %v4480_v59 }
0x10f2   :  { %v3079_v3 = vsel %vm3077_vm5, %v3078_v55, %v4480_v59  ;;  %v3276_v59 = vadd.s32 1, %v6353_v8  ;;  %v3382_v55 = vsel %vm3370_vm9, %v3360_v40, %v3363_v14 }
0x10f3   :  { %v3076_v57 = vsel %vm3074_vm6, %v4478_v5, %v3075_v24  ;;  %v3346_v5 = vor.u32 8388608, %v3345_v27  ;;  %v6413_v27 = vsub.s32 %v6310_v11, %v3161_v44  ;;  %v3468_v24 = vadd.s32 1, %v4123_v29 }
0x10f4   :  { %v3080_v47 = vsel %vm3073_vm4, %v3076_v57, %v3079_v3  ;;  %v3277_v33 = vsel %vm3275_vm8, %v3276_v59, %v6353_v8  ;;  %v3571_v8 = vrot.slane %v6140_v41, %v7004_v43  ;;  %v3385_v42 = vsel %vm3371_vm11, %v3382_v55, %v3384_v53 }
0x10f5   :  { %v6387_v10 = vsel %vm3070_vm3, nan, %v3080_v47  ;;  %v3278_v21 = vadd.s32 %v3277_v33, %v3273_v4  ;;  %v3386_v58 = vshll.u32 %v3346_v5, 8  ;;  %vm3469_vm12 = vcmp.gt.s32.totalorder %v3468_v24, 0 }
0x10f6   :  { %v3470_v17 = vsel %vm3469_vm12, %v3468_v24, 0  ;;  %v3164_v11 = vsub.s32 0, %v6413_v27  ;;  %v3572_v57 = vmul.f32 %v3571_v8, %v6149_v15  ;;  %v3465_v33 = vand.u32 8388607, %v6948_v7 }
0x10f7   :  { %v6421_v3 = vmul.u32.u64.low %v3386_v58, %v3381_v6  ;;  %v6422_v28 = vmul.u32.u64.high %v3386_v58, %v3381_v6, %v6421_v3  ;;  %v3472_v32 = vand.u32 31, %v3470_v17  ;;  %v3279_v47 = vadd.s32 536870912, %v3278_v21 }
0x10f8   :  { %v6429_v16 = vmul.u32.u64.low %v3386_v58, %v3385_v42  ;;  %v6430_v59 = vmul.u32.u64.high %v3386_v58, %v3385_v42, %v6429_v16  ;;  %v4112_v52 = vmin.u32 %v3164_v11, %v6413_v27  ;;  %v6444_v29 = vadd.f32 %v3576_v46, %v3572_v57 }
0x10f9   :  { %v3473_v44 = vsub.s32 32, %v3472_v32  ;;  %v6440_v51 = vshrl.u32 %v3279_v47, 30  ;;  %v3374_v4 = vsel %vm3370_vm9, %v3354_v54, %v3357_v61  ;;  %v3475_v1 = vshll.u32 %v6973_v23, %v3472_v32 }
0x10fa   :  { %v3478_v14 = vshll.u32 %v6974_v63, %v3472_v32  ;;  %v3376_v53 = vsel %vm3372_vm10, %v3360_v40, %v3375_v31  ;;  %v3396_v6 = vadd.s32 1, %v6422_v28  ;;  %v3471_v24 = vshrl.u32 %v3470_v17, 5 }
0x10fb   :  { %v3476_v45 = vshrl.u32 %v6974_v63, %v3473_v44  ;;  %v3479_v5 = vshrl.u32 %v6975_v26, %v3473_v44  ;;  %v3482_v55 = vshrl.u32 %v7006_v60, %v3473_v44  ;;  %v3481_v8 = vshll.u32 %v6975_v26, %v3472_v32 }
0x10fc   :  { %v3484_v57 = vshll.u32 %v7006_v60, %v3472_v32  ;;  %v3485_v61 = vshrl.u32 %v4871_v19, %v3473_v44  ;;  %vm3395_vm13 = vc.u32 %v6430_v59, %v6421_v3  ;;  %v3466_v46 = vor.u32 8388608, %v3465_v33 }
0x10fd   :  { %v3477_v42 = vor.u32 %v3476_v45, %v3475_v1  ;;  %v3480_v11 = vor.u32 %v3479_v5, %v3478_v14  ;;  %v3487_v47 = vshll.u32 %v4871_v19, %v3472_v32  ;;  %v3488_v16 = vshrl.u32 %v7007_v30, %v3473_v44 }
0x10fe   :  { %v3377_v40 = vsel %vm3371_vm11, %v3374_v4, %v3376_v53  ;;  %v3483_v17 = vor.u32 %v3482_v55, %v3481_v8  ;;  %v3486_v54 = vor.u32 %v3485_v61, %v3484_v57  ;;  %v3281_v31 = vshll.u32 %v6440_v51, 30 }
0x10ff   :  { %v3489_v45 = vor.u32 %v3488_v16, %v3487_v47  ;;  %vm3490_vm14 = vcmp.lt.s32.totalorder %v3471_v24, 1  ;;  %vm3493_vm15 = vcmp.lt.s32.totalorder %v3471_v24, 4  ;;  %v3397_v5 = vsel %vm3395_vm13, %v3396_v6, %v6422_v28 }
0x1100   :  { %v3498_v1 = vsel %vm3490_vm14, %v3477_v42, %v3480_v11  ;;  %v3499_v33 = vsel %vm3493_vm15, %v3486_v54, 920167782  ;;  %v3581_v32 = vand.u32 2139095040, %v6444_v29  ;;  %v3166_v14 = vclz %v4112_v52 }
0x1101   :  { %v3393_v7 = vmul.u32 %v3386_v58, %v3377_v40  ;;  %vm3492_vm0 = vcmp.lt.s32.totalorder %v3471_v24, 3  ;;  %v3506_v22 = vshll.u32 %v3466_v46, 8  ;;  %vm3491_vm1 = vcmp.lt.s32.totalorder %v3471_v24, 2 }
0x1102   :  { %v3500_v4 = vsel %vm3492_vm0, %v3483_v17, %v3499_v33  ;;  %v3502_v55 = vsel %vm3490_vm14, %v3480_v11, %v3483_v17  ;;  %v3503_v53 = vsel %vm3493_vm15, %v3489_v45, 1326507024  ;;  %v6471_v8 = vsub.s32 %v3278_v21, %v3281_v31 }
0x1103   :  { %v3398_v28 = vadd.s32 %v3397_v5, %v3393_v7  ;;  %v3501_v6 = vsel %vm3491_vm1, %v3498_v1, %v3500_v4  ;;  %v3504_v57 = vsel %vm3492_vm0, %v3486_v54, %v3503_v53  ;;  %v3582_v46 = vshrl.u32 %v3581_v32, 23 }
0x1104   :  { %v3505_v61 = vsel %vm3491_vm1, %v3502_v55, %v3504_v57  ;;  %v6476_v52 = vmul.u32.u64.low %v3506_v22, %v3501_v6  ;;  %v6477_v58 = vmul.u32.u64.high %v3506_v22, %v3501_v6, %v6476_v52  ;;  %v4113_v47 = vadd.s32 4294967294, %v3166_v14 }
0x1105   :  { %v3691_v16 = vrot.slane %v6140_v41, %v7005_v2  ;;  %v3495_v40 = vsel %vm3493_vm15, %v3483_v17, 2102212464  ;;  %v6483_v21 = vmul.u32.u64.low %v3506_v22, %v3505_v61  ;;  %v6484_v31 = vmul.u32.u64.high %v3506_v22, %v3505_v61, %v6483_v21 }
0x1106   :  { %v4127_v7 = vadd.s32 4294967169, %v3582_v46  ;;  %v3284_v45 = vsub.s32 0, %v6471_v8  ;;  %v3399_v54 = vadd.s32 536870912, %v3398_v28  ;;  %v3474_v5 = vshrl.u32 %v6973_v23, %v3473_v44 }
0x1107   :  { %v3496_v32 = vsel %vm3492_vm0, %v3480_v11, %v3495_v40  ;;  %v3696_v14 = vrot.slane %v6143_v25, %v7005_v2  ;;  %vm4114_vm2 = vcmp.lt.s32.totalorder %v4113_v47, 0  ;;  %v6949_v41 = vand.u32 2147483647, %v6444_v29 }
0x1108   :  { %v3588_v1 = vadd.s32 1, %v4127_v7  ;;  %v3494_v33 = vsel %vm3490_vm14, %v3474_v5, %v3477_v42  ;;  %v3692_v17 = vmul.f32 %v3691_v16, %v6149_v15  ;;  %v4116_v4 = vmin.u32 %v3284_v45, %v6471_v8 }
0x1109   :  { %v6495_v55 = vshrl.u32 %v3399_v54, 30  ;;  %v3516_v44 = vadd.s32 1, %v6477_v58  ;;  %v3497_v42 = vsel %vm3491_vm1, %v3494_v33, %v3496_v32  ;;  %vm3515_vm4 = vc.u32 %v6484_v31, %v6476_v52 }
0x110a   :  { %vm3589_vm3 = vcmp.gt.s32.totalorder %v3588_v1, 0  ;;  %v6501_v6 = vsel %vm4114_vm2, 0, %v4113_v47  ;;  %v3585_v57 = vand.u32 8388607, %v6949_v41  ;;  %v6505_v46 = vadd.f32 %v3696_v14, %v3692_v17 }
0x110b   :  { %v3590_v53 = vsel %vm3589_vm3, %v3588_v1, 0  ;;  %v3286_v16 = vclz %v4116_v4  ;;  %v3401_v40 = vshll.u32 %v6495_v55, 30  ;;  %v3513_v21 = vmul.u32 %v3506_v22, %v3497_v42 }
0x110c   :  { %v3592_v11 = vand.u32 31, %v3590_v53  ;;  %7010 = vst [vmem:[#allocation36_spill] sm:$0xff] %v6505_v46  ;;  %v3517_v7 = vsel %vm3515_vm4, %v3516_v44, %v6477_v58  ;;  %v3586_v14 = vor.u32 8388608, %v3585_v57  ;;  %v3591_v22 = vshrl.u32 %v3590_v53, 5 }
0x110d   :  { %v3518_v0 = vadd.s32 %v3517_v7, %v3513_v21  ;;  %v3170_v50 = vsub.s32 32, %v6501_v6  ;;  %v4117_v2 = vadd.s32 4294967294, %v3286_v16  ;;  %v3701_v56 = vand.u32 2139095040, %v6505_v46 }
0x110e   :  { %v3593_v61 = vsub.s32 32, %v3592_v11  ;;  %v3595_v24 = vshll.u32 %v6973_v23, %v3592_v11  ;;  %v3598_v54 = vshll.u32 %v6974_v63, %v3592_v11  ;;  %v3601_v47 = vshll.u32 %v6975_v26, %v3592_v11 }
0x110f   :  { %v3604_v33 = vshll.u32 %v7006_v60, %v3592_v11  ;;  %v3607_v58 = vshll.u32 %v4871_v19, %v3592_v11  ;;  %v6521_v9 = vsub.s32 %v3398_v28, %v3401_v40  ;;  %vm3610_vm5 = vcmp.lt.s32.totalorder %v3591_v22, 1 }
0x1110   :  { %v3596_v45 = vshrl.u32 %v6974_v63, %v3593_v61  ;;  %v3599_v5 = vshrl.u32 %v6975_v26, %v3593_v61  ;;  %v3602_v1 = vshrl.u32 %v7006_v60, %v3593_v61  ;;  %v3605_v32 = vshrl.u32 %v4871_v19, %v3593_v61 }
0x1111   :  { %v3608_v41 = vshrl.u32 %v7007_v30, %v3593_v61  ;;  %vm3613_vm6 = vcmp.lt.s32.totalorder %v3591_v22, 4  ;;  %v3626_v53 = vshll.u32 %v3586_v14, 8  ;;  %vm3612_vm7 = vcmp.lt.s32.totalorder %v3591_v22, 3 }
0x1112   :  { %v3597_v17 = vor.u32 %v3596_v45, %v3595_v24  ;;  %v3600_v4 = vor.u32 %v3599_v5, %v3598_v54  ;;  %v3603_v44 = vor.u32 %v3602_v1, %v3601_v47  ;;  %v3606_v42 = vor.u32 %v3605_v32, %v3604_v33 }
0x1113   :  { %v3609_v43 = vor.u32 %v3608_v41, %v3607_v58  ;;  %v3519_v45 = vadd.s32 536870912, %v3518_v0  ;;  %v3594_v54 = vshrl.u32 %v6973_v23, %v3593_v61  ;;  %vm3611_vm8 = vcmp.lt.s32.totalorder %v3591_v22, 2 }
0x1114   :  { %v3615_v57 = vsel %vm3613_vm6, %v3603_v44, 2102212464  ;;  %v3618_v11 = vsel %vm3610_vm5, %v3597_v17, %v3600_v4  ;;  %v3619_v24 = vsel %vm3613_vm6, %v3606_v42, 920167782  ;;  %v3622_v16 = vsel %vm3610_vm5, %v3600_v4, %v3603_v44 }
0x1115   :  { %v3620_v21 = vsel %vm3612_vm7, %v3603_v44, %v3619_v24  ;;  %v3623_v28 = vsel %vm3613_vm6, %v3609_v43, 1326507024  ;;  %v3702_v40 = vshrl.u32 %v3701_v56, 23  ;;  %v3174_v7 = vsub.s32 4294967266, %v6501_v6 }
0x1116   :  { %v3621_v41 = vsel %vm3611_vm8, %v3618_v11, %v3620_v21  ;;  %v3404_v47 = vsub.s32 0, %v6521_v9  ;;  %v3614_v5 = vsel %vm3610_vm5, %v3594_v54, %v3597_v17  ;;  %v3616_v1 = vsel %vm3612_vm7, %v3600_v4, %v3615_v57 }
0x1117   :  { %v3624_v33 = vsel %vm3612_vm7, %v3606_v42, %v3623_v28  ;;  %v6533_v61 = vmul.u32.u64.low %v3626_v53, %v3621_v41  ;;  %v6534_v32 = vmul.u32.u64.high %v3626_v53, %v3621_v41, %v6533_v61  ;;  %v4131_v14 = vadd.s32 4294967169, %v3702_v40 }
0x1118   :  { %v3154_v58 = vadd.s32 %v6245_v37, %v6251_v48  ;;  %vm4118_vm9 = vcmp.lt.s32.totalorder %v4117_v2, 0  ;;  %v6539_v56 = vshrl.u32 %v3519_v45, 30  ;;  %v3625_v43 = vsel %vm3611_vm8, %v3622_v16, %v3624_v33 }
0x1119   :  { %v6542_v44 = vmul.u32.u64.low %v3626_v53, %v3625_v43  ;;  %v6543_v11 = vmul.u32.u64.high %v3626_v53, %v3625_v43, %v6542_v44  ;;  %v3708_v17 = vadd.s32 1, %v4131_v14  ;;  %v3175_v57 = vadd.s32 127, %v3174_v7 }
0x111a   :  { %v3172_v4 = vshrl.u32 %v3154_v58, %v3170_v50  ;;  %v3617_v42 = vsel %vm3611_vm8, %v3614_v5, %v3616_v1  ;;  %v6546_v24 = vsel %vm4118_vm9, 0, %v4117_v2  ;;  %v4120_v54 = vmin.u32 %v3404_v47, %v6521_v9 }
0x111b   :  { %v3636_v21 = vadd.s32 1, %v6534_v32  ;;  %vm3709_vm10 = vcmp.gt.s32.totalorder %v3708_v17, 0  ;;  %v3171_v37 = vshll.u32 %v6413_v27, %v6501_v6  ;;  %v3521_v48 = vshll.u32 %v6539_v56, 30 }
0x111c   :  { %v3633_v45 = vmul.u32 %v3626_v53, %v3617_v42  ;;  %vm3635_vm11 = vc.u32 %v6543_v11, %v6533_v61  ;;  %v3710_v50 = vsel %vm3709_vm10, %v3708_v17, 0  ;;  %v3176_v22 = vshll.u32 %v3175_v57, 23 }
0x111d   :  { %v6555_v41 = vor.u32 %v3172_v4, %v3171_v37  ;;  %v3294_v2 = vsub.s32 4294967266, %v6546_v24  ;;  %v3637_v16 = vsel %vm3635_vm11, %v3636_v21, %v6534_v32  ;;  %v3406_v28 = vclz %v4120_v54 }
0x111e   :  { %v3638_v40 = vadd.s32 %v3637_v16, %v3633_v45  ;;  %v3712_v7 = vand.u32 31, %v3710_v50  ;;  %v6559_v47 = vsub.s32 %v3518_v0, %v3521_v48  ;;  %v6956_v6 = vand.u32 2147483647, %v6505_v46 }
0x111f   :  { %v3177_v5 = vor.u32 4788187, %v3176_v22  ;;  %v3180_v1 = vcvt.s32.f32 %v6555_v41  ;;  %v3274_v33 = vadd.s32 %v6352_v39, %v6362_v34  ;;  %v3295_v14 = vadd.s32 127, %v3294_v2 }
0x1120   :  { %v3639_v27 = vadd.s32 536870912, %v3638_v40  ;;  %v3713_v53 = vsub.s32 32, %v3712_v7  ;;  %v4121_v58 = vadd.s32 4294967294, %v3406_v28  ;;  %v3524_v0 = vsub.s32 0, %v6559_v47 }
0x1121   :  { %v3724_v4 = vshll.u32 %v7006_v60, %v3712_v7  ;;  %v3705_v42 = vand.u32 8388607, %v6956_v6  ;;  %v3711_v39 = vshrl.u32 %v3710_v50, 5  ;;  %v3715_v34 = vshll.u32 %v6973_v23, %v3712_v7 }
0x1122   :  { %v6565_v43 = vshrl.u32 %v3639_v27, 30  ;;  %v3716_v32 = vshrl.u32 %v6974_v63, %v3713_v53  ;;  %v3719_v44 = vshrl.u32 %v6975_v26, %v3713_v53  ;;  %v3722_v17 = vshrl.u32 %v7006_v60, %v3713_v53 }
0x1123   :  { %v3725_v57 = vshrl.u32 %v4871_v19, %v3713_v53  ;;  %v3718_v54 = vshll.u32 %v6974_v63, %v3712_v7  ;;  %v3721_v37 = vshll.u32 %v6975_v26, %v3712_v7  ;;  %v3728_v45 = vshrl.u32 %v7007_v30, %v3713_v53 }
0x1124   :  { %7011 = vst [vmem:[#allocation37_spill] sm:$0xff] %v6565_v43  ;;  %v3641_v21 = vshll.u32 %v6565_v43, 30  ;;  %v3290_v41 = vsub.s32 32, %v6546_v24  ;;  %v3296_v22 = vshll.u32 %v3295_v14, 23  ;;  %v3717_v2 = vor.u32 %v3716_v32, %v3715_v34 }
0x1125   :  { %v3726_v48 = vor.u32 %v3725_v57, %v3724_v4  ;;  %v3720_v16 = vor.u32 %v3719_v44, %v3718_v54  ;;  %v3178_v28 = vand.u32 2147483647, %v3177_v5  ;;  %v3291_v50 = vshll.u32 %v6471_v8, %v6546_v24 }
0x1126   :  { %v3723_v27 = vor.u32 %v3722_v17, %v3721_v37  ;;  %v3727_v6 = vshll.u32 %v4871_v19, %v3712_v7  ;;  %vm4122_vm12 = vcmp.lt.s32.totalorder %v4121_v58, 0  ;;  %v4124_v46 = vmin.u32 %v3524_v0, %v6559_v47 }
0x1127   :  { %v3706_v43 = vor.u32 8388608, %v3705_v42  ;;  %vm3733_vm13 = vcmp.lt.s32.totalorder %v3711_v39, 4  ;;  %v6585_v4 = vsub.s32 %v3638_v40, %v3641_v21  ;;  %vm3730_vm14 = vcmp.lt.s32.totalorder %v3711_v39, 1 }
0x1128   :  { %v3729_v57 = vor.u32 %v3728_v45, %v3727_v6  ;;  %v3739_v14 = vsel %vm3733_vm13, %v3726_v48, 920167782  ;;  %v3292_v32 = vshrl.u32 %v3274_v33, %v3290_v41  ;;  %v3297_v44 = vor.u32 4788187, %v3296_v22 }
0x1129   :  { %vm3732_vm15 = vcmp.lt.s32.totalorder %v3711_v39, 3  ;;  %v3738_v5 = vsel %vm3730_vm14, %v3717_v2, %v3720_v16  ;;  %v6588_v34 = vsel %vm4122_vm12, 0, %v4121_v58  ;;  %v3714_v8 = vshrl.u32 %v6973_v23, %v3713_v53 }
0x112a   :  { %v3735_v24 = vsel %vm3733_vm13, %v3723_v27, 2102212464  ;;  %v3740_v7 = vsel %vm3732_vm15, %v3723_v27, %v3739_v14  ;;  %v3526_v0 = vclz %v4124_v46  ;;  %vm3731_vm0 = vcmp.lt.s32.totalorder %v3711_v39, 2  ;;  %v4511_v46 = vld [vmem:[%s6910_s11 + $0x8] sm:$0xff] }
0x112b   :  { %v3742_v17 = vsel %vm3730_vm14, %v3720_v16, %v3723_v27  ;;  %v3746_v40 = vshll.u32 %v3706_v43, 8  ;;  %v3644_v6 = vsub.s32 0, %v6585_v4  ;;  %v3734_v42 = vsel %vm3730_vm14, %v3714_v8, %v3717_v2 }
0x112c   :  { %v3741_v54 = vsel %vm3731_vm0, %v3738_v5, %v3740_v7  ;;  %v3743_v33 = vsel %vm3733_vm13, %v3729_v57, 1326507024  ;;  %v3736_v21 = vsel %vm3732_vm15, %v3720_v16, %v3735_v24  ;;  %v3181_v53 = vmul.f32 %v3180_v1, %v3178_v28 }
0x112d   :  { %v3744_v37 = vsel %vm3732_vm15, %v3726_v48, %v3743_v33  ;;  %v6595_v58 = vmul.u32.u64.low %v3746_v40, %v3741_v54  ;;  %v6596_v45 = vmul.u32.u64.high %v3746_v40, %v3741_v54, %v6595_v58  ;;  %v3811_v43 = vrot.slane %v4511_v46, %v5838_v62 }
0x112e   :  { %v3745_v41 = vsel %vm3731_vm0, %v3742_v17, %v3744_v37  ;;  %v3816_v22 = vrot.slane %v6143_v25, %v5838_v62  ;;  %v3293_v2 = vor.u32 %v3292_v32, %v3291_v50  ;;  %v3414_v16 = vsub.s32 4294967266, %v6588_v34 }
0x112f   :  { %v6607_v48 = vmul.u32.u64.low %v3746_v40, %v3745_v41  ;;  %v6608_v27 = vmul.u32.u64.high %v3746_v40, %v3745_v41, %v6607_v48  ;;  %v4125_v57 = vadd.s32 4294967294, %v3526_v0  ;;  %v4128_v1 = vmin.u32 %v3644_v6, %v6585_v4 }
0x1130   :  { %v3737_v28 = vsel %vm3731_vm0, %v3734_v42, %v3736_v21  ;;  %v3812_v14 = vmul.f32 %v3811_v43, %v6149_v15  ;;  %v3298_v5 = vand.u32 2147483647, %v3297_v44  ;;  %v3756_v8 = vadd.s32 1, %v6596_v45 }
0x1131   :  { %v3182_v24 = vxor.u32 2147483648, %v3181_v53  ;;  %v3300_v25 = vcvt.s32.f32 %v3293_v2  ;;  %v3415_v50 = vadd.s32 127, %v3414_v16  ;;  %v3753_v32 = vmul.u32 %v3746_v40, %v3737_v28 }
0x1132   :  { %v6614_v7 = vadd.f32 %v3816_v22, %v3812_v14  ;;  %vm3755_vm1 = vc.u32 %v6608_v27, %v6595_v58  ;;  %vm4126_vm2 = vcmp.lt.s32.totalorder %v4125_v57, 0  ;;  %v3646_v0 = vclz %v4128_v1 }
0x1133   :  { %v3757_v17 = vsel %vm3755_vm1, %v3756_v8, %v6596_v45  ;;  %v3301_v6 = vmul.f32 %v3300_v25, %v3298_v5  ;;  %vm3100_vm3 = vcmp.lt.s32.totalorder %v6159_v12, 0  ;;  %v3184_v44 = vsub.s32 4, %v6345_v20 }
0x1134   :  { %v3821_v39 = vand.u32 2139095040, %v6614_v7  ;;  %v3758_v15 = vadd.s32 %v3757_v17, %v3753_v32  ;;  %v3183_v54 = vsel %vm3100_vm3, %v3182_v24, %v3181_v53  ;;  %v6622_v33 = vsel %vm4126_vm2, 0, %v4125_v57 }
0x1135   :  { %v3410_v21 = vsub.s32 32, %v6588_v34  ;;  %v3416_v37 = vshll.u32 %v3415_v50, 23  ;;  %v4129_v41 = vadd.s32 4294967294, %v3646_v0  ;;  %v7012_v45 = vand.u32 2147483647, %v6159_v12 }
0x1136   :  { %v3822_v42 = vshrl.u32 %v3821_v39, 23  ;;  %v3759_v40 = vadd.s32 536870912, %v3758_v15  ;;  %v3302_v22 = vxor.u32 2147483648, %v3301_v6  ;;  %v3304_v2 = vsub.s32 4, %v6440_v51 }
0x1137   :  { %vm6627_vm4 = vcmp.le.f32.partialorder %v7012_v45, 0.7853982  ;;  %v6635_v53 = vsel %vm3100_vm3, %v3184_v44, %v6345_v20  ;;  %v3394_v48 = vadd.s32 %v6421_v3, %v6430_v59  ;;  %v3534_v57 = vsub.s32 4294967266, %v6622_v33 }
0x1138   :  { %v4135_v46 = vadd.s32 4294967169, %v3822_v42  ;;  %v6632_v16 = vshrl.u32 %v3759_v40, 30  ;;  %v3186_v28 = vsel %vm6627_vm4, %v6159_v12, %v3183_v54  ;;  %v7015_v14 = vand.u32 2147483647, %v6171_v38 }
0x1139   :  { %vm3220_vm6 = vcmp.lt.s32.totalorder %v6171_v38, 0  ;;  %v3412_v8 = vshrl.u32 %v3394_v48, %v3410_v21  ;;  %v6651_v24 = vor.u32 4788187, %v3416_v37  ;;  %vm4130_vm7 = vcmp.lt.s32.totalorder %v4129_v41, 0 }
0x113a   :  { %v3828_v1 = vadd.s32 1, %v4135_v46  ;;  %vm6645_vm5 = vcmp.le.f32.partialorder %v7015_v14, 0.7853982  ;;  %v3761_v20 = vshll.u32 %v6632_v16, 30  ;;  %v3187_v3 = vsel %vm6627_vm4, 0, %v6635_v53 }
0x113b   :  { %v3303_v59 = vsel %vm3220_vm6, %v3302_v22, %v3301_v6  ;;  %v6657_v25 = vsel %vm3220_vm6, %v3304_v2, %v6440_v51  ;;  %4481 = vcosq.f32 %v3186_v28  ;;  %v3411_v32 = vshll.u32 %v6521_v9, %v6588_v34 }
0x113c   :  { %vm3829_vm8 = vcmp.gt.s32.totalorder %v3828_v1, 0  ;;  %v6659_v50 = vsub.s32 %v3758_v15, %v3761_v20  ;;  %v3535_v0 = vadd.s32 127, %v3534_v57  ;;  %4483 = vsinq.f32 %v3186_v28 }
0x113d   :  { %v3830_v17 = vsel %vm3829_vm8, %v3828_v1, 0  ;;  %v6663_v39 = vsel %vm4130_vm7, 0, %v4129_v41  ;;  %v6961_v42 = vand.u32 2147483647, %v6614_v7  ;;  %v6670_v51 = vsel %vm6645_vm5, %v6171_v38, %v3303_v59 }
0x113e   :  { %v3764_v44 = vsub.s32 0, %v6659_v50  ;;  %v6672_v6 = vor.u32 %v3412_v8, %v3411_v32  ;;  %v3418_v15 = vand.u32 2147483647, %v6651_v24  ;;  %v3832_v54 = vand.u32 31, %v3830_v17 }
0x113f   :  { %v3514_v9 = vadd.s32 %v6476_v52, %v6484_v31  ;;  %v3530_v34 = vsub.s32 32, %v6622_v33  ;;  %v3531_v40 = vshll.u32 %v6559_v47, %v6622_v33  ;;  %v3536_v37 = vshll.u32 %v3535_v0, 23 }
0x1140   :  { %v4132_v21 = vmin.u32 %v3764_v44, %v6659_v50  ;;  %v3634_v41 = vadd.s32 %v6533_v61, %v6543_v11  ;;  %v3654_v46 = vsub.s32 4294967266, %v6663_v39  ;;  %v3833_v45 = vsub.s32 32, %v3832_v54 }
0x1141   :  { %v3825_v2 = vand.u32 8388607, %v6961_v42  ;;  %v3831_v48 = vshrl.u32 %v3830_v17, 5  ;;  %v3835_v52 = vshll.u32 %v6973_v23, %v3832_v54  ;;  %v3838_v47 = vshll.u32 %v6974_v63, %v3832_v54 }
0x1142   :  { %v3766_v22 = vclz %v4132_v21  ;;  %v3836_v31 = vshrl.u32 %v6974_v63, %v3833_v45  ;;  %v3839_v33 = vshrl.u32 %v6975_v26, %v3833_v45  ;;  %v3841_v57 = vshll.u32 %v6975_v26, %v3832_v54 }
0x1143   :  { %v3842_v61 = vshrl.u32 %v7006_v60, %v3833_v45  ;;  %v3844_v11 = vshll.u32 %v7006_v60, %v3832_v54  ;;  %v3845_v28 = vshrl.u32 %v4871_v19, %v3833_v45  ;;  %v3847_v8 = vshll.u32 %v4871_v19, %v3832_v54 }
0x1144   :  { %v4133_v1 = vadd.s32 4294967294, %v3766_v22  ;;  %v3837_v14 = vor.u32 %v3836_v31, %v3835_v52  ;;  %v3840_v20 = vor.u32 %v3839_v33, %v3838_v47  ;;  %v3848_v59 = vshrl.u32 %v7007_v30, %v3833_v45 }
0x1145   :  { %v3532_v32 = vshrl.u32 %v3514_v9, %v3530_v34  ;;  %v3843_v63 = vor.u32 %v3842_v61, %v3841_v57  ;;  %v3846_v0 = vor.u32 %v3845_v28, %v3844_v11  ;;  %v6696_v17 = vpop.eup %4481  ;;  %v3537_v26 = vor.u32 4788187, %v3536_v37 }
0x1146   :  { %vm4134_vm9 = vcmp.lt.s32.totalorder %v4133_v1, 0  ;;  %v3826_v21 = vor.u32 8388608, %v3825_v2  ;;  %v3849_v22 = vor.u32 %v3848_v59, %v3847_v8  ;;  %v6700_v60 = vpop.eup %4483  ;;  %v3655_v42 = vadd.s32 127, %v3654_v46 }
0x1147   :  { %v6698_v44 = vsel %vm4134_vm9, 0, %v4133_v1  ;;  %vm3850_vm10 = vcmp.lt.s32.totalorder %v3831_v48, 1  ;;  %vm3853_vm11 = vcmp.lt.s32.totalorder %v3831_v48, 4  ;;  %v3834_v19 = vshrl.u32 %v6973_v23, %v3833_v45 }
0x1148   :  { %v3774_v52 = vsub.s32 4294967266, %v6698_v44  ;;  %vm3852_vm12 = vcmp.lt.s32.totalorder %v3831_v48, 3  ;;  %v3858_v30 = vsel %vm3850_vm10, %v3837_v14, %v3840_v20  ;;  %v3859_v54 = vsel %vm3853_vm11, %v3846_v0, 920167782 }
0x1149   :  { %vm3851_vm13 = vcmp.lt.s32.totalorder %v3831_v48, 2  ;;  %v3855_v9 = vsel %vm3853_vm11, %v3843_v63, 2102212464  ;;  %v3860_v34 = vsel %vm3852_vm12, %v3843_v63, %v3859_v54  ;;  %v3862_v37 = vsel %vm3850_vm10, %v3840_v20, %v3843_v63 }
0x114a   :  { %v3650_v2 = vsub.s32 32, %v6663_v39  ;;  %v3861_v31 = vsel %vm3851_vm13, %v3858_v30, %v3860_v34  ;;  %v3863_v46 = vsel %vm3853_vm11, %v3849_v22, 1326507024  ;;  %v3866_v47 = vshll.u32 %v3826_v21, 8 }
0x114b   :  { %v3656_v33 = vshll.u32 %v3655_v42, 23  ;;  %v3775_v57 = vadd.s32 127, %v3774_v52  ;;  %v3854_v1 = vsel %vm3850_vm10, %v3834_v19, %v3837_v14  ;;  %v3864_v23 = vsel %vm3852_vm12, %v3846_v0, %v3863_v46 }
0x114c   :  { %v3856_v45 = vsel %vm3852_vm12, %v3840_v20, %v3855_v9  ;;  %v3865_v61 = vsel %vm3851_vm13, %v3862_v37, %v3864_v23  ;;  %v6710_v11 = vmul.u32.u64.low %v3866_v47, %v3861_v31  ;;  %v6711_v28 = vmul.u32.u64.high %v3866_v47, %v3861_v31, %v6710_v11 }
0x114d   :  { %v3307_v8 = vsel %vm6645_vm5, 0, %v6657_v25  ;;  %4485 = vcosq.f32 %v6670_v51  ;;  %v3420_v59 = vcvt.s32.f32 %v6672_v6  ;;  %v3533_v42 = vor.u32 %v3532_v32, %v3531_v40 }
0x114e   :  { %v3652_v63 = vshrl.u32 %v3634_v41, %v3650_v2  ;;  %v3770_v14 = vsub.s32 32, %v6698_v44  ;;  %v6720_v0 = vmul.u32.u64.low %v3866_v47, %v3865_v61  ;;  %v6721_v20 = vmul.u32.u64.high %v3866_v47, %v3865_v61, %v6720_v0 }
0x114f   :  { %v3421_v21 = vmul.f32 %v3420_v59, %v3418_v15  ;;  %v3538_v22 = vand.u32 2147483647, %v3537_v26  ;;  %v3651_v52 = vshll.u32 %v6585_v4, %v6663_v39  ;;  %v3857_v5 = vsel %vm3851_vm13, %v3854_v1, %v3856_v45  ;;  %v6736_v15 = vld [vmem:[#allocation20 + $0x8] sm:$0xff] }
0x1150   :  { %v3657_v25 = vor.u32 4788187, %v3656_v33  ;;  %v3754_v6 = vadd.s32 %v6595_v58, %v6608_v27  ;;  %v3776_v40 = vshll.u32 %v3775_v57, 23  ;;  %v3876_v41 = vadd.s32 1, %v6711_v28 }
0x1151   :  { %v3191_v32 = vadd.s32 3, %v3187_v3  ;;  %4487 = vsinq.f32 %v6670_v51  ;;  %v3540_v24 = vcvt.s32.f32 %v3533_v42  ;;  %v3653_v4 = vor.u32 %v3652_v63, %v3651_v52 }
0x1152   :  { %v3772_v39 = vshrl.u32 %v3754_v6, %v3770_v14  ;;  %v3873_v48 = vmul.u32 %v3866_v47, %v3857_v5  ;;  %vm3875_vm14 = vc.u32 %v6721_v20, %v6710_v11  ;;  %v3311_v58 = vadd.s32 3, %v3307_v8 }
0x1153   :  { %v3422_v27 = vxor.u32 2147483648, %v3421_v21  ;;  %v3541_v26 = vmul.f32 %v3540_v24, %v3538_v22  ;;  %v3877_v19 = vsel %vm3875_vm14, %v3876_v41, %v6711_v28  ;;  %v3658_v43 = vand.u32 2147483647, %v3657_v25 }
0x1154   :  { %v3771_v53 = vshll.u32 %v6659_v50, %v6698_v44  ;;  %v3777_v3 = vor.u32 4788187, %v3776_v40  ;;  %v3878_v51 = vadd.s32 %v3877_v19, %v3873_v48  ;;  %v3085_v30 = vrot.slane %v6736_v15, %v5292_v35 }
0x1155   :  { %v3192_v54 = vand.u32 3, %v3191_v32  ;;  %v3205_v9 = vrot.slane %v6736_v15, %v5295_v36  ;;  %vm3340_vm15 = vcmp.lt.s32.totalorder %v6221_v13, 0  ;;  %v3660_v34 = vcvt.s32.f32 %v3653_v4 }
0x1156   :  { %v3773_v37 = vor.u32 %v3772_v39, %v3771_v53  ;;  %v3879_v2 = vadd.s32 536870912, %v3878_v51  ;;  %v3312_v46 = vand.u32 3, %v3311_v58  ;;  %v3325_v47 = vrot.slane %v6736_v15, %v5322_v49 }
0x1157   :  { %v4486_v31 = vpop.eup %4485  ;;  %v7018_v50 = vand.u32 2147483647, %v6221_v13  ;;  %v3423_v35 = vsel %vm3340_vm15, %v3422_v27, %v3421_v21  ;;  %v3542_v33 = vxor.u32 2147483648, %v3541_v26  ;;  %v3661_v57 = vmul.f32 %v3660_v34, %v3658_v43  ;;  %v4106_v43 = vld [vmem:[#allocation22 + $0x1] ss:$0 sm:$0xff]  ;;  %v7028_v34 = vld [vmem:[#allocation36_spill] sm:$0xff] }
0x1158   :  { %v3778_v1 = vand.u32 2147483647, %v3777_v3  ;;  %v6758_v23 = vshrl.u32 %v3879_v2, 30  ;;  %vm3193_vm1 = vcmp.lt.s32.totalorder %v3192_v54, 2  ;;  %vm3194_vm2 = vcmp.eq.s32.totalorder %v3192_v54, 0  ;;  %v7027_v3 = vld [vmem:[#allocation37_spill] sm:$0xff] }
0x1159   :  { %vm6752_vm0 = vcmp.le.f32.partialorder %v7018_v50, 0.7853982  ;;  %v3195_v45 = vxor.u32 2147483648, %v6700_v60  ;;  %v3198_v61 = vxor.u32 2147483648, %v6696_v17  ;;  %v3424_v28 = vsub.s32 4, %v6495_v55 }
0x115a   :  { %v3426_v8 = vsel %vm6752_vm0, %v6221_v13, %v3423_v35  ;;  %v3780_v59 = vcvt.s32.f32 %v3773_v37  ;;  %v3881_v42 = vshll.u32 %v6758_v23, 30  ;;  %vm3190_vm3 = vweird.f32 %v6159_v12 }
0x115b   :  { %v4488_v63 = vpop.eup %4487  ;;  %vm3197_vm4 = vcmp.eq.s32.totalorder %v3192_v54, 2  ;;  %vm3314_vm5 = vcmp.eq.s32.totalorder %v3312_v46, 0  ;;  %v7021_v14 = vand.u32 2147483647, %v6342_v18  ;;  %vm3460_vm7 = vcmp.lt.s32.totalorder %v6342_v18, 0 }
0x115c   :  { %v3543_v21 = vsel %vm3460_vm7, %v3542_v33, %v3541_v26  ;;  %v3662_v22 = vxor.u32 2147483648, %v3661_v57  ;;  %v3781_v52 = vmul.f32 %v3780_v59, %v3778_v1  ;;  %v6777_v5 = vsub.s32 %v3878_v51, %v3881_v42 }
0x115d   :  { %vm6770_vm6 = vcmp.le.f32.partialorder %v7021_v14, 0.7853982  ;;  %v3196_v25 = vsel %vm3194_vm2, %v6696_v17, %v3195_v45  ;;  %v3199_v6 = vsel %vm3197_vm4, %v3198_v61, %v6700_v60  ;;  %v3318_v40 = vxor.u32 2147483648, %v4486_v31 }
0x115e   :  { %4489 = vcosq.f32 %v3426_v8  ;;  %v3315_v41 = vxor.u32 2147483648, %v4488_v63  ;;  %v3425_v32 = vsel %vm3340_vm15, %v3424_v28, %v6495_v55  ;;  %v3884_v24 = vsub.s32 0, %v6777_v5 }
0x115f   :  { %4491 = vsinq.f32 %v3426_v8  ;;  %v3086_v4 = vmul.f32 %v3085_v30, %v6387_v10  ;;  %vm3317_vm8 = vcmp.eq.s32.totalorder %v3312_v46, 2  ;;  %v3546_v39 = vsel %vm6770_vm6, %v6342_v18, %v3543_v21 }
0x1160   :  { %vm3580_vm9 = vcmp.lt.s32.totalorder %v6444_v29, 0  ;;  %v7024_v17 = vand.u32 2147483647, %v6444_v29  ;;  %v3782_v48 = vxor.u32 2147483648, %v3781_v52  ;;  %v4136_v58 = vmin.u32 %v3884_v24, %v6777_v5 }
0x1161   :  { %v3663_v55 = vsel %vm3580_vm9, %v3662_v22, %v3661_v57  ;;  %v3200_v10 = vsel %vm3193_vm1, %v3196_v25, %v3199_v6  ;;  %v3319_v27 = vsel %vm3317_vm8, %v3318_v40, %v4488_v63  ;;  %v3427_v26 = vsel %vm6752_vm0, 0, %v3425_v32 }
0x1162   :  { %vm6793_vm10 = vcmp.le.f32.partialorder %v7024_v17, 0.7853982  ;;  %v3544_v19 = vsub.s32 4, %v6539_v56  ;;  %v3316_v53 = vsel %vm3314_vm5, %v4486_v31, %v3315_v41  ;;  %4493 = vcosq.f32 %v3546_v39 }
0x1163   :  { %v3664_v51 = vsub.s32 4, %v7027_v3  ;;  %v3886_v30 = vclz %v4136_v58  ;;  %vm3310_vm11 = vweird.f32 %v6171_v38  ;;  %4495 = vsinq.f32 %v3546_v39 }
0x1164   :  { %v3666_v54 = vsel %vm6793_vm10, %v6444_v29, %v3663_v55  ;;  %vm3700_vm12 = vcmp.lt.s32.totalorder %v7028_v34, 0  ;;  %v3201_v37 = vsel %vm3190_vm3, nan, %v3200_v10  ;;  %vm3313_vm13 = vcmp.lt.s32.totalorder %v3312_v46, 2 }
0x1165   :  { %v3783_v2 = vsel %vm3700_vm12, %v3782_v48, %v3781_v52  ;;  %v4137_v31 = vadd.s32 4294967294, %v3886_v30  ;;  %v3087_v50 = vadd.f32 %v4106_v43, %v3086_v4  ;;  %v3320_v44 = vsel %vm3313_vm13, %v3316_v53, %v3319_v27 }
0x1166   :  { %v3431_v35 = vadd.s32 3, %v3427_v26  ;;  %v3545_v33 = vsel %vm3460_vm7, %v3544_v19, %v6539_v56  ;;  %v3665_v57 = vsel %vm3580_vm9, %v3664_v51, %v7027_v3  ;;  %4497 = vcosq.f32 %v3666_v54 }
0x1167   :  { %v7029_v12 = vand.u32 2147483647, %v7028_v34  ;;  %vm4138_vm15 = vcmp.lt.s32.totalorder %v4137_v31, 0  ;;  %v3206_v45 = vmul.f32 %v3205_v9, %v3201_v37  ;;  %4499 = vsinq.f32 %v3666_v54 }
0x1168   :  { %v4490_v1 = vpop.eup %4489  ;;  %v3889_v61 = vsel %vm4138_vm15, 0, %v4137_v31  ;;  %v3547_v8 = vsel %vm6770_vm6, 0, %v3545_v33  ;;  %v3874_v59 = vadd.s32 %v6710_v11, %v6721_v20  ;;  %v3321_v14 = vsel %vm3310_vm11, nan, %v3320_v44 }
0x1169   :  { %vm6823_vm14 = vcmp.le.f32.partialorder %v7029_v12, 0.7853982  ;;  %v4492_v28 = vpop.eup %4491  ;;  %v3890_v42 = vsub.s32 32, %v3889_v61  ;;  %v3894_v63 = vsub.s32 4294967266, %v3889_v61  ;;  %v3432_v36 = vand.u32 3, %v3431_v35 }
0x116a   :  { %v3786_v56 = vsel %vm6823_vm14, %v7028_v34, %v3783_v2  ;;  %v3667_v9 = vsel %vm6793_vm10, 0, %v3665_v57  ;;  %v3784_v21 = vsub.s32 4, %v6632_v16  ;;  %v3891_v22 = vshll.u32 %v6777_v5, %v3889_v61 }
0x116b   :  { %4501 = vcosq.f32 %v3786_v56  ;;  %v3892_v52 = vshrl.u32 %v3874_v59, %v3890_v42  ;;  %v3895_v0 = vadd.s32 127, %v3894_v63  ;;  %v3435_v25 = vxor.u32 2147483648, %v4492_v28 }
0x116c   :  { %v3438_v6 = vxor.u32 2147483648, %v4490_v1  ;;  %v3551_v40 = vadd.s32 3, %v3547_v8  ;;  %4503 = vsinq.f32 %v3786_v56  ;;  %v4494_v11 = vpop.eup %4493  ;;  %v3207_v32 = vadd.f32 %v3206_v45, %v3087_v50 }
0x116d   :  { %v3893_v20 = vor.u32 %v3892_v52, %v3891_v22  ;;  %v3896_v41 = vshll.u32 %v3895_v0, 23  ;;  %v4496_v38 = vpop.eup %4495  ;;  %vm3430_vm0 = vweird.f32 %v6221_v13  ;;  %v3671_v24 = vadd.s32 3, %v3667_v9 }
0x116e   :  { %v3785_v4 = vsel %vm3700_vm12, %v3784_v21, %v6632_v16  ;;  %v3326_v5 = vmul.f32 %v3325_v47, %v3321_v14  ;;  %vm3434_vm1 = vcmp.eq.s32.totalorder %v3432_v36, 0  ;;  %vm3437_vm2 = vcmp.eq.s32.totalorder %v3432_v36, 2  ;;  %v7032_v16 = vld [vmem:[#allocation32_spill] sm:$0xff]  ;;  %v7036_v14 = vld [vmem:[#allocation33_spill] sm:$0xff] }
0x116f   :  { %v3897_v39 = vor.u32 4788187, %v3896_v41  ;;  %v3436_v17 = vsel %vm3434_vm1, %v4490_v1, %v3435_v25  ;;  %v3439_v60 = vsel %vm3437_vm2, %v3438_v6, %v4492_v28  ;;  %v3552_v55 = vand.u32 3, %v3551_v40  ;;  %v7037_v40 = vld [vmem:[#allocation34_spill] sm:$0xff] }
0x1170   :  { %v3558_v48 = vxor.u32 2147483648, %v4494_v11  ;;  %v4498_v58 = vpop.eup %4497  ;;  %v3555_v10 = vxor.u32 2147483648, %v4496_v38  ;;  %v3787_v27 = vsel %vm6823_vm14, 0, %v3785_v4  ;;  %v3900_v19 = vcvt.s32.f32 %v3893_v20 }
0x1171   :  { %v3898_v26 = vand.u32 2147483647, %v3897_v39  ;;  %v4500_v43 = vpop.eup %4499  ;;  %vm3433_vm3 = vcmp.lt.s32.totalorder %v3432_v36, 2  ;;  %v3445_v49 = vrot.slane %v6736_v15, %v7032_v16  ;;  %vm3550_vm4 = vweird.f32 %v6342_v18 }
0x1172   :  { %v3672_v47 = vand.u32 3, %v3671_v24  ;;  %v3327_v53 = vadd.f32 %v3326_v5, %v3207_v32  ;;  %v3440_v3 = vsel %vm3433_vm3, %v3436_v17, %v3439_v60  ;;  %v3904_v30 = vsub.s32 4, %v6758_v23  ;;  %v7038_v24 = vld [vmem:[#allocation35_spill] sm:$0xff] }
0x1173   :  { %v3901_v51 = vmul.f32 %v3900_v19, %v3898_v26  ;;  %vm3554_vm5 = vcmp.eq.s32.totalorder %v3552_v55, 0  ;;  %vm3557_vm6 = vcmp.eq.s32.totalorder %v3552_v55, 2  ;;  %v3678_v54 = vxor.u32 2147483648, %v4498_v58 }
0x1174   :  { %v3791_v37 = vadd.s32 3, %v3787_v27  ;;  %v3556_v31 = vsel %vm3554_vm5, %v4494_v11, %v3555_v10  ;;  %v3559_v50 = vsel %vm3557_vm6, %v3558_v48, %v4496_v38  ;;  %v3675_v44 = vxor.u32 2147483648, %v4500_v43 }
0x1175   :  { %v4502_v2 = vpop.eup %4501  ;;  %v3902_v35 = vxor.u32 2147483648, %v3901_v51  ;;  %v3441_v57 = vsel %vm3430_vm0, nan, %v3440_v3  ;;  %vm3553_vm7 = vcmp.lt.s32.totalorder %v3552_v55, 2  ;;  %vm3674_vm8 = vcmp.eq.s32.totalorder %v3672_v47, 0 }
0x1176   :  { %v4504_v33 = vpop.eup %4503  ;;  %vm3820_vm9 = vcmp.lt.s32.totalorder %v6614_v7, 0  ;;  %vm3677_vm10 = vcmp.eq.s32.totalorder %v3672_v47, 2  ;;  %v7033_v12 = vand.u32 2147483647, %v6614_v7  ;;  %v3560_v56 = vsel %vm3553_vm7, %v3556_v31, %v3559_v50 }
0x1177   :  { %v3903_v1 = vsel %vm3820_vm9, %v3902_v35, %v3901_v51  ;;  %v3905_v45 = vsel %vm3820_vm9, %v3904_v30, %v6758_v23  ;;  %v3679_v61 = vsel %vm3677_vm10, %v3678_v54, %v4500_v43  ;;  %v3792_v28 = vand.u32 3, %v3791_v37 }
0x1178   :  { %vm6861_vm11 = vcmp.le.f32.partialorder %v7033_v12, 0.7853982  ;;  %v3676_v8 = vsel %vm3674_vm8, %v4498_v58, %v3675_v44  ;;  %v3795_v59 = vxor.u32 2147483648, %v4504_v33  ;;  %v3798_v42 = vxor.u32 2147483648, %v4502_v2 }
0x1179   :  { %v3906_v13 = vsel %vm6861_vm11, %v6614_v7, %v3903_v1  ;;  %v3446_v63 = vmul.f32 %v3445_v49, %v3441_v57  ;;  %v3565_v36 = vrot.slane %v6736_v15, %v7036_v14  ;;  %v3907_v9 = vsel %vm6861_vm11, 0, %v3905_v45  ;;  %v4139_v49 = vld [vmem:[%s6915_s16] ss:$0 sm:$0xff] }
0x117a   :  { %4505 = vcosq.f32 %v3906_v13  ;;  %v3561_v23 = vsel %vm3550_vm4, nan, %v3560_v56  ;;  %vm3673_vm12 = vcmp.lt.s32.totalorder %v3672_v47, 2  ;;  %vm3794_vm13 = vcmp.eq.s32.totalorder %v3792_v28, 0 }
0x117b   :  { %4507 = vsinq.f32 %v3906_v13  ;;  %v3447_v21 = vadd.f32 %v3446_v63, %v3327_v53  ;;  %v3680_v22 = vsel %vm3673_vm12, %v3676_v8, %v3679_v61  ;;  %vm3797_vm14 = vcmp.eq.s32.totalorder %v3792_v28, 2 }
0x117c   :  { %v3796_v52 = vsel %vm3794_vm13, %v4502_v2, %v3795_v59  ;;  %v3799_v0 = vsel %vm3797_vm14, %v3798_v42, %v4504_v33  ;;  %v3911_v25 = vadd.s32 3, %v3907_v9  ;;  %v3566_v6 = vmul.f32 %v3565_v36, %v3561_v23 }
0x117d   :  { %vm3670_vm15 = vweird.f32 %v6444_v29  ;;  %v3685_v11 = vrot.slane %v6736_v15, %v7037_v40  ;;  %vm3793_vm0 = vcmp.lt.s32.totalorder %v3792_v28, 2  ;;  %vm3790_vm1 = vweird.f32 %v7028_v34 }
0x117e   :  { %v3681_v20 = vsel %vm3670_vm15, nan, %v3680_v22  ;;  %v3567_v41 = vadd.f32 %v3566_v6, %v3447_v21  ;;  %v3800_v38 = vsel %vm3793_vm0, %v3796_v52, %v3799_v0  ;;  %v3912_v18 = vand.u32 3, %v3911_v25 }
0x117f   :  { %v3686_v32 = vmul.f32 %v3685_v11, %v3681_v20  ;;  %v3805_v4 = vrot.slane %v6736_v15, %v7038_v24  ;;  %v3801_v39 = vsel %vm3790_vm1, nan, %v3800_v38  ;;  %v3925_v10 = vrot.slane %v6736_v15, %v5838_v62 }
0x1180   :  { %vm3917_vm2 = vcmp.eq.s32.totalorder %v3912_v18, 2  ;;  %vm3914_vm3 = vcmp.eq.s32.totalorder %v3912_v18, 0  ;;  %vm3913_vm4 = vcmp.lt.s32.totalorder %v3912_v18, 2  ;;  %vm3910_vm5 = vweird.f32 %v6614_v7 }
0x1181   :  { %v3687_v60 = vadd.f32 %v3686_v32, %v3567_v41  ;;  %v3806_v48 = vmul.f32 %v3805_v4, %v3801_v39  ;;  %vm3939_vm6 = vcmask 261120  }
0x1183   :  { %v3807_v26 = vadd.f32 %v3806_v48, %v3687_v60 }
0x1184   :  { %v4506_v5 = vpop.eup %4505 }
0x1185   :  { %v4508_v17 = vpop.eup %4507  ;;  %v3918_v55 = vxor.u32 2147483648, %v4506_v5 }
0x1186   :  { %v3915_v29 = vxor.u32 2147483648, %v4508_v17 }
0x1187   :  { %v3919_v58 = vsel %vm3917_vm2, %v3918_v55, %v4508_v17 }
0x1188   :  { %v3916_v27 = vsel %vm3914_vm3, %v4506_v5, %v3915_v29 }
0x1189   :  { %v3920_v34 = vsel %vm3913_vm4, %v3916_v27, %v3919_v58 }
0x118a   :  { %v3921_v19 = vsel %vm3910_vm5, nan, %v3920_v34 }
0x118b   :  { %v3926_v43 = vmul.f32 %v3925_v10, %v3921_v19 }
0x118d   :  { %v3927_v16 = vadd.f32 %v3926_v43, %v3807_v26 }
0x118f   :  { %4298 = vmatmul.mubr.msk.f32.vlgmr.msra.gmra.mrb[18].mxu0 %vm3939_vm6, %v3927_v16 }
0x1262   :  { %v4009_v47 = vpop.f32.mrb[18].mxu0 }
0x1263   :  { %v4010_v53 = vadd.f32 %v4139_v49, %v4009_v47  ;;  %v4299_v62 = vpop.f32.mrb[19].mxu0 }
0x1265   :  { %4013 = vst [vmem:[#allocation23] sm:$0x3] %v4010_v53 }
0x1266   :  { %4809 = shalt.err (!%p4806_p10)
}
0x1267   :  { %s4810_s10 = scalar_lea.hbm %s6916_s17, 32 }
0x1268   :  { %p4811_p11 = scmp.ne.s32.totalorder %s6916_s17, %s4810_s10  ;;  %p4814_p12 = scmp.lt.u32.totalorder %s4810_s10, %s6916_s17 }
0x126a   :  { %p4816_p13 = pnand %p4814_p12, %p4811_p11 }
0x126c   :  { %4819 = shalt.err (!%p4816_p13)
}
0x126d   :  { %4023 = dma.vmem_to_hbm [thread:$0]  %s4021_s20, 32, %s6916_s17, [#allocation4]  }
0x126e   :  { %4834 = dma.done.wait [#allocation4], 32  }
0x126f   :  { %4835 = vsyncadd [#allocation4], 4294967264 }
0x1270   :  { %4027 = vsyncpa [#allocation3], 1 }
0x1271   :  { %4028 = vsyncpa [#allocation6], 1 }
0x1272   :  { %4029 = vsyncpa [#allocation9], 1 }
0x1273   :  { %4030 = vsyncpa [#allocation12], 1 }
0x1274   :  { %4031 = vsyncpa [#allocation15], 1 }
0x1275   :  { %4032 = vsyncpa [#allocation18], 1 }
0x1276   :  { %4033 = vsyncpa [#allocation21], 1 }
0x1277   :  { %4034 = vsyncpa [#allocation4], 1 }

</bundles_post_ra>
